<compile_context>
chip_gen: v6e
topology: v6e:2x2x1
jax: 0.10.0
libtpu: 0.0.40
codegen_flags: <defaults>
</compile_context>

<pallas_src>
import functools

import jax
import jax.numpy as jnp
from jax.experimental import pallas as pl
from jax.experimental.pallas import tpu as pltpu


def _round_up(x, m):
    return ((x + m - 1) // m) * m


def _bn_fold(gamma, beta, mean, var, eps=1e-5):
    scale = gamma / jnp.sqrt(var + eps)
    return scale, beta - mean * scale


def _pad_lane(v, np_):
    return jnp.pad(v, ((0, np_ - v.shape[0]),)).reshape(1, np_).astype(jnp.float32)


# ---------------------------------------------------------------------------
# Kernel A: 3x1x1 temporal conv + folded BN + ReLU.
# ---------------------------------------------------------------------------
def _conv_a_kernel(x0_ref, x1_ref, x2_ref, w_ref, sc_ref, sh_ref, o_ref):
    acc = jnp.dot(x0_ref[0, 0], w_ref[0], preferred_element_type=jnp.float32)
    acc = acc + jnp.dot(x1_ref[0, 0], w_ref[1],
                        preferred_element_type=jnp.float32)
    acc = acc + jnp.dot(x2_ref[0, 0], w_ref[2],
                        preferred_element_type=jnp.float32)
    y = acc * sc_ref[...] + sh_ref[...]
    o_ref[0, 0] = jnp.maximum(y, 0.0).astype(o_ref.dtype)


def _stage_a(x4, w, scale, shift):
    """x4: (N, D, H*W, Cin) bf16; w: (Cint, Cin, 3). -> (N, D, H*W, Np) bf16."""
    N, D, HW, Cin = x4.shape
    Cint = w.shape[0]
    Np = _round_up(Cint, 128)                       # lane-dense output (>=128)

    wt = jnp.transpose(w, (2, 1, 0))                # (3, Cin, Cint), tap-major
    wt = jnp.pad(wt, ((0, 0), (0, 0), (0, Np - Cint))).astype(jnp.bfloat16)
    sc = _pad_lane(scale, Np)
    sh = _pad_lane(shift, Np)

    xp = jnp.pad(x4, ((0, 0), (1, 1), (0, 0), (0, 0)))   # temporal pad (1,0,0)

    def xspec(t):
        return pl.BlockSpec((1, 1, HW, Cin), lambda n, d, t=t: (n, d + t, 0, 0))

    return pl.pallas_call(
        _conv_a_kernel,
        out_shape=jax.ShapeDtypeStruct((N, D, HW, Np), jnp.bfloat16),
        grid_spec=pltpu.PrefetchScalarGridSpec(
            num_scalar_prefetch=0,
            grid=(N, D),
            in_specs=[
                xspec(0), xspec(1), xspec(2),
                pl.BlockSpec((3, Cin, Np), lambda n, d: (0, 0, 0)),
                pl.BlockSpec((1, Np), lambda n, d: (0, 0)),
                pl.BlockSpec((1, Np), lambda n, d: (0, 0)),
            ],
            out_specs=pl.BlockSpec((1, 1, HW, Np), lambda n, d: (n, d, 0, 0)),
        ),
        compiler_params=pltpu.CompilerParams(
            dimension_semantics=("parallel", "parallel")),
    )(xp, xp, xp, wt, sc, sh)


# ---------------------------------------------------------------------------
# Kernel B: 1x3x3 spatial conv (stride s) + folded BN + ReLU.
# ---------------------------------------------------------------------------
def _conv_b_kernel(x_ref, w_ref, sc_ref, sh_ref, o_ref, *, s, Ho, Wo):
    C = x_ref.shape[-1]
    acc = None
    for kh in range(3):
        for kw in range(3):
            plane = x_ref[0, (kh % s) * s + (kw % s)]          # (Hq, Wq, C)
            oh, ow = kh // s, kw // s
            xt = plane[oh:oh + Ho, ow:ow + Wo, :].reshape(Ho * Wo, C)
            d = jnp.dot(xt, w_ref[kh * 3 + kw],
                        preferred_element_type=jnp.float32)
            acc = d if acc is None else acc + d
    y = acc * sc_ref[...] + sh_ref[...]
    o_ref[0] = jnp.maximum(y, 0.0).astype(o_ref.dtype)


def _stage_b(a4, w, scale, shift, stride, H, W):
    """a4: (N, D, H*W, Cp) bf16; w: (Cint, Cint, 3, 3). -> (N*D, Ho*Wo, Np)."""
    N, D, _, Cp = a4.shape
    Cint = w.shape[0]
    s = stride
    Ho = (H - 1) // s + 1
    Wo = (W - 1) // s + 1
    Hq = Ho + 2 // s
    Wq = Wo + 2 // s
    Np = _round_up(Cint, 128)

    wt = jnp.transpose(w, (2, 3, 1, 0)).reshape(9, Cint, Cint)  # (kh*3+kw, I, O)
    wt = jnp.pad(wt, ((0, 0), (0, Cp - Cint), (0, Np - Cint))).astype(jnp.bfloat16)
    sc = _pad_lane(scale, Np)
    sh = _pad_lane(shift, Np)

    # Spatial zero-pad (0,1,1), sized so the stride-parity reshape is exact.
    a5 = a4.reshape(N, D, H, W, Cp)
    ph = max(s * Hq - (H + 1), 1)
    pw = max(s * Wq - (W + 1), 1)
    ap = jnp.pad(a5, ((0, 0), (0, 0), (1, ph), (1, pw), (0, 0)))
    ap = ap[:, :, :s * Hq, :s * Wq, :]
    # [nd, rh*s+rw, qh, qw, c] == padded[n, d, qh*s+rh, qw*s+rw, c], so every
    # 3x3 tap is a contiguous static slice inside the kernel.
    ap = ap.reshape(N, D, Hq, s, Wq, s, Cp).transpose(0, 1, 3, 5, 2, 4, 6)
    ap = ap.reshape(N * D, s * s, Hq, Wq, Cp)

    kern = functools.partial(_conv_b_kernel, s=s, Ho=Ho, Wo=Wo)
    return pl.pallas_call(
        kern,
        out_shape=jax.ShapeDtypeStruct((N * D, Ho * Wo, Np), jnp.bfloat16),
        grid_spec=pltpu.PrefetchScalarGridSpec(
            num_scalar_prefetch=0,
            grid=(N * D,),
            in_specs=[
                pl.BlockSpec((1, s * s, Hq, Wq, Cp),
                             lambda i: (i, 0, 0, 0, 0)),
                pl.BlockSpec((9, Cp, Np), lambda i: (0, 0, 0)),
                pl.BlockSpec((1, Np), lambda i: (0, 0)),
                pl.BlockSpec((1, Np), lambda i: (0, 0)),
            ],
            out_specs=pl.BlockSpec((1, Ho * Wo, Np), lambda i: (i, 0, 0)),
        ),
        compiler_params=pltpu.CompilerParams(
            dimension_semantics=("parallel",)),
    )(ap, wt, sc, sh)


# ---------------------------------------------------------------------------
# Kernel C: 1x1x1 conv + BN fused with skip 1x1x1 conv + BN + add + ReLU.
# ---------------------------------------------------------------------------
def _conv_c_kernel(b_ref, wc_ref, scc_ref, shc_ref,
                   xs_ref, ws_ref, scs_ref, shs_ref, o_ref):
    c = jnp.dot(b_ref[...], wc_ref[...], preferred_element_type=jnp.float32)
    skip = jnp.dot(xs_ref[...], ws_ref[...], preferred_element_type=jnp.float32)
    y = (c * scc_ref[...] + shc_ref[...]) + (skip * scs_ref[...] + shs_ref[...])
    o_ref[...] = jnp.maximum(y, 0.0).astype(o_ref.dtype)


def _stage_c(b2d, w_c, sc_c, sh_c, xs2d, w_s, sc_s, sh_s):
    """b2d: (M, Kc) bf16; xs2d: (M, Cin) bf16; w_c: (Cout, Cint); w_s: (Cout, Cin)."""
    M, Kc = b2d.shape
    Cin = xs2d.shape[1]
    Cout, Cint = w_c.shape
    Np = _round_up(Cout, 128)

    wc = jnp.pad(w_c.T, ((0, Kc - Cint), (0, Np - Cout))).astype(jnp.bfloat16)
    ws = jnp.pad(w_s.T, ((0, 0), (0, Np - Cout))).astype(jnp.bfloat16)
    scc, shc = _pad_lane(sc_c, Np), _pad_lane(sh_c, Np)
    scs, shs = _pad_lane(sc_s, Np), _pad_lane(sh_s, Np)

    # Largest power-of-two row tile <= 256 that divides M: row padding stays a
    # no-op and there are >= 2 parallel M tiles (keeps both v7x TCs busy).
    tm = 8
    for cand in (256, 128, 64, 32, 16, 8):
        if M % cand == 0:
            tm = cand
            break
    Mp = _round_up(M, tm)
    if Mp != M:
        b2d = jnp.pad(b2d, ((0, Mp - M), (0, 0)))
        xs2d = jnp.pad(xs2d, ((0, Mp - M), (0, 0)))

    if Np <= 256:
        tn = Np
    elif Np % 256 == 0:
        tn = 256
    else:
        tn = 128

    out = pl.pallas_call(
        _conv_c_kernel,
        out_shape=jax.ShapeDtypeStruct((Mp, Np), jnp.float32),
        grid_spec=pltpu.PrefetchScalarGridSpec(
            num_scalar_prefetch=0,
            grid=(Mp // tm, Np // tn),
            in_specs=[
                pl.BlockSpec((tm, Kc), lambda i, j: (i, 0)),
                pl.BlockSpec((Kc, tn), lambda i, j: (0, j)),
                pl.BlockSpec((1, tn), lambda i, j: (0, j)),
                pl.BlockSpec((1, tn), lambda i, j: (0, j)),
                pl.BlockSpec((tm, Cin), lambda i, j: (i, 0)),
                pl.BlockSpec((Cin, tn), lambda i, j: (0, j)),
                pl.BlockSpec((1, tn), lambda i, j: (0, j)),
                pl.BlockSpec((1, tn), lambda i, j: (0, j)),
            ],
            out_specs=pl.BlockSpec((tm, tn), lambda i, j: (i, j)),
        ),
        compiler_params=pltpu.CompilerParams(
            dimension_semantics=("parallel", "parallel")),
    )(b2d, wc, scc, shc, xs2d, ws, scs, shs)

    return out[:M, :Cout]


# ---------------------------------------------------------------------------
# BottleneckTransform forward
# ---------------------------------------------------------------------------
@functools.partial(jax.jit, static_argnames=("stride",))
def bottleneck_transform(x, params, *, stride):
    """x: (N, Cin, D, H, W) -> (N, Cout, D, Ho, Wo)."""
    N, Cin, D, H, W = x.shape
    s = stride
    Ho = (H - 1) // s + 1
    Wo = (W - 1) // s + 1
    Cint = params["a"]["w"].shape[0]
    Cout = params["c"]["w"].shape[0]

    # Channels-last bf16 working copy (MXU-native operands; f32 accumulation
    # and f32 folded-BN epilogues happen inside the kernels).
    xl = jnp.transpose(x, (0, 2, 3, 4, 1)).astype(jnp.bfloat16)  # (N,D,H,W,Cin)

    # ---- a: 3x1x1 temporal conv + BN + ReLU ------------------------------
    sc_a, sh_a = _bn_fold(*params["a"]["bn"])
    a4 = _stage_a(xl.reshape(N, D, H * W, Cin),
                  params["a"]["w"].reshape(Cint, Cin, 3), sc_a, sh_a)

    # ---- b: 1x3x3 spatial conv (stride s) + BN + ReLU --------------------
    sc_b, sh_b = _bn_fold(*params["b"]["bn"])
    b3 = _stage_b(a4, params["b"]["w"].reshape(Cint, Cint, 3, 3),
                  sc_b, sh_b, s, H, W)

    # ---- c + skip: two 1x1x1 convs + BNs + add + ReLU in one kernel ------
    sc_c, sh_c = _bn_fold(*params["c"]["bn"])
    sc_s, sh_s = _bn_fold(*params["skip"]["bn"])
    M = N * D * Ho * Wo
    b2d = b3.reshape(M, b3.shape[-1])
    xs2d = xl[:, :, ::s, ::s, :].reshape(M, Cin)
    out2d = _stage_c(b2d, params["c"]["w"].reshape(Cout, Cint), sc_c, sh_c,
                     xs2d, params["skip"]["w"].reshape(Cout, Cin), sc_s, sh_s)

    out = out2d.reshape(N, D, Ho, Wo, Cout)
    return jnp.transpose(out, (0, 4, 1, 2, 3)).astype(x.dtype)  # NCDHW


# ---------------------------------------------------------------------------
# Pure-JAX f32 reference (XLA conv) for correctness checking
# ---------------------------------------------------------------------------
def _conv3d_ref(x, w, stride, padding):
    return jax.lax.conv_general_dilated(
        x, w,
        window_strides=stride,
        padding=[(p, p) for p in padding],
        dimension_numbers=("NCDHW", "OIDHW", "NCDHW"),
    )


def _bn_ref(y, gamma, beta, mean, var, eps=1e-5):
    scale = gamma / jnp.sqrt(var + eps)
    shift = beta - mean * scale
    return y * scale.reshape(1, -1, 1, 1, 1) + shift.reshape(1, -1, 1, 1, 1)


def bottleneck_reference(x, params, stride):
    skip = _bn_ref(
        _conv3d_ref(x, params["skip"]["w"], (1, stride, stride), (0, 0, 0)),
        *params["skip"]["bn"])
    a = jax.nn.relu(_bn_ref(
        _conv3d_ref(x, params["a"]["w"], (1, 1, 1), (1, 0, 0)),
        *params["a"]["bn"]))
    b = jax.nn.relu(_bn_ref(
        _conv3d_ref(a, params["b"]["w"], (1, stride, stride), (0, 1, 1)),
        *params["b"]["bn"]))
    c = _bn_ref(
        _conv3d_ref(b, params["c"]["w"], (1, 1, 1), (0, 0, 0)),
        *params["c"]["bn"])
    return jax.nn.relu(c + skip)


if __name__ == "__main__":
    key = jax.random.PRNGKey(0)
    N, Cin, Cint, Cout = 2, 4, 4, 16
    D, H, W, stride = 8, 16, 16, 2

    keys = jax.random.split(key, 9)

    def bn_params(k, c):
        k1, k2, k3, k4 = jax.random.split(k, 4)
        gamma = jax.random.uniform(k1, (c,), minval=0.5, maxval=1.5,
                                   dtype=jnp.float32)
        beta = 0.1 * jax.random.normal(k2, (c,), dtype=jnp.float32)
        mean = 0.1 * jax.random.normal(k3, (c,), dtype=jnp.float32)
        var = jax.random.uniform(k4, (c,), minval=0.5, maxval=1.5,
                                 dtype=jnp.float32)
        return gamma, beta, mean, var

    x = jax.random.normal(keys[0], (N, Cin, D, H, W), dtype=jnp.float32)
    params = {
        "skip": {"w": 0.3 * jax.random.normal(keys[1], (Cout, Cin, 1, 1, 1),
                                              dtype=jnp.float32),
                 "bn": bn_params(keys[2], Cout)},
        "a": {"w": 0.3 * jax.random.normal(keys[3], (Cint, Cin, 3, 1, 1),
                                           dtype=jnp.float32),
              "bn": bn_params(keys[4], Cint)},
        "b": {"w": 0.2 * jax.random.normal(keys[5], (Cint, Cint, 1, 3, 3),
                                           dtype=jnp.float32),
              "bn": bn_params(keys[6], Cint)},
        "c": {"w": 0.3 * jax.random.normal(keys[7], (Cout, Cint, 1, 1, 1),
                                           dtype=jnp.float32),
              "bn": bn_params(keys[8], Cout)},
    }

    out = bottleneck_transform(x, params, stride=stride)
    out = jax.block_until_ready(out)

    ref = bottleneck_reference(x, params, stride)
    assert out.shape == (N, Cout, D, H // stride, W // stride), out.shape
    assert out.shape == ref.shape, (out.shape, ref.shape)
    # Tolerance accounts for bf16 MXU operands / bf16 intermediate activations
    # (f32 accumulation) vs. the pure-f32 XLA reference.
    assert jnp.allclose(out, ref, rtol=2e-2, atol=5e-2), float(
        jnp.max(jnp.abs(out - ref)))

    print("KERNEL_OK")
</pallas_src>

<mosaic_0001>
module attributes {stable_mosaic.version = 11 : i64} {
  func.func @_conv_a_kernel(%arg0: i32, %arg1: i32, %arg2: memref<1x1x256x4xbf16, #tpu.memory_space<vmem>>, %arg3: memref<1x1x256x4xbf16, #tpu.memory_space<vmem>>, %arg4: memref<1x1x256x4xbf16, #tpu.memory_space<vmem>>, %arg5: memref<3x4x128xbf16, #tpu.memory_space<vmem>>, %arg6: memref<1x128xf32, #tpu.memory_space<vmem>>, %arg7: memref<1x128xf32, #tpu.memory_space<vmem>>, %arg8: memref<1x1x256x128xbf16, #tpu.memory_space<vmem>>) attributes {dimension_semantics = [#tpu.dimension_semantics<parallel>, #tpu.dimension_semantics<parallel>], iteration_bounds = array<i64: 2, 8>, scalar_prefetch = 0 : i64, scratch_operands = 0 : i64, tpu.core_type = #tpu.core_type<tc>, window_params = [{transform_indices = @transform_0, window_bounds = array<i64: 1, 1, 256, 4>}, {transform_indices = @transform_1, window_bounds = array<i64: 1, 1, 256, 4>}, {transform_indices = @transform_2, window_bounds = array<i64: 1, 1, 256, 4>}, {pipeline_mode = #tpu.pipeline_mode<synchronous>, transform_indices = @transform_3, window_bounds = array<i64: 3, 4, 128>}, {pipeline_mode = #tpu.pipeline_mode<synchronous>, transform_indices = @transform_4, window_bounds = array<i64: 1, 128>}, {pipeline_mode = #tpu.pipeline_mode<synchronous>, transform_indices = @transform_5, window_bounds = array<i64: 1, 128>}, {transform_indices = @transform_6, window_bounds = array<i64: 1, 1, 256, 128>}]} {
    %c0 = arith.constant 0 : index
    %c0_0 = arith.constant 0 : index
    %c0_1 = arith.constant 0 : index
    %c0_2 = arith.constant 0 : index
    %0 = vector.load %arg2[%c0, %c0_0, %c0_1, %c0_2] : memref<1x1x256x4xbf16, #tpu.memory_space<vmem>>, vector<1x1x256x4xbf16>
    %1 = vector.shape_cast %0 : vector<1x1x256x4xbf16> to vector<256x4xbf16>
    %c0_3 = arith.constant 0 : index
    %c0_4 = arith.constant 0 : index
    %c0_5 = arith.constant 0 : index
    %2 = vector.load %arg5[%c0_3, %c0_4, %c0_5] : memref<3x4x128xbf16, #tpu.memory_space<vmem>>, vector<1x4x128xbf16>
    %3 = vector.shape_cast %2 : vector<1x4x128xbf16> to vector<4x128xbf16>
    %cst = arith.constant dense<0.000000e+00> : vector<256x128xf32>
    %4 = tpu.matmul %1, %3, %cst {dimension_numbers = #tpu.dot_dimension_numbers<[1], [0], [0], [1], [0, 0, 1, 1], [], []>} : vector<256x4xbf16>, vector<4x128xbf16>, vector<256x128xf32> -> vector<256x128xf32>
    %c0_6 = arith.constant 0 : index
    %c0_7 = arith.constant 0 : index
    %c0_8 = arith.constant 0 : index
    %c0_9 = arith.constant 0 : index
    %5 = vector.load %arg3[%c0_6, %c0_7, %c0_8, %c0_9] : memref<1x1x256x4xbf16, #tpu.memory_space<vmem>>, vector<1x1x256x4xbf16>
    %6 = vector.shape_cast %5 : vector<1x1x256x4xbf16> to vector<256x4xbf16>
    %c1 = arith.constant 1 : index
    %c0_10 = arith.constant 0 : index
    %c0_11 = arith.constant 0 : index
    %7 = vector.load %arg5[%c1, %c0_10, %c0_11] : memref<3x4x128xbf16, #tpu.memory_space<vmem>>, vector<1x4x128xbf16>
    %8 = vector.shape_cast %7 : vector<1x4x128xbf16> to vector<4x128xbf16>
    %cst_12 = arith.constant dense<0.000000e+00> : vector<256x128xf32>
    %9 = tpu.matmul %6, %8, %cst_12 {dimension_numbers = #tpu.dot_dimension_numbers<[1], [0], [0], [1], [0, 0, 1, 1], [], []>} : vector<256x4xbf16>, vector<4x128xbf16>, vector<256x128xf32> -> vector<256x128xf32>
    %10 = arith.addf %4, %9 : vector<256x128xf32>
    %c0_13 = arith.constant 0 : index
    %c0_14 = arith.constant 0 : index
    %c0_15 = arith.constant 0 : index
    %c0_16 = arith.constant 0 : index
    %11 = vector.load %arg4[%c0_13, %c0_14, %c0_15, %c0_16] : memref<1x1x256x4xbf16, #tpu.memory_space<vmem>>, vector<1x1x256x4xbf16>
    %12 = vector.shape_cast %11 : vector<1x1x256x4xbf16> to vector<256x4xbf16>
    %c2 = arith.constant 2 : index
    %c0_17 = arith.constant 0 : index
    %c0_18 = arith.constant 0 : index
    %13 = vector.load %arg5[%c2, %c0_17, %c0_18] : memref<3x4x128xbf16, #tpu.memory_space<vmem>>, vector<1x4x128xbf16>
    %14 = vector.shape_cast %13 : vector<1x4x128xbf16> to vector<4x128xbf16>
    %cst_19 = arith.constant dense<0.000000e+00> : vector<256x128xf32>
    %15 = tpu.matmul %12, %14, %cst_19 {dimension_numbers = #tpu.dot_dimension_numbers<[1], [0], [0], [1], [0, 0, 1, 1], [], []>} : vector<256x4xbf16>, vector<4x128xbf16>, vector<256x128xf32> -> vector<256x128xf32>
    %16 = arith.addf %10, %15 : vector<256x128xf32>
    %c0_20 = arith.constant 0 : index
    %c0_21 = arith.constant 0 : index
    %17 = vector.load %arg6[%c0_20, %c0_21] : memref<1x128xf32, #tpu.memory_space<vmem>>, vector<1x128xf32>
    %18 = vector.broadcast %17 : vector<1x128xf32> to vector<256x128xf32>
    %19 = arith.mulf %16, %18 : vector<256x128xf32>
    %c0_22 = arith.constant 0 : index
    %c0_23 = arith.constant 0 : index
    %20 = vector.load %arg7[%c0_22, %c0_23] : memref<1x128xf32, #tpu.memory_space<vmem>>, vector<1x128xf32>
    %21 = vector.broadcast %20 : vector<1x128xf32> to vector<256x128xf32>
    %22 = arith.addf %19, %21 : vector<256x128xf32>
    %cst_24 = arith.constant 0.000000e+00 : f32
    %23 = vector.broadcast %cst_24 : f32 to vector<256x128xf32>
    %24 = arith.maximumf %22, %23 : vector<256x128xf32>
    %25 = arith.truncf %24 : vector<256x128xf32> to vector<256x128xbf16>
    %c0_25 = arith.constant 0 : index
    %c0_26 = arith.constant 0 : index
    %c0_27 = arith.constant 0 : index
    %c0_28 = arith.constant 0 : index
    %26 = vector.load %arg8[%c0_25, %c0_26, %c0_27, %c0_28] : memref<1x1x256x128xbf16, #tpu.memory_space<vmem>>, vector<1x1x256x128xbf16>
    %27 = vector.shape_cast %26 : vector<1x1x256x128xbf16> to vector<256x128xbf16>
    %28 = vector.shape_cast %25 : vector<256x128xbf16> to vector<1x1x256x128xbf16>
    tpu.vector_store %arg8[%c0_25, %c0_26, %c0_27, %c0_28], %28 {strides = array<i32>} : memref<1x1x256x128xbf16, #tpu.memory_space<vmem>>, vector<1x1x256x128xbf16>,
    return
  }
  func.func @transform_0(%arg0: i32, %arg1: i32) -> (i32, i32, i32, i32) {
    %c0_i32 = arith.constant 0 : i32
    %0 = arith.addi %arg1, %c0_i32 : i32
    %c0_i32_0 = arith.constant 0 : i32
    %c0_i32_1 = arith.constant 0 : i32
    %c0_i32_2 = arith.constant 0 : i32
    return %arg0, %0, %c0_i32_0, %c0_i32_1 : i32, i32, i32, i32
  }
  func.func @transform_1(%arg0: i32, %arg1: i32) -> (i32, i32, i32, i32) {
    %c1_i32 = arith.constant 1 : i32
    %0 = arith.addi %arg1, %c1_i32 : i32
    %c0_i32 = arith.constant 0 : i32
    %c0_i32_0 = arith.constant 0 : i32
    %c0_i32_1 = arith.constant 0 : i32
    return %arg0, %0, %c0_i32, %c0_i32_0 : i32, i32, i32, i32
  }
  func.func @transform_2(%arg0: i32, %arg1: i32) -> (i32, i32, i32, i32) {
    %c2_i32 = arith.constant 2 : i32
    %0 = arith.addi %arg1, %c2_i32 : i32
    %c0_i32 = arith.constant 0 : i32
    %c0_i32_0 = arith.constant 0 : i32
    %c0_i32_1 = arith.constant 0 : i32
    return %arg0, %0, %c0_i32, %c0_i32_0 : i32, i32, i32, i32
  }
  func.func @transform_3(%arg0: i32, %arg1: i32) -> (i32, i32, i32) {
    %c0_i32 = arith.constant 0 : i32
    %c0_i32_0 = arith.constant 0 : i32
    %c0_i32_1 = arith.constant 0 : i32
    %c0_i32_2 = arith.constant 0 : i32
    return %c0_i32, %c0_i32_0, %c0_i32_1 : i32, i32, i32
  }
  func.func @transform_4(%arg0: i32, %arg1: i32) -> (i32, i32) {
    %c0_i32 = arith.constant 0 : i32
    %c0_i32_0 = arith.constant 0 : i32
    %c0_i32_1 = arith.constant 0 : i32
    return %c0_i32, %c0_i32_0 : i32, i32
  }
  func.func @transform_5(%arg0: i32, %arg1: i32) -> (i32, i32) {
    %c0_i32 = arith.constant 0 : i32
    %c0_i32_0 = arith.constant 0 : i32
    %c0_i32_1 = arith.constant 0 : i32
    return %c0_i32, %c0_i32_0 : i32, i32
  }
  func.func @transform_6(%arg0: i32, %arg1: i32) -> (i32, i32, i32, i32) {
    %c0_i32 = arith.constant 0 : i32
    %c0_i32_0 = arith.constant 0 : i32
    %c0_i32_1 = arith.constant 0 : i32
    return %arg0, %arg1, %c0_i32, %c0_i32_0 : i32, i32, i32, i32
  }
}

module attributes {stable_mosaic.version = 11 : i64} {
  func.func @_conv_b_kernel(%arg0: i32, %arg1: memref<1x4x9x9x128xbf16, #tpu.memory_space<vmem>>, %arg2: memref<9x128x128xbf16, #tpu.memory_space<vmem>>, %arg3: memref<1x128xf32, #tpu.memory_space<vmem>>, %arg4: memref<1x128xf32, #tpu.memory_space<vmem>>, %arg5: memref<1x64x128xbf16, #tpu.memory_space<vmem>>) attributes {dimension_semantics = [#tpu.dimension_semantics<parallel>], iteration_bounds = array<i64: 16>, scalar_prefetch = 0 : i64, scratch_operands = 0 : i64, tpu.core_type = #tpu.core_type<tc>, window_params = [{transform_indices = @transform_0, window_bounds = array<i64: 1, 4, 9, 9, 128>}, {pipeline_mode = #tpu.pipeline_mode<synchronous>, transform_indices = @transform_1, window_bounds = array<i64: 9, 128, 128>}, {pipeline_mode = #tpu.pipeline_mode<synchronous>, transform_indices = @transform_2, window_bounds = array<i64: 1, 128>}, {pipeline_mode = #tpu.pipeline_mode<synchronous>, transform_indices = @transform_3, window_bounds = array<i64: 1, 128>}, {transform_indices = @transform_4, window_bounds = array<i64: 1, 64, 128>}]} {
    %c0 = arith.constant 0 : index
    %c0_0 = arith.constant 0 : index
    %c0_1 = arith.constant 0 : index
    %c0_2 = arith.constant 0 : index
    %c0_3 = arith.constant 0 : index
    %0 = vector.load %arg1[%c0, %c0_0, %c0_1, %c0_2, %c0_3] : memref<1x4x9x9x128xbf16, #tpu.memory_space<vmem>>, vector<1x1x9x9x128xbf16>
    %1 = vector.shape_cast %0 : vector<1x1x9x9x128xbf16> to vector<9x9x128xbf16>
    %2 = vector.extract_strided_slice %1 {offsets = [0, 0, 0], sizes = [8, 8, 128], strides = [1, 1, 1]} : vector<9x9x128xbf16> to vector<8x8x128xbf16>
    %3 = vector.shape_cast %2 : vector<8x8x128xbf16> to vector<64x128xbf16>
    %c0_4 = arith.constant 0 : index
    %c0_5 = arith.constant 0 : index
    %c0_6 = arith.constant 0 : index
    %4 = vector.load %arg2[%c0_4, %c0_5, %c0_6] : memref<9x128x128xbf16, #tpu.memory_space<vmem>>, vector<1x128x128xbf16>
    %5 = vector.shape_cast %4 : vector<1x128x128xbf16> to vector<128x128xbf16>
    %cst = arith.constant dense<0.000000e+00> : vector<64x128xf32>
    %6 = tpu.matmul %3, %5, %cst {dimension_numbers = #tpu.dot_dimension_numbers<[1], [0], [0], [1], [0, 0, 1, 1], [], []>} : vector<64x128xbf16>, vector<128x128xbf16>, vector<64x128xf32> -> vector<64x128xf32>
    %c0_7 = arith.constant 0 : index
    %c1 = arith.constant 1 : index
    %c0_8 = arith.constant 0 : index
    %c0_9 = arith.constant 0 : index
    %c0_10 = arith.constant 0 : index
    %7 = vector.load %arg1[%c0_7, %c1, %c0_8, %c0_9, %c0_10] : memref<1x4x9x9x128xbf16, #tpu.memory_space<vmem>>, vector<1x1x9x9x128xbf16>
    %8 = vector.shape_cast %7 : vector<1x1x9x9x128xbf16> to vector<9x9x128xbf16>
    %9 = vector.extract_strided_slice %8 {offsets = [0, 0, 0], sizes = [8, 8, 128], strides = [1, 1, 1]} : vector<9x9x128xbf16> to vector<8x8x128xbf16>
    %10 = vector.shape_cast %9 : vector<8x8x128xbf16> to vector<64x128xbf16>
    %c1_11 = arith.constant 1 : index
    %c0_12 = arith.constant 0 : index
    %c0_13 = arith.constant 0 : index
    %11 = vector.load %arg2[%c1_11, %c0_12, %c0_13] : memref<9x128x128xbf16, #tpu.memory_space<vmem>>, vector<1x128x128xbf16>
    %12 = vector.shape_cast %11 : vector<1x128x128xbf16> to vector<128x128xbf16>
    %cst_14 = arith.constant dense<0.000000e+00> : vector<64x128xf32>
    %13 = tpu.matmul %10, %12, %cst_14 {dimension_numbers = #tpu.dot_dimension_numbers<[1], [0], [0], [1], [0, 0, 1, 1], [], []>} : vector<64x128xbf16>, vector<128x128xbf16>, vector<64x128xf32> -> vector<64x128xf32>
    %14 = arith.addf %6, %13 : vector<64x128xf32>
    %c0_15 = arith.constant 0 : index
    %c0_16 = arith.constant 0 : index
    %c0_17 = arith.constant 0 : index
    %c0_18 = arith.constant 0 : index
    %c0_19 = arith.constant 0 : index
    %15 = vector.load %arg1[%c0_15, %c0_16, %c0_17, %c0_18, %c0_19] : memref<1x4x9x9x128xbf16, #tpu.memory_space<vmem>>, vector<1x1x9x9x128xbf16>
    %16 = vector.shape_cast %15 : vector<1x1x9x9x128xbf16> to vector<9x9x128xbf16>
    %17 = vector.extract_strided_slice %16 {offsets = [0, 1, 0], sizes = [8, 8, 128], strides = [1, 1, 1]} : vector<9x9x128xbf16> to vector<8x8x128xbf16>
    %18 = vector.shape_cast %17 : vector<8x8x128xbf16> to vector<64x128xbf16>
    %c2 = arith.constant 2 : index
    %c0_20 = arith.constant 0 : index
    %c0_21 = arith.constant 0 : index
    %19 = vector.load %arg2[%c2, %c0_20, %c0_21] : memref<9x128x128xbf16, #tpu.memory_space<vmem>>, vector<1x128x128xbf16>
    %20 = vector.shape_cast %19 : vector<1x128x128xbf16> to vector<128x128xbf16>
    %cst_22 = arith.constant dense<0.000000e+00> : vector<64x128xf32>
    %21 = tpu.matmul %18, %20, %cst_22 {dimension_numbers = #tpu.dot_dimension_numbers<[1], [0], [0], [1], [0, 0, 1, 1], [], []>} : vector<64x128xbf16>, vector<128x128xbf16>, vector<64x128xf32> -> vector<64x128xf32>
    %22 = arith.addf %14, %21 : vector<64x128xf32>
    %c0_23 = arith.constant 0 : index
    %c2_24 = arith.constant 2 : index
    %c0_25 = arith.constant 0 : index
    %c0_26 = arith.constant 0 : index
    %c0_27 = arith.constant 0 : index
    %23 = vector.load %arg1[%c0_23, %c2_24, %c0_25, %c0_26, %c0_27] : memref<1x4x9x9x128xbf16, #tpu.memory_space<vmem>>, vector<1x1x9x9x128xbf16>
    %24 = vector.shape_cast %23 : vector<1x1x9x9x128xbf16> to vector<9x9x128xbf16>
    %25 = vector.extract_strided_slice %24 {offsets = [0, 0, 0], sizes = [8, 8, 128], strides = [1, 1, 1]} : vector<9x9x128xbf16> to vector<8x8x128xbf16>
    %26 = vector.shape_cast %25 : vector<8x8x128xbf16> to vector<64x128xbf16>
    %c3 = arith.constant 3 : index
    %c0_28 = arith.constant 0 : index
    %c0_29 = arith.constant 0 : index
    %27 = vector.load %arg2[%c3, %c0_28, %c0_29] : memref<9x128x128xbf16, #tpu.memory_space<vmem>>, vector<1x128x128xbf16>
    %28 = vector.shape_cast %27 : vector<1x128x128xbf16> to vector<128x128xbf16>
    %cst_30 = arith.constant dense<0.000000e+00> : vector<64x128xf32>
    %29 = tpu.matmul %26, %28, %cst_30 {dimension_numbers = #tpu.dot_dimension_numbers<[1], [0], [0], [1], [0, 0, 1, 1], [], []>} : vector<64x128xbf16>, vector<128x128xbf16>, vector<64x128xf32> -> vector<64x128xf32>
    %30 = arith.addf %22, %29 : vector<64x128xf32>
    %c0_31 = arith.constant 0 : index
    %c3_32 = arith.constant 3 : index
    %c0_33 = arith.constant 0 : index
    %c0_34 = arith.constant 0 : index
    %c0_35 = arith.constant 0 : index
    %31 = vector.load %arg1[%c0_31, %c3_32, %c0_33, %c0_34, %c0_35] : memref<1x4x9x9x128xbf16, #tpu.memory_space<vmem>>, vector<1x1x9x9x128xbf16>
    %32 = vector.shape_cast %31 : vector<1x1x9x9x128xbf16> to vector<9x9x128xbf16>
    %33 = vector.extract_strided_slice %32 {offsets = [0, 0, 0], sizes = [8, 8, 128], strides = [1, 1, 1]} : vector<9x9x128xbf16> to vector<8x8x128xbf16>
    %34 = vector.shape_cast %33 : vector<8x8x128xbf16> to vector<64x128xbf16>
    %c4 = arith.constant 4 : index
    %c0_36 = arith.constant 0 : index
    %c0_37 = arith.constant 0 : index
    %35 = vector.load %arg2[%c4, %c0_36, %c0_37] : memref<9x128x128xbf16, #tpu.memory_space<vmem>>, vector<1x128x128xbf16>
    %36 = vector.shape_cast %35 : vector<1x128x128xbf16> to vector<128x128xbf16>
    %cst_38 = arith.constant dense<0.000000e+00> : vector<64x128xf32>
    %37 = tpu.matmul %34, %36, %cst_38 {dimension_numbers = #tpu.dot_dimension_numbers<[1], [0], [0], [1], [0, 0, 1, 1], [], []>} : vector<64x128xbf16>, vector<128x128xbf16>, vector<64x128xf32> -> vector<64x128xf32>
    %38 = arith.addf %30, %37 : vector<64x128xf32>
    %c0_39 = arith.constant 0 : index
    %c2_40 = arith.constant 2 : index
    %c0_41 = arith.constant 0 : index
    %c0_42 = arith.constant 0 : index
    %c0_43 = arith.constant 0 : index
    %39 = vector.load %arg1[%c0_39, %c2_40, %c0_41, %c0_42, %c0_43] : memref<1x4x9x9x128xbf16, #tpu.memory_space<vmem>>, vector<1x1x9x9x128xbf16>
    %40 = vector.shape_cast %39 : vector<1x1x9x9x128xbf16> to vector<9x9x128xbf16>
    %41 = vector.extract_strided_slice %40 {offsets = [0, 1, 0], sizes = [8, 8, 128], strides = [1, 1, 1]} : vector<9x9x128xbf16> to vector<8x8x128xbf16>
    %42 = vector.shape_cast %41 : vector<8x8x128xbf16> to vector<64x128xbf16>
    %c5 = arith.constant 5 : index
    %c0_44 = arith.constant 0 : index
    %c0_45 = arith.constant 0 : index
    %43 = vector.load %arg2[%c5, %c0_44, %c0_45] : memref<9x128x128xbf16, #tpu.memory_space<vmem>>, vector<1x128x128xbf16>
    %44 = vector.shape_cast %43 : vector<1x128x128xbf16> to vector<128x128xbf16>
    %cst_46 = arith.constant dense<0.000000e+00> : vector<64x128xf32>
    %45 = tpu.matmul %42, %44, %cst_46 {dimension_numbers = #tpu.dot_dimension_numbers<[1], [0], [0], [1], [0, 0, 1, 1], [], []>} : vector<64x128xbf16>, vector<128x128xbf16>, vector<64x128xf32> -> vector<64x128xf32>
    %46 = arith.addf %38, %45 : vector<64x128xf32>
    %c0_47 = arith.constant 0 : index
    %c0_48 = arith.constant 0 : index
    %c0_49 = arith.constant 0 : index
    %c0_50 = arith.constant 0 : index
    %c0_51 = arith.constant 0 : index
    %47 = vector.load %arg1[%c0_47, %c0_48, %c0_49, %c0_50, %c0_51] : memref<1x4x9x9x128xbf16, #tpu.memory_space<vmem>>, vector<1x1x9x9x128xbf16>
    %48 = vector.shape_cast %47 : vector<1x1x9x9x128xbf16> to vector<9x9x128xbf16>
    %49 = vector.extract_strided_slice %48 {offsets = [1, 0, 0], sizes = [8, 8, 128], strides = [1, 1, 1]} : vector<9x9x128xbf16> to vector<8x8x128xbf16>
    %50 = vector.shape_cast %49 : vector<8x8x128xbf16> to vector<64x128xbf16>
    %c6 = arith.constant 6 : index
    %c0_52 = arith.constant 0 : index
    %c0_53 = arith.constant 0 : index
    %51 = vector.load %arg2[%c6, %c0_52, %c0_53] : memref<9x128x128xbf16, #tpu.memory_space<vmem>>, vector<1x128x128xbf16>
    %52 = vector.shape_cast %51 : vector<1x128x128xbf16> to vector<128x128xbf16>
    %cst_54 = arith.constant dense<0.000000e+00> : vector<64x128xf32>
    %53 = tpu.matmul %50, %52, %cst_54 {dimension_numbers = #tpu.dot_dimension_numbers<[1], [0], [0], [1], [0, 0, 1, 1], [], []>} : vector<64x128xbf16>, vector<128x128xbf16>, vector<64x128xf32> -> vector<64x128xf32>
    %54 = arith.addf %46, %53 : vector<64x128xf32>
    %c0_55 = arith.constant 0 : index
    %c1_56 = arith.constant 1 : index
    %c0_57 = arith.constant 0 : index
    %c0_58 = arith.constant 0 : index
    %c0_59 = arith.constant 0 : index
    %55 = vector.load %arg1[%c0_55, %c1_56, %c0_57, %c0_58, %c0_59] : memref<1x4x9x9x128xbf16, #tpu.memory_space<vmem>>, vector<1x1x9x9x128xbf16>
    %56 = vector.shape_cast %55 : vector<1x1x9x9x128xbf16> to vector<9x9x128xbf16>
    %57 = vector.extract_strided_slice %56 {offsets = [1, 0, 0], sizes = [8, 8, 128], strides = [1, 1, 1]} : vector<9x9x128xbf16> to vector<8x8x128xbf16>
    %58 = vector.shape_cast %57 : vector<8x8x128xbf16> to vector<64x128xbf16>
    %c7 = arith.constant 7 : index
    %c0_60 = arith.constant 0 : index
    %c0_61 = arith.constant 0 : index
    %59 = vector.load %arg2[%c7, %c0_60, %c0_61] : memref<9x128x128xbf16, #tpu.memory_space<vmem>>, vector<1x128x128xbf16>
    %60 = vector.shape_cast %59 : vector<1x128x128xbf16> to vector<128x128xbf16>
    %cst_62 = arith.constant dense<0.000000e+00> : vector<64x128xf32>
    %61 = tpu.matmul %58, %60, %cst_62 {dimension_numbers = #tpu.dot_dimension_numbers<[1], [0], [0], [1], [0, 0, 1, 1], [], []>} : vector<64x128xbf16>, vector<128x128xbf16>, vector<64x128xf32> -> vector<64x128xf32>
    %62 = arith.addf %54, %61 : vector<64x128xf32>
    %c0_63 = arith.constant 0 : index
    %c0_64 = arith.constant 0 : index
    %c0_65 = arith.constant 0 : index
    %c0_66 = arith.constant 0 : index
    %c0_67 = arith.constant 0 : index
    %63 = vector.load %arg1[%c0_63, %c0_64, %c0_65, %c0_66, %c0_67] : memref<1x4x9x9x128xbf16, #tpu.memory_space<vmem>>, vector<1x1x9x9x128xbf16>
    %64 = vector.shape_cast %63 : vector<1x1x9x9x128xbf16> to vector<9x9x128xbf16>
    %65 = vector.extract_strided_slice %64 {offsets = [1, 1, 0], sizes = [8, 8, 128], strides = [1, 1, 1]} : vector<9x9x128xbf16> to vector<8x8x128xbf16>
    %66 = vector.shape_cast %65 : vector<8x8x128xbf16> to vector<64x128xbf16>
    %c8 = arith.constant 8 : index
    %c0_68 = arith.constant 0 : index
    %c0_69 = arith.constant 0 : index
    %67 = vector.load %arg2[%c8, %c0_68, %c0_69] : memref<9x128x128xbf16, #tpu.memory_space<vmem>>, vector<1x128x128xbf16>
    %68 = vector.shape_cast %67 : vector<1x128x128xbf16> to vector<128x128xbf16>
    %cst_70 = arith.constant dense<0.000000e+00> : vector<64x128xf32>
    %69 = tpu.matmul %66, %68, %cst_70 {dimension_numbers = #tpu.dot_dimension_numbers<[1], [0], [0], [1], [0, 0, 1, 1], [], []>} : vector<64x128xbf16>, vector<128x128xbf16>, vector<64x128xf32> -> vector<64x128xf32>
    %70 = arith.addf %62, %69 : vector<64x128xf32>
    %c0_71 = arith.constant 0 : index
    %c0_72 = arith.constant 0 : index
    %71 = vector.load %arg3[%c0_71, %c0_72] : memref<1x128xf32, #tpu.memory_space<vmem>>, vector<1x128xf32>
    %72 = vector.broadcast %71 : vector<1x128xf32> to vector<64x128xf32>
    %73 = arith.mulf %70, %72 : vector<64x128xf32>
    %c0_73 = arith.constant 0 : index
    %c0_74 = arith.constant 0 : index
    %74 = vector.load %arg4[%c0_73, %c0_74] : memref<1x128xf32, #tpu.memory_space<vmem>>, vector<1x128xf32>
    %75 = vector.broadcast %74 : vector<1x128xf32> to vector<64x128xf32>
    %76 = arith.addf %73, %75 : vector<64x128xf32>
    %cst_75 = arith.constant 0.000000e+00 : f32
    %77 = vector.broadcast %cst_75 : f32 to vector<64x128xf32>
    %78 = arith.maximumf %76, %77 : vector<64x128xf32>
    %79 = arith.truncf %78 : vector<64x128xf32> to vector<64x128xbf16>
    %c0_76 = arith.constant 0 : index
    %c0_77 = arith.constant 0 : index
    %c0_78 = arith.constant 0 : index
    %80 = vector.load %arg5[%c0_76, %c0_77, %c0_78] : memref<1x64x128xbf16, #tpu.memory_space<vmem>>, vector<1x64x128xbf16>
    %81 = vector.shape_cast %80 : vector<1x64x128xbf16> to vector<64x128xbf16>
    %82 = vector.shape_cast %79 : vector<64x128xbf16> to vector<1x64x128xbf16>
    tpu.vector_store %arg5[%c0_76, %c0_77, %c0_78], %82 {strides = array<i32>} : memref<1x64x128xbf16, #tpu.memory_space<vmem>>, vector<1x64x128xbf16>,
    return
  }
  func.func @transform_0(%arg0: i32) -> (i32, i32, i32, i32, i32) {
    %c0_i32 = arith.constant 0 : i32
    %c0_i32_0 = arith.constant 0 : i32
    %c0_i32_1 = arith.constant 0 : i32
    %c0_i32_2 = arith.constant 0 : i32
    %c0_i32_3 = arith.constant 0 : i32
    return %arg0, %c0_i32, %c0_i32_0, %c0_i32_1, %c0_i32_2 : i32, i32, i32, i32, i32
  }
  func.func @transform_1(%arg0: i32) -> (i32, i32, i32) {
    %c0_i32 = arith.constant 0 : i32
    %c0_i32_0 = arith.constant 0 : i32
    %c0_i32_1 = arith.constant 0 : i32
    %c0_i32_2 = arith.constant 0 : i32
    return %c0_i32, %c0_i32_0, %c0_i32_1 : i32, i32, i32
  }
  func.func @transform_2(%arg0: i32) -> (i32, i32) {
    %c0_i32 = arith.constant 0 : i32
    %c0_i32_0 = arith.constant 0 : i32
    %c0_i32_1 = arith.constant 0 : i32
    return %c0_i32, %c0_i32_0 : i32, i32
  }
  func.func @transform_3(%arg0: i32) -> (i32, i32) {
    %c0_i32 = arith.constant 0 : i32
    %c0_i32_0 = arith.constant 0 : i32
    %c0_i32_1 = arith.constant 0 : i32
    return %c0_i32, %c0_i32_0 : i32, i32
  }
  func.func @transform_4(%arg0: i32) -> (i32, i32, i32) {
    %c0_i32 = arith.constant 0 : i32
    %c0_i32_0 = arith.constant 0 : i32
    %c0_i32_1 = arith.constant 0 : i32
    return %arg0, %c0_i32, %c0_i32_0 : i32, i32, i32
  }
}

module attributes {stable_mosaic.version = 11 : i64} {
  func.func @_conv_c_kernel(%arg0: i32, %arg1: i32, %arg2: memref<256x128xbf16, #tpu.memory_space<vmem>>, %arg3: memref<128x128xbf16, #tpu.memory_space<vmem>>, %arg4: memref<1x128xf32, #tpu.memory_space<vmem>>, %arg5: memref<1x128xf32, #tpu.memory_space<vmem>>, %arg6: memref<256x4xbf16, #tpu.memory_space<vmem>>, %arg7: memref<4x128xbf16, #tpu.memory_space<vmem>>, %arg8: memref<1x128xf32, #tpu.memory_space<vmem>>, %arg9: memref<1x128xf32, #tpu.memory_space<vmem>>, %arg10: memref<256x128xf32, #tpu.memory_space<vmem>>) attributes {dimension_semantics = [#tpu.dimension_semantics<parallel>, #tpu.dimension_semantics<parallel>], iteration_bounds = array<i64: 4, 1>, scalar_prefetch = 0 : i64, scratch_operands = 0 : i64, tpu.core_type = #tpu.core_type<tc>, window_params = [{transform_indices = @transform_0, window_bounds = array<i64: 256, 128>}, {transform_indices = @transform_1, window_bounds = array<i64: 128, 128>}, {transform_indices = @transform_2, window_bounds = array<i64: 1, 128>}, {transform_indices = @transform_3, window_bounds = array<i64: 1, 128>}, {transform_indices = @transform_4, window_bounds = array<i64: 256, 4>}, {transform_indices = @transform_5, window_bounds = array<i64: 4, 128>}, {transform_indices = @transform_6, window_bounds = array<i64: 1, 128>}, {transform_indices = @transform_7, window_bounds = array<i64: 1, 128>}, {transform_indices = @transform_8, window_bounds = array<i64: 256, 128>}]} {
    %c0 = arith.constant 0 : index
    %c0_0 = arith.constant 0 : index
    %0 = vector.load %arg2[%c0, %c0_0] : memref<256x128xbf16, #tpu.memory_space<vmem>>, vector<256x128xbf16>
    %c0_1 = arith.constant 0 : index
    %c0_2 = arith.constant 0 : index
    %1 = vector.load %arg3[%c0_1, %c0_2] : memref<128x128xbf16, #tpu.memory_space<vmem>>, vector<128x128xbf16>
    %cst = arith.constant dense<0.000000e+00> : vector<256x128xf32>
    %2 = tpu.matmul %0, %1, %cst {dimension_numbers = #tpu.dot_dimension_numbers<[1], [0], [0], [1], [0, 0, 1, 1], [], []>} : vector<256x128xbf16>, vector<128x128xbf16>, vector<256x128xf32> -> vector<256x128xf32>
    %c0_3 = arith.constant 0 : index
    %c0_4 = arith.constant 0 : index
    %3 = vector.load %arg6[%c0_3, %c0_4] : memref<256x4xbf16, #tpu.memory_space<vmem>>, vector<256x4xbf16>
    %c0_5 = arith.constant 0 : index
    %c0_6 = arith.constant 0 : index
    %4 = vector.load %arg7[%c0_5, %c0_6] : memref<4x128xbf16, #tpu.memory_space<vmem>>, vector<4x128xbf16>
    %cst_7 = arith.constant dense<0.000000e+00> : vector<256x128xf32>
    %5 = tpu.matmul %3, %4, %cst_7 {dimension_numbers = #tpu.dot_dimension_numbers<[1], [0], [0], [1], [0, 0, 1, 1], [], []>} : vector<256x4xbf16>, vector<4x128xbf16>, vector<256x128xf32> -> vector<256x128xf32>
    %c0_8 = arith.constant 0 : index
    %c0_9 = arith.constant 0 : index
    %6 = vector.load %arg4[%c0_8, %c0_9] : memref<1x128xf32, #tpu.memory_space<vmem>>, vector<1x128xf32>
    %7 = vector.broadcast %6 : vector<1x128xf32> to vector<256x128xf32>
    %8 = arith.mulf %2, %7 : vector<256x128xf32>
    %c0_10 = arith.constant 0 : index
    %c0_11 = arith.constant 0 : index
    %9 = vector.load %arg5[%c0_10, %c0_11] : memref<1x128xf32, #tpu.memory_space<vmem>>, vector<1x128xf32>
    %10 = vector.broadcast %9 : vector<1x128xf32> to vector<256x128xf32>
    %11 = arith.addf %8, %10 : vector<256x128xf32>
    %c0_12 = arith.constant 0 : index
    %c0_13 = arith.constant 0 : index
    %12 = vector.load %arg8[%c0_12, %c0_13] : memref<1x128xf32, #tpu.memory_space<vmem>>, vector<1x128xf32>
    %13 = vector.broadcast %12 : vector<1x128xf32> to vector<256x128xf32>
    %14 = arith.mulf %5, %13 : vector<256x128xf32>
    %c0_14 = arith.constant 0 : index
    %c0_15 = arith.constant 0 : index
    %15 = vector.load %arg9[%c0_14, %c0_15] : memref<1x128xf32, #tpu.memory_space<vmem>>, vector<1x128xf32>
    %16 = vector.broadcast %15 : vector<1x128xf32> to vector<256x128xf32>
    %17 = arith.addf %14, %16 : vector<256x128xf32>
    %18 = arith.addf %11, %17 : vector<256x128xf32>
    %cst_16 = arith.constant 0.000000e+00 : f32
    %19 = vector.broadcast %cst_16 : f32 to vector<256x128xf32>
    %20 = arith.maximumf %18, %19 : vector<256x128xf32>
    %c0_17 = arith.constant 0 : index
    %c0_18 = arith.constant 0 : index
    %21 = vector.load %arg10[%c0_17, %c0_18] : memref<256x128xf32, #tpu.memory_space<vmem>>, vector<256x128xf32>
    tpu.vector_store %arg10[%c0_17, %c0_18], %20 {strides = array<i32>} : memref<256x128xf32, #tpu.memory_space<vmem>>, vector<256x128xf32>,
    return
  }
  func.func @transform_0(%arg0: i32, %arg1: i32) -> (i32, i32) {
    %c0_i32 = arith.constant 0 : i32
    %c0_i32_0 = arith.constant 0 : i32
    return %arg0, %c0_i32 : i32, i32
  }
  func.func @transform_1(%arg0: i32, %arg1: i32) -> (i32, i32) {
    %c0_i32 = arith.constant 0 : i32
    %c0_i32_0 = arith.constant 0 : i32
    return %c0_i32, %arg1 : i32, i32
  }
  func.func @transform_2(%arg0: i32, %arg1: i32) -> (i32, i32) {
    %c0_i32 = arith.constant 0 : i32
    %c0_i32_0 = arith.constant 0 : i32
    return %c0_i32, %arg1 : i32, i32
  }
  func.func @transform_3(%arg0: i32, %arg1: i32) -> (i32, i32) {
    %c0_i32 = arith.constant 0 : i32
    %c0_i32_0 = arith.constant 0 : i32
    return %c0_i32, %arg1 : i32, i32
  }
  func.func @transform_4(%arg0: i32, %arg1: i32) -> (i32, i32) {
    %c0_i32 = arith.constant 0 : i32
    %c0_i32_0 = arith.constant 0 : i32
    return %arg0, %c0_i32 : i32, i32
  }
  func.func @transform_5(%arg0: i32, %arg1: i32) -> (i32, i32) {
    %c0_i32 = arith.constant 0 : i32
    %c0_i32_0 = arith.constant 0 : i32
    return %c0_i32, %arg1 : i32, i32
  }
  func.func @transform_6(%arg0: i32, %arg1: i32) -> (i32, i32) {
    %c0_i32 = arith.constant 0 : i32
    %c0_i32_0 = arith.constant 0 : i32
    return %c0_i32, %arg1 : i32, i32
  }
  func.func @transform_7(%arg0: i32, %arg1: i32) -> (i32, i32) {
    %c0_i32 = arith.constant 0 : i32
    %c0_i32_0 = arith.constant 0 : i32
    return %c0_i32, %arg1 : i32, i32
  }
  func.func @transform_8(%arg0: i32, %arg1: i32) -> (i32, i32) {
    %c0_i32 = arith.constant 0 : i32
    return %arg0, %arg1 : i32, i32
  }
}

</mosaic_0001>

<bundles_post_ra>
// kernel: bottleneck_transform.3
= control target key start
LH: loop header
LB: loop body
LE: loop exit
PB: predicated region body
PF: predicated region fallthrough
CT: control target
= control target key end

     0   :  { %s2387_s21 = smov 0   ;;  %s2389_s22 = smov 0   ;;  %s2749_s0 = inlined_call_operand.vmem [shape: bf16[2,10,256,4], index: 0, kind: input, shape index: {}, may-alias: {0,1,2}]   ;;  %s2750_s1 = inlined_call_operand.vmem [shape: bf16[2,10,256,4], index: 1, kind: input, shape index: {}, may-alias: {0,1,2}]   ;;  %s2751_s2 = inlined_call_operand.vmem [shape: bf16[2,10,256,4], index: 2, kind: input, shape index: {}, may-alias: {0,1,2}]   ;;  %s2752_s3 = inlined_call_operand.vmem [shape: bf16[3,4,128], index: 3, kind: input, shape index: {}]   ;;  %s2753_s4 = inlined_call_operand.vmem [shape: f32[1,128], index: 4, kind: input, shape index: {}]   ;;  %s2754_s5 = inlined_call_operand.vmem [shape: f32[1,128], index: 5, kind: input, shape index: {}]   ;;  %s2755_s6 = inlined_call_operand.vmem [shape: bf16[2,8,256,128], index: 6, kind: output, shape index: {}]  }
   0x1   :  { %s2391_s23 = smov 0   ;;  %s2393_s24 = smov 0  }
   0x2   :  { %s2395_s25 = smov 0  }
   0x3 LB: > { %s25_s26 = sadd.s32 1, %s2342_s23  ;;  %s28_s27 = sadd.s32 1, %s2346_s24  ;;  %s2350_s25 = sphi %s2395_s25, %s16_s25   ;;  %s2346_s24 = sphi %s2393_s24, %s2759_s24   ;;  %s2342_s23 = sphi %s2391_s23, %s2758_s23   ;;  %s2338_s22 = sphi %s2389_s22, %s2757_s22   ;;  %s2334_s21 = sphi %s2387_s21, %s2756_s21  }
   0x4   : > { %p26_p0 = scmp.ge.s32.totalorder %s25_s26, 8  ;;  %p1793_p1 = scmp.ge.s32.totalorder %s2350_s25, 1 }
   0x5   : > { %p272_p2 = scmp.lt.s32.totalorder %s2350_s25, 17 }
   0x6   : > { %s2761_s26 = smov (%p26_p0, %s25_s26), 0  ;;  %s2763_s27 = smov (!%p26_p0, %s28_s27), %s2346_s24 }
   0x7   : > { %p273_p3 = pnand %p1793_p1, %p272_p2  ;;  %p30_p4 = scmp.ge.s32.totalorder %s2763_s27, 2 }
   0x8   : > { %p330_p5 = scmp.lt.s32.totalorder (!%p273_p3), %s2338_s22, 1  ;;  %s339_s30 = sadd.s32 (!%p273_p3), 1, %s2334_s21 }
   0x9   : > { %s2765_s27 = smov (%p30_p4, %s2763_s27), 0  ;;  %276 = sbr.rel (%p273_p3) target bundleno = 323 (0x143), region = 44 }
   0xa   : > { %p342_p6 = scmp.lt.s32.totalorder (!%p273_p3), %s339_s30, 9  ;;  %s350_s13 = sadd.s32 (!%p273_p3), 2, %s2334_s21 }
   0xb   : > { %p332_p7 = scmp.lt.s32.totalorder (!%p273_p3), %s2334_s21, 9  ;;  %p353_p8 = scmp.lt.s32.totalorder (!%p273_p3), %s350_s13, 9 }
   0xc   : > { %p363_p9 = scmp.lt.s32.totalorder (!%p273_p3), %s2334_s21, 7 }
   0xe   : > { %v1803_v0 = vld [vmem:[%s2752_s3 + $0x2] sm:$0x3]  ;;  %vm567_vm0 = vcmask 1041408   ;;  %v403_v2 = vld [vmem:[%s2752_s3] sm:$0x3]  ;;  %s2767_s22 = smov (!%p330_p5, %s2338_s22), 1 }
   0xf   : > { %2220 = vmatprep.subr.msk.bf16.mxu1 %vm567_vm0, %v1803_v0  ;;  %2219 = vmatprep.subr.msk.bf16.mxu0 %vm567_vm0, %v1803_v0  ;;  %v569_v1 = vsel %vm567_vm0, %v1803_v0, 0  ;;  %v1868_v3 = vld [vmem:[%s2752_s3 + $0x4] sm:$0x3]  ;;  %s2769_s30 = smov (!%p342_p6, %s339_s30), 9  ;;  %s2437_s11 = smul.u32 320, %s2767_s22  ;;  %vm518_vm1 = vcmask 31744  }
  0x10   : > { %2218 = vmatpush3.bf16.msra.mxu1 %v569_v1  ;;  %2116 = vmatpush3.bf16.msra.mxu0 %v569_v1  ;;  %s1796_s12 = sshll.u32 %s2769_s30, 5  ;;  %v861_v5 = vsel %vm567_vm0, %v403_v2, 0  ;;  %v1187_v7 = vsel %vm567_vm0, %v1868_v3, 0  ;;  %s2771_s13 = smov (!%p353_p8, %s350_s13), 9 }
  0x11   : > { %2221 = vmatprep.subr.msk.bf16.mxu1 %vm567_vm0, %v403_v2  ;;  %2222 = vmatprep.subr.msk.bf16.mxu0 %vm567_vm0, %v1868_v3  ;;  %s346_s14 = sadd.s32 %s2437_s11, %s1796_s12  ;;  %s1798_s28 = sshll.u32 %s2771_s13, 5 }
  0x12   : > { %s1797_s15 = sshll.u32 %s346_s14, 2  ;;  %s357_s30 = sadd.s32 %s2437_s11, %s1798_s28 }
  0x13   : > { %s2445_s18 = scalar_lea.vmem %s2750_s1, %s1797_s15  ;;  %s1799_s8 = sshll.u32 %s357_s30, 2 }
  0x14   : > { %v2264_v4 = vld [vmem:[%s2445_s18] sm:$0xff]   ;;  %v2266_v8 = vld [vmem:[%s2445_s18 + $0x8] sm:$0xff]   ;;  %s333_s19 = scalar_select %p332_p7, %s2334_s21, 9  ;;  %v2268_v10 = vld [vmem:[%s2445_s18 + $0x10] sm:$0xff]  }
  0x15   : > { %v2265_v6 = vld [vmem:[%s2445_s18 + $0x40] sm:$0xff]   ;;  %2117 = vmatprep.mubr.msk.bf16.mxu0 %vm518_vm1, %v2264_v4  ;;  %v2267_v9 = vld [vmem:[%s2445_s18 + $0x48] sm:$0xff]   ;;  %v2269_v11 = vld [vmem:[%s2445_s18 + $0x50] sm:$0xff]   ;;  %s2482_s14 = scalar_lea.vmem %s2751_s2, %s1799_s8  ;;  %s2773_s21 = smov (!%p363_p9, %s2334_s21), 7 }
  0x16   : > { %2133 = vmatprep.mubr.msk.bf16.mxu1 %vm518_vm1, %v2265_v6  ;;  %2118 = vmatmul.mubr.msk.bf16.vlgmr.msra.gmra.mxu0 %vm518_vm1, %v2266_v8  ;;  %s1794_s20 = sshll.u32 %s333_s19, 5  ;;  %v2270_v12 = vld [vmem:[%s2445_s18 + $0x18] sm:$0xff]   ;;  %v2272_v14 = vld [vmem:[%s2445_s18 + $0x20] sm:$0xff]   ;;  %v2274_v16 = vld [vmem:[%s2445_s18 + $0x28] sm:$0xff]   ;;  %s1800_s19 = sshll.u32 %s2773_s21, 5 }
  0x17   : > { %2134 = vmatmul.mubr.msk.bf16.vlgmr.msra.gmra.mxu1 %vm518_vm1, %v2267_v9  ;;  %2184 = vmatpush3.bf16.msra.mxu0 %v1187_v7  ;;  %v2271_v13 = vld [vmem:[%s2445_s18 + $0x58] sm:$0xff]   ;;  %s336_s29 = sadd.s32 %s2437_s11, %s1794_s20  ;;  %v2273_v15 = vld [vmem:[%s2445_s18 + $0x60] sm:$0xff]   ;;  %v2275_v17 = vld [vmem:[%s2445_s18 + $0x68] sm:$0xff]   ;;  %s1801_s20 = sshll.u32 %s2767_s22, 8 }
  0x18   : > { %2150 = vmatpush3.bf16.msra.mxu1 %v861_v5  ;;  %2121 = vmatprep.mubr.msk.bf16.mxu0 %vm518_vm1, %v2268_v10  ;;  %s1795_s7 = sshll.u32 %s336_s29, 2  ;;  %v2276_v18 = vld [vmem:[%s2445_s18 + $0x30] sm:$0xff]   ;;  %v2278_v20 = vld [vmem:[%s2445_s18 + $0x38] sm:$0xff]   ;;  %v2281_v22 = vld [vmem:[%s2482_s14] sm:$0xff]   ;;  %s367_s28 = sadd.s32 %s1801_s20, %s1800_s19 }
  0x19   : > { %2137 = vmatprep.mubr.msk.bf16.mxu1 %vm518_vm1, %v2269_v11  ;;  %s2476_s12 = scalar_lea.vmem %s2749_s0, %s1795_s7  ;;  %v2277_v19 = vld [vmem:[%s2445_s18 + $0x70] sm:$0xff]   ;;  %v2279_v21 = vld [vmem:[%s2445_s18 + $0x78] sm:$0xff]   ;;  %v2283_v25 = vld [vmem:[%s2482_s14 + $0x8] sm:$0xff]   ;;  %s1802_s21 = sshll.u32 %s367_s28, 2 }
  0x1a   : > { %v2280_v23 = vld [vmem:[%s2476_s12] sm:$0xff]   ;;  %v2282_v24 = vld [vmem:[%s2476_s12 + $0x8] sm:$0xff]   ;;  %v2285_v26 = vld [vmem:[%s2482_s14 + $0x10] sm:$0xff]   ;;  %s2635_s30 = scalar_lea.vmem %s2755_s6, %s1802_s21 }
  0x1b   : > { %v2284_v27 = vld [vmem:[%s2476_s12 + $0x10] sm:$0xff]   ;;  %v2286_v28 = vld [vmem:[%s2476_s12 + $0x18] sm:$0xff]   ;;  %v2289_v30 = vld [vmem:[%s2482_s14 + $0x20] sm:$0xff]  }
  0x1c   : > { %v2287_v29 = vld [vmem:[%s2482_s14 + $0x18] sm:$0xff]   ;;  %v2288_v31 = vld [vmem:[%s2476_s12 + $0x20] sm:$0xff]   ;;  %v2291_v32 = vld [vmem:[%s2482_s14 + $0x28] sm:$0xff]  }
  0x1d   : > { %v2290_v33 = vld [vmem:[%s2476_s12 + $0x28] sm:$0xff]   ;;  %v2293_v34 = vld [vmem:[%s2482_s14 + $0x30] sm:$0xff]   ;;  %v2295_v36 = vld [vmem:[%s2482_s14 + $0x38] sm:$0xff]  }
  0x1e   : > { %2122 = vmatmul.mubr.msk.bf16.gmra.mxu0 %vm518_vm1, %v2270_v12  ;;  %v2292_v35 = vld [vmem:[%s2476_s12 + $0x30] sm:$0xff]   ;;  %v2294_v37 = vld [vmem:[%s2476_s12 + $0x38] sm:$0xff]   ;;  %v2297_v38 = vld [vmem:[%s2482_s14 + $0x40] sm:$0xff]  }
  0x1f   : > { %2138 = vmatmul.mubr.msk.bf16.gmra.mxu1 %vm518_vm1, %v2271_v13  ;;  %2125 = vmatprep.mubr.msk.bf16.mxu0 %vm518_vm1, %v2272_v14  ;;  %v2296_v39 = vld [vmem:[%s2476_s12 + $0x40] sm:$0xff]   ;;  %v2299_v40 = vld [vmem:[%s2482_s14 + $0x48] sm:$0xff]   ;;  %v2301_v42 = vld [vmem:[%s2482_s14 + $0x50] sm:$0xff]  }
  0x20   : > { %2141 = vmatprep.mubr.msk.bf16.mxu1 %vm518_vm1, %v2273_v15  ;;  %v2298_v41 = vld [vmem:[%s2476_s12 + $0x48] sm:$0xff]   ;;  %v2300_v43 = vld [vmem:[%s2476_s12 + $0x50] sm:$0xff]   ;;  %v2303_v44 = vld [vmem:[%s2482_s14 + $0x58] sm:$0xff]  }
  0x21   : > { %v2302_v45 = vld [vmem:[%s2476_s12 + $0x58] sm:$0xff]   ;;  %v2305_v46 = vld [vmem:[%s2482_s14 + $0x60] sm:$0xff]   ;;  %v2307_v48 = vld [vmem:[%s2482_s14 + $0x68] sm:$0xff]  }
  0x22   : > { %v2304_v47 = vld [vmem:[%s2476_s12 + $0x60] sm:$0xff]   ;;  %v2306_v49 = vld [vmem:[%s2476_s12 + $0x68] sm:$0xff]   ;;  %v2309_v50 = vld [vmem:[%s2482_s14 + $0x70] sm:$0xff]  }
  0x23   : > { %v2308_v51 = vld [vmem:[%s2476_s12 + $0x70] sm:$0xff]   ;;  %v2311_v52 = vld [vmem:[%s2482_s14 + $0x78] sm:$0xff]  }
  0x24   : > { %v2310_v53 = vld [vmem:[%s2476_s12 + $0x78] sm:$0xff]  }
  0x26   : > { %2126 = vmatmul.mubr.msk.bf16.gmra.mxu0 %vm518_vm1, %v2274_v16 }
  0x27   : > { %2142 = vmatmul.mubr.msk.bf16.gmra.mxu1 %vm518_vm1, %v2275_v17  ;;  %2129 = vmatprep.mubr.msk.bf16.mxu0 %vm518_vm1, %v2276_v18 }
  0x28   : > { %2145 = vmatprep.mubr.msk.bf16.mxu1 %vm518_vm1, %v2277_v19 }
  0x2e   : > { %2130 = vmatmul.mubr.msk.bf16.gmra.mxu0 %vm518_vm1, %v2278_v20 }
  0x2f   : > { %2146 = vmatmul.mubr.msk.bf16.gmra.mxu1 %vm518_vm1, %v2279_v21  ;;  %2185 = vmatprep.mubr.msk.bf16.mxu0 %vm518_vm1, %v2281_v22 }
  0x30   : > { %2151 = vmatprep.mubr.msk.bf16.mxu1 %vm518_vm1, %v2280_v23 }
  0x36   : > { %2186 = vmatmul.mubr.msk.bf16.vlgmr.msra.gmra.mxu0 %vm518_vm1, %v2283_v25 }
  0x37   : > { %2152 = vmatmul.mubr.msk.bf16.vlgmr.msra.gmra.mxu1 %vm518_vm1, %v2282_v24  ;;  %2189 = vmatprep.mubr.msk.bf16.mxu0 %vm518_vm1, %v2285_v26  ;;  %v2615_v26 = vld [vmem:[%s2753_s4] ss:$0 sm:$0xff] }
  0x38   : > { %2155 = vmatprep.mubr.msk.bf16.mxu1 %vm518_vm1, %v2284_v27 }
  0x3e   : > { %2190 = vmatmul.mubr.msk.bf16.gmra.mxu0 %vm518_vm1, %v2287_v29 }
  0x3f   : > { %2156 = vmatmul.mubr.msk.bf16.gmra.mxu1 %vm518_vm1, %v2286_v28  ;;  %2193 = vmatprep.mubr.msk.bf16.mxu0 %vm518_vm1, %v2289_v30 }
  0x40   : > { %2159 = vmatprep.mubr.msk.bf16.mxu1 %vm518_vm1, %v2288_v31 }
  0x46   : > { %2194 = vmatmul.mubr.msk.bf16.gmra.mxu0 %vm518_vm1, %v2291_v32 }
  0x47   : > { %2160 = vmatmul.mubr.msk.bf16.gmra.mxu1 %vm518_vm1, %v2290_v33  ;;  %2197 = vmatprep.mubr.msk.bf16.mxu0 %vm518_vm1, %v2293_v34  ;;  %v2621_v33 = vld [vmem:[%s2754_s5] ss:$0 sm:$0xff] }
  0x48   : > { %2163 = vmatprep.mubr.msk.bf16.mxu1 %vm518_vm1, %v2292_v35 }
  0x4e   : > { %2198 = vmatmul.mubr.msk.bf16.gmra.mxu0 %vm518_vm1, %v2295_v36 }
  0x4f   : > { %2164 = vmatmul.mubr.msk.bf16.gmra.mxu1 %vm518_vm1, %v2294_v37  ;;  %2201 = vmatprep.mubr.msk.bf16.mxu0 %vm518_vm1, %v2297_v38 }
  0x50   : > { %2167 = vmatprep.mubr.msk.bf16.mxu1 %vm518_vm1, %v2296_v39 }
  0x56   : > { %2202 = vmatmul.mubr.msk.bf16.gmra.mxu0 %vm518_vm1, %v2299_v40 }
  0x57   : > { %2168 = vmatmul.mubr.msk.bf16.gmra.mxu1 %vm518_vm1, %v2298_v41  ;;  %2205 = vmatprep.mubr.msk.bf16.mxu0 %vm518_vm1, %v2301_v42 }
  0x58   : > { %2171 = vmatprep.mubr.msk.bf16.mxu1 %vm518_vm1, %v2300_v43 }
  0x5e   : > { %2206 = vmatmul.mubr.msk.bf16.gmra.mxu0 %vm518_vm1, %v2303_v44 }
  0x5f   : > { %2172 = vmatmul.mubr.msk.bf16.gmra.mxu1 %vm518_vm1, %v2302_v45  ;;  %2209 = vmatprep.mubr.msk.bf16.mxu0 %vm518_vm1, %v2305_v46 }
  0x60   : > { %2175 = vmatprep.mubr.msk.bf16.mxu1 %vm518_vm1, %v2304_v47 }
  0x66   : > { %2210 = vmatmul.mubr.msk.bf16.gmra.mxu0 %vm518_vm1, %v2307_v48 }
  0x67   : > { %2176 = vmatmul.mubr.msk.bf16.gmra.mxu1 %vm518_vm1, %v2306_v49  ;;  %2213 = vmatprep.mubr.msk.bf16.mxu0 %vm518_vm1, %v2309_v50 }
  0x68   : > { %2179 = vmatprep.mubr.msk.bf16.mxu1 %vm518_vm1, %v2308_v51 }
  0x6e   : > { %2214 = vmatmul.mubr.msk.bf16.gmra.mxu0 %vm518_vm1, %v2311_v52 }
  0x6f   : > { %2180 = vmatmul.mubr.msk.bf16.gmra.mxu1 %vm518_vm1, %v2310_v53 }
  0xd6   : > { %v2119_v54 = vpop.f32.mrf.mxu0 }
  0xd7   : > { %v2558_v55 = vpop.f32.mrf.mxu1 }
  0xd8   : > { %v605_v56 = vpop.f32.mrf.mxu0 }
  0xd9   : > { %v2560_v57 = vpop.f32.mrf.mxu1 }
  0xda   : > { %v2120_v58 = vpop.f32.mrf.mxu0 }
  0xdb   : > { %v2562_v59 = vpop.f32.mrf.mxu1 }
  0xdc   : > { %v608_v60 = vpop.f32.mrf.mxu0 }
  0xdd   : > { %v2564_v61 = vpop.f32.mrf.mxu1 }
  0xde   : > { %v2123_v62 = vpop.f32.mrf.mxu0 }
  0xdf   : > { %v2566_v63 = vpop.f32.mrf.mxu1 }
  0xe0   : > { %v621_v0 = vpop.f32.mrf.mxu0 }
  0xe1   : > { %v2568_v1 = vpop.f32.mrf.mxu1 }
  0xe2   : > { %v2570_v2 = vpop.f32.mrf.mxu0 }
  0xe3   : > { %v2572_v3 = vpop.f32.mrf.mxu1 }
  0xe4   : > { %v2574_v4 = vpop.f32.mrf.mxu0 }
  0xe5   : > { %v2576_v5 = vpop.f32.mrf.mxu1 }
  0xe6   : > { %v2578_v6 = vpop.f32.mrf.mxu0 }
  0xe7   : > { %v2580_v7 = vpop.f32.mrf.mxu1 }
  0xe8   : > { %v2582_v8 = vpop.f32.mrf.mxu0 }
  0xe9   : > { %v2584_v9 = vpop.f32.mrf.mxu1 }
  0xea   : > { %v2586_v10 = vpop.f32.mrf.mxu0 }
  0xeb   : > { %v2588_v11 = vpop.f32.mrf.mxu1 }
  0xec   : > { %v2590_v12 = vpop.f32.mrf.mxu0 }
  0xed   : > { %v2592_v13 = vpop.f32.mrf.mxu1 }
  0xee   : > { %v2594_v14 = vpop.f32.mrf.mxu0 }
  0xef   : > { %v2596_v15 = vpop.f32.mrf.mxu1 }
  0xf0   : > { %v2598_v16 = vpop.f32.mrf.mxu0 }
  0xf1   : > { %v2600_v17 = vpop.f32.mrf.mxu1 }
  0xf2   : > { %v2602_v18 = vpop.f32.mrf.mxu0 }
  0xf3   : > { %v2604_v19 = vpop.f32.mrf.mxu1 }
  0xf4   : > { %v2606_v20 = vpop.f32.mrf.mxu0 }
  0xf5   : > { %v2609_v21 = vpop.f32.mrf.mxu1 }
  0xf6   : > { %v2187_v22 = vpop.f32.mrf.mxu0 }
  0xf7   : > { %v2153_v23 = vpop.f32.mrf.mxu1 }
  0xf8   : > { %v906_v24 = vadd.f32 %v2153_v23, %v2119_v54  ;;  %v1223_v25 = vpop.f32.mrf.mxu0 }
  0xf9   : > { %v897_v27 = vpop.f32.mrf.mxu1 }
  0xfa   : > { %v1352_v28 = vadd.f32 %v2187_v22, %v906_v24  ;;  %v898_v29 = vadd.f32 %v897_v27, %v605_v56  ;;  %v2188_v30 = vpop.f32.mrf.mxu0 }
  0xfb   : > { %v2154_v31 = vpop.f32.mrf.mxu1 }
  0xfc   : > { %v1391_v32 = vmul.f32 %v2615_v26, %v1352_v28  ;;  %v1350_v34 = vadd.f32 %v1223_v25, %v898_v29  ;;  %v909_v35 = vadd.f32 %v2154_v31, %v2120_v58  ;;  %v1226_v36 = vpop.f32.mrf.mxu0 }
  0xfd   : > { %v900_v37 = vpop.f32.mrf.mxu1 }
  0xfe   : > { %v1389_v38 = vmul.f32 %v2615_v26, %v1350_v34  ;;  %v1353_v39 = vadd.f32 %v2188_v30, %v909_v35  ;;  %v901_v40 = vadd.f32 %v900_v37, %v608_v60  ;;  %v2191_v41 = vpop.f32.mrf.mxu0  ;;  %v1430_v42 = vadd.f32 %v2621_v33, %v1391_v32 }
  0xff   : > { %v2157_v43 = vpop.f32.mrf.mxu1 }
 0x100   : > { %v1392_v44 = vmul.f32 %v2615_v26, %v1353_v39  ;;  %v1351_v45 = vadd.f32 %v1226_v36, %v901_v40  ;;  %v1239_v46 = vpop.f32.mrf.mxu0  ;;  %v1428_v47 = vadd.f32 %v2621_v33, %v1389_v38  ;;  %v922_v48 = vadd.f32 %v2157_v43, %v2123_v62 }
 0x101   : > { %v913_v49 = vpop.f32.mrf.mxu1  ;;  %v1462_v54 = vmax.f32 %v1430_v42, 0.0 }
 0x102   : > { %v1431_v50 = vadd.f32 %v2621_v33, %v1392_v44  ;;  %v1390_v51 = vmul.f32 %v2615_v26, %v1351_v45  ;;  %v914_v52 = vadd.f32 %v913_v49, %v621_v0  ;;  %v2192_v53 = vpop.f32.mrf.mxu0  ;;  %v1356_v56 = vadd.f32 %v2191_v41, %v922_v48 }
 0x103   : > { %v2158_v58 = vpop.f32.mrf.mxu1  ;;  %v1460_v27 = vmax.f32 %v1428_v47, 0.0 }
 0x104   : > { %v1463_v60 = vmax.f32 %v1431_v50, 0.0  ;;  %v1429_v22 = vadd.f32 %v2621_v33, %v1390_v51  ;;  %v1354_v23 = vadd.f32 %v1239_v46, %v914_v52  ;;  %v925_v24 = vadd.f32 %v2158_v58, %v2570_v2  ;;  %v1242_v25 = vpop.f32.mrf.mxu0 }
 0x105   : > { %v1395_v62 = vmul.f32 %v2615_v26, %v1356_v56  ;;  %v916_v0 = vpop.f32.mrf.mxu1 }
 0x106   : > { %v1977_v28 = vpack.c.bf16 %v1463_v60, %v1462_v54  ;;  %v1461_v29 = vmax.f32 %v1429_v22, 0.0  ;;  %v1393_v30 = vmul.f32 %v2615_v26, %v1354_v23  ;;  %v1357_v31 = vadd.f32 %v2192_v53, %v925_v24  ;;  %v2195_v32 = vpop.f32.mrf.mxu0 }
 0x107   : > { %v1434_v2 = vadd.f32 %v2621_v33, %v1395_v62  ;;  %v917_v34 = vadd.f32 %v916_v0, %v2574_v4  ;;  %v2161_v35 = vpop.f32.mrf.mxu1 }
 0x108   : > { %2049 = vst [vmem:[%s2635_s30 + $0x8] sm:$0xff] %v1977_v28   ;;  %v1972_v36 = vpack.c.bf16 %v1461_v29, %v1460_v27  ;;  %v1396_v37 = vmul.f32 %v2615_v26, %v1357_v31  ;;  %v938_v38 = vadd.f32 %v2161_v35, %v2578_v6  ;;  %v1255_v39 = vpop.f32.mrf.mxu0  ;;  %v1432_v42 = vadd.f32 %v2621_v33, %v1393_v30 }
 0x109   : > { %v1355_v40 = vadd.f32 %v1242_v25, %v917_v34  ;;  %v929_v41 = vpop.f32.mrf.mxu1  ;;  %v1466_v4 = vmax.f32 %v1434_v2, 0.0 }
 0x10a   : > { %1973 = vst [vmem:[%s2635_s30] sm:$0xff] %v1972_v36   ;;  %v1435_v43 = vadd.f32 %v2621_v33, %v1396_v37  ;;  %v1360_v44 = vadd.f32 %v2195_v32, %v938_v38  ;;  %v930_v45 = vadd.f32 %v929_v41, %v2582_v8  ;;  %v2196_v46 = vpop.f32.mrf.mxu0  ;;  %v1464_v56 = vmax.f32 %v1432_v42, 0.0 }
 0x10b   : > { %v1394_v47 = vmul.f32 %v2615_v26, %v1355_v40  ;;  %v2162_v48 = vpop.f32.mrf.mxu1 }
 0x10c   : > { %v1467_v49 = vmax.f32 %v1435_v43, 0.0  ;;  %v1399_v6 = vmul.f32 %v2615_v26, %v1360_v44  ;;  %v1358_v50 = vadd.f32 %v1255_v39, %v930_v45  ;;  %v941_v51 = vadd.f32 %v2162_v48, %v2586_v10  ;;  %v1258_v52 = vpop.f32.mrf.mxu0 }
 0x10d   : > { %v1433_v53 = vadd.f32 %v2621_v33, %v1394_v47  ;;  %v932_v54 = vpop.f32.mrf.mxu1 }
 0x10e   : > { %v1987_v58 = vpack.c.bf16 %v1467_v49, %v1466_v4  ;;  %v1361_v60 = vadd.f32 %v2196_v46, %v941_v51  ;;  %v2199_v8 = vpop.f32.mrf.mxu0  ;;  %v1438_v23 = vadd.f32 %v2621_v33, %v1399_v6  ;;  %v1397_v24 = vmul.f32 %v2615_v26, %v1358_v50 }
 0x10f   : > { %v1465_v22 = vmax.f32 %v1433_v53, 0.0  ;;  %v933_v25 = vadd.f32 %v932_v54, %v2590_v12  ;;  %v2165_v27 = vpop.f32.mrf.mxu1 }
 0x110   : > { %2051 = vst [vmem:[%s2635_s30 + $0x18] sm:$0xff] %v1987_v58   ;;  %v1400_v10 = vmul.f32 %v2615_v26, %v1361_v60  ;;  %v954_v62 = vadd.f32 %v2165_v27, %v2594_v14  ;;  %v1271_v0 = vpop.f32.mrf.mxu0  ;;  %v1470_v35 = vmax.f32 %v1438_v23, 0.0  ;;  %v1436_v12 = vadd.f32 %v2621_v33, %v1397_v24 }
 0x111   : > { %v1982_v28 = vpack.c.bf16 %v1465_v22, %v1464_v56  ;;  %v1359_v29 = vadd.f32 %v1258_v52, %v933_v25  ;;  %v945_v30 = vpop.f32.mrf.mxu1 }
 0x112   : > { %v1439_v31 = vadd.f32 %v2621_v33, %v1400_v10  ;;  %v1364_v32 = vadd.f32 %v2199_v8, %v954_v62  ;;  %v946_v2 = vadd.f32 %v945_v30, %v2598_v16  ;;  %v2200_v34 = vpop.f32.mrf.mxu0  ;;  %v1468_v4 = vmax.f32 %v1436_v12, 0.0 }
 0x113   : > { %2050 = vst [vmem:[%s2635_s30 + $0x10] sm:$0xff] %v1982_v28   ;;  %v1398_v36 = vmul.f32 %v2615_v26, %v1359_v29  ;;  %v2166_v37 = vpop.f32.mrf.mxu1 }
 0x114   : > { %v1471_v38 = vmax.f32 %v1439_v31, 0.0  ;;  %v1403_v14 = vmul.f32 %v2615_v26, %v1364_v32  ;;  %v1362_v39 = vadd.f32 %v1271_v0, %v946_v2  ;;  %v957_v40 = vadd.f32 %v2166_v37, %v2602_v18  ;;  %v1274_v41 = vpop.f32.mrf.mxu0 }
 0x115   : > { %v1437_v42 = vadd.f32 %v2621_v33, %v1398_v36  ;;  %v948_v43 = vpop.f32.mrf.mxu1 }
 0x116   : > { %v1997_v16 = vpack.c.bf16 %v1471_v38, %v1470_v35  ;;  %v1401_v44 = vmul.f32 %v2615_v26, %v1362_v39  ;;  %v1365_v45 = vadd.f32 %v2200_v34, %v957_v40  ;;  %v2203_v46 = vpop.f32.mrf.mxu0  ;;  %v1442_v48 = vadd.f32 %v2621_v33, %v1403_v14 }
 0x117   : > { %v1469_v47 = vmax.f32 %v1437_v42, 0.0  ;;  %v949_v49 = vadd.f32 %v948_v43, %v2606_v20  ;;  %v2169_v6 = vpop.f32.mrf.mxu1 }
 0x118   : > { %2053 = vst [vmem:[%s2635_s30 + $0x28] sm:$0xff] %v1997_v16   ;;  %v1404_v18 = vmul.f32 %v2615_v26, %v1365_v45  ;;  %v970_v50 = vadd.f32 %v2169_v6, %v2558_v55  ;;  %v1287_v51 = vpop.f32.mrf.mxu0  ;;  %v1440_v56 = vadd.f32 %v2621_v33, %v1401_v44  ;;  %v1474_v20 = vmax.f32 %v1442_v48, 0.0 }
 0x119   : > { %v1992_v52 = vpack.c.bf16 %v1469_v47, %v1468_v4  ;;  %v1363_v53 = vadd.f32 %v1274_v41, %v949_v49  ;;  %v961_v54 = vpop.f32.mrf.mxu1 }
 0x11a   : > { %v1443_v58 = vadd.f32 %v2621_v33, %v1404_v18  ;;  %v1368_v60 = vadd.f32 %v2203_v46, %v970_v50  ;;  %v962_v8 = vadd.f32 %v961_v54, %v2560_v57  ;;  %v2204_v22 = vpop.f32.mrf.mxu0  ;;  %v1472_v29 = vmax.f32 %v1440_v56, 0.0 }
 0x11b   : > { %2052 = vst [vmem:[%s2635_s30 + $0x20] sm:$0xff] %v1992_v52   ;;  %v1402_v23 = vmul.f32 %v2615_v26, %v1363_v53  ;;  %v2170_v24 = vpop.f32.mrf.mxu1 }
 0x11c   : > { %v1475_v25 = vmax.f32 %v1443_v58, 0.0  ;;  %v1407_v55 = vmul.f32 %v2615_v26, %v1368_v60  ;;  %v1366_v27 = vadd.f32 %v1287_v51, %v962_v8  ;;  %v973_v10 = vadd.f32 %v2170_v24, %v2562_v59  ;;  %v1290_v62 = vpop.f32.mrf.mxu0 }
 0x11d   : > { %v1441_v0 = vadd.f32 %v2621_v33, %v1402_v23  ;;  %v964_v28 = vpop.f32.mrf.mxu1 }
 0x11e   : > { %v2007_v30 = vpack.c.bf16 %v1475_v25, %v1474_v20  ;;  %v1369_v57 = vadd.f32 %v2204_v22, %v973_v10  ;;  %v2207_v31 = vpop.f32.mrf.mxu0  ;;  %v1446_v2 = vadd.f32 %v2621_v33, %v1407_v55  ;;  %v1405_v34 = vmul.f32 %v2615_v26, %v1366_v27 }
 0x11f   : > { %v1473_v32 = vmax.f32 %v1441_v0, 0.0  ;;  %v965_v35 = vadd.f32 %v964_v28, %v2564_v61  ;;  %v2173_v12 = vpop.f32.mrf.mxu1 }
 0x120   : > { %2055 = vst [vmem:[%s2635_s30 + $0x38] sm:$0xff] %v2007_v30   ;;  %v1408_v59 = vmul.f32 %v2615_v26, %v1369_v57  ;;  %v986_v36 = vadd.f32 %v2173_v12, %v2566_v63  ;;  %v1303_v37 = vpop.f32.mrf.mxu0  ;;  %v1478_v16 = vmax.f32 %v1446_v2, 0.0  ;;  %v1444_v61 = vadd.f32 %v2621_v33, %v1405_v34 }
 0x121   : > { %v2002_v38 = vpack.c.bf16 %v1473_v32, %v1472_v29  ;;  %v1367_v14 = vadd.f32 %v1290_v62, %v965_v35  ;;  %v977_v39 = vpop.f32.mrf.mxu1 }
 0x122   : > { %v1447_v40 = vadd.f32 %v2621_v33, %v1408_v59  ;;  %v1372_v41 = vadd.f32 %v2207_v31, %v986_v36  ;;  %v978_v42 = vadd.f32 %v977_v39, %v2568_v1  ;;  %v2208_v43 = vpop.f32.mrf.mxu0  ;;  %v1476_v52 = vmax.f32 %v1444_v61, 0.0 }
 0x123   : > { %2054 = vst [vmem:[%s2635_s30 + $0x30] sm:$0xff] %v2002_v38   ;;  %v1406_v44 = vmul.f32 %v2615_v26, %v1367_v14  ;;  %v2174_v45 = vpop.f32.mrf.mxu1 }
 0x124   : > { %v1479_v46 = vmax.f32 %v1447_v40, 0.0  ;;  %v1411_v63 = vmul.f32 %v2615_v26, %v1372_v41  ;;  %v1370_v4 = vadd.f32 %v1303_v37, %v978_v42  ;;  %v989_v47 = vadd.f32 %v2174_v45, %v2572_v3  ;;  %v1306_v48 = vpop.f32.mrf.mxu0 }
 0x125   : > { %v1445_v49 = vadd.f32 %v2621_v33, %v1406_v44  ;;  %v980_v6 = vpop.f32.mrf.mxu1 }
 0x126   : > { %v2017_v1 = vpack.c.bf16 %v1479_v46, %v1478_v16  ;;  %v1409_v18 = vmul.f32 %v2615_v26, %v1370_v4  ;;  %v1373_v50 = vadd.f32 %v2208_v43, %v989_v47  ;;  %v2211_v51 = vpop.f32.mrf.mxu0  ;;  %v1450_v54 = vadd.f32 %v2621_v33, %v1411_v63 }
 0x127   : > { %v1477_v53 = vmax.f32 %v1445_v49, 0.0  ;;  %v981_v56 = vadd.f32 %v980_v6, %v2576_v5  ;;  %v2177_v58 = vpop.f32.mrf.mxu1 }
 0x128   : > { %2057 = vst [vmem:[%s2635_s30 + $0x48] sm:$0xff] %v2017_v1   ;;  %v1412_v3 = vmul.f32 %v2615_v26, %v1373_v50  ;;  %v1002_v60 = vadd.f32 %v2177_v58, %v2580_v7  ;;  %v1319_v8 = vpop.f32.mrf.mxu0  ;;  %v1448_v24 = vadd.f32 %v2621_v33, %v1409_v18  ;;  %v1482_v5 = vmax.f32 %v1450_v54, 0.0 }
 0x129   : > { %v2012_v22 = vpack.c.bf16 %v1477_v53, %v1476_v52  ;;  %v1371_v20 = vadd.f32 %v1306_v48, %v981_v56  ;;  %v993_v23 = vpop.f32.mrf.mxu1 }
 0x12a   : > { %v1451_v25 = vadd.f32 %v2621_v33, %v1412_v3  ;;  %v1376_v55 = vadd.f32 %v2211_v51, %v1002_v60  ;;  %v994_v27 = vadd.f32 %v993_v23, %v2584_v9  ;;  %v2212_v10 = vpop.f32.mrf.mxu0  ;;  %v1480_v2 = vmax.f32 %v1448_v24, 0.0 }
 0x12b   : > { %2056 = vst [vmem:[%s2635_s30 + $0x40] sm:$0xff] %v2012_v22   ;;  %v1410_v62 = vmul.f32 %v2615_v26, %v1371_v20  ;;  %v2178_v0 = vpop.f32.mrf.mxu1 }
 0x12c   : > { %v1483_v28 = vmax.f32 %v1451_v25, 0.0  ;;  %v1415_v7 = vmul.f32 %v2615_v26, %v1376_v55  ;;  %v1374_v29 = vadd.f32 %v1319_v8, %v994_v27  ;;  %v1005_v30 = vadd.f32 %v2178_v0, %v2588_v11  ;;  %v1322_v57 = vpop.f32.mrf.mxu0 }
 0x12d   : > { %v1449_v31 = vadd.f32 %v2621_v33, %v1410_v62  ;;  %v996_v32 = vpop.f32.mrf.mxu1 }
 0x12e   : > { %v2027_v34 = vpack.c.bf16 %v1483_v28, %v1482_v5  ;;  %v1377_v9 = vadd.f32 %v2212_v10, %v1005_v30  ;;  %v2215_v35 = vpop.f32.mrf.mxu0  ;;  %v1454_v59 = vadd.f32 %v2621_v33, %v1415_v7  ;;  %v1413_v36 = vmul.f32 %v2615_v26, %v1374_v29 }
 0x12f   : > { %v1481_v12 = vmax.f32 %v1449_v31, 0.0  ;;  %v997_v37 = vadd.f32 %v996_v32, %v2592_v13  ;;  %v2181_v38 = vpop.f32.mrf.mxu1 }
 0x130   : > { %2059 = vst [vmem:[%s2635_s30 + $0x58] sm:$0xff] %v2027_v34   ;;  %v1416_v11 = vmul.f32 %v2615_v26, %v1377_v9  ;;  %v1018_v14 = vadd.f32 %v2181_v38, %v2596_v15  ;;  %v1335_v39 = vpop.f32.mrf.mxu0  ;;  %v1486_v44 = vmax.f32 %v1454_v59, 0.0  ;;  %v1452_v45 = vadd.f32 %v2621_v33, %v1413_v36 }
 0x131   : > { %v2022_v40 = vpack.c.bf16 %v1481_v12, %v1480_v2  ;;  %v1375_v41 = vadd.f32 %v1322_v57, %v997_v37  ;;  %v1009_v42 = vpop.f32.mrf.mxu1 }
 0x132   : > { %v1455_v43 = vadd.f32 %v2621_v33, %v1416_v11  ;;  %v1380_v16 = vadd.f32 %v2215_v35, %v1018_v14  ;;  %v1010_v61 = vadd.f32 %v1009_v42, %v2600_v17  ;;  %v2216_v48 = vpop.f32.mrf.mxu0  ;;  %v1484_v18 = vmax.f32 %v1452_v45, 0.0 }
 0x133   : > { %2058 = vst [vmem:[%s2635_s30 + $0x50] sm:$0xff] %v2022_v40   ;;  %v1414_v13 = vmul.f32 %v2615_v26, %v1375_v41  ;;  %v2182_v46 = vpop.f32.mrf.mxu1 }
 0x134   : > { %v1487_v63 = vmax.f32 %v1455_v43, 0.0  ;;  %v1419_v15 = vmul.f32 %v2615_v26, %v1380_v16  ;;  %v1378_v4 = vadd.f32 %v1335_v39, %v1010_v61  ;;  %v1021_v47 = vadd.f32 %v2182_v46, %v2604_v19  ;;  %v1338_v19 = vpop.f32.mrf.mxu0 }
 0x135   : > { %v1453_v49 = vadd.f32 %v2621_v33, %v1414_v13  ;;  %v1012_v6 = vpop.f32.mrf.mxu1 }
 0x136   : > { %v2037_v17 = vpack.c.bf16 %v1487_v63, %v1486_v44  ;;  %v1381_v1 = vadd.f32 %v2216_v48, %v1021_v47  ;;  %v1417_v51 = vmul.f32 %v2615_v26, %v1378_v4  ;;  %v1013_v52 = vadd.f32 %v1012_v6, %v2609_v21 }
 0x137   : > { %v1485_v50 = vmax.f32 %v1453_v49, 0.0  ;;  %v1458_v53 = vadd.f32 %v2621_v33, %v1419_v15 }
 0x138   : > { %2061 = vst [vmem:[%s2635_s30 + $0x68] sm:$0xff] %v2037_v17   ;;  %v1420_v54 = vmul.f32 %v2615_v26, %v1381_v1  ;;  %v1379_v58 = vadd.f32 %v1338_v19, %v1013_v52  ;;  %v1456_v60 = vadd.f32 %v2621_v33, %v1417_v51 }
 0x139   : > { %v2032_v56 = vpack.c.bf16 %v1485_v50, %v1484_v18  ;;  %v1490_v22 = vmax.f32 %v1458_v53, 0.0 }
 0x13a   : > { %v1459_v3 = vadd.f32 %v2621_v33, %v1420_v54  ;;  %v1418_v8 = vmul.f32 %v2615_v26, %v1379_v58  ;;  %v1488_v24 = vmax.f32 %v1456_v60, 0.0 }
 0x13b   : > { %2060 = vst [vmem:[%s2635_s30 + $0x60] sm:$0xff] %v2032_v56  }
 0x13c   : > { %v1491_v20 = vmax.f32 %v1459_v3, 0.0  ;;  %v1457_v21 = vadd.f32 %v2621_v33, %v1418_v8 }
 0x13e   : > { %v2047_v23 = vpack.c.bf16 %v1491_v20, %v1490_v22  ;;  %v1489_v25 = vmax.f32 %v1457_v21, 0.0 }
 0x140   : > { %2063 = vst [vmem:[%s2635_s30 + $0x78] sm:$0xff] %v2047_v23   ;;  %v2042_v55 = vpack.c.bf16 %v1489_v25, %v1488_v24 }
 0x142   : > { %2062 = vst [vmem:[%s2635_s30 + $0x70] sm:$0xff] %v2042_v55  }
 0x143 PF: > { %s16_s25 = sadd.s32 1, %s2350_s25   ;;  %s2756_s21 = smov %s2342_s23 }
 0x144   : > { %p13_p10 = scmp.ge.s32.totalorder %s16_s25, 18   ;;  %s2757_s22 = smov %s2346_s24 }
 0x145   : > { %s2758_s23 = smov %s2761_s26  ;;  %s2759_s24 = smov %s2765_s27 }
 0x146   :  { %15 = sbr.rel (!%p13_p10) target bundleno = 3 (0x3), region = 82 }

// kernel: bottleneck_transform.4
= control target key start
LH: loop header
LB: loop body
LE: loop exit
PB: predicated region body
PF: predicated region fallthrough
CT: control target
= control target key end

     0   :  { %s2808_s15 = smov 0   ;;  %s3326_s0 = inlined_call_operand.vmem [shape: bf16[16,4,9,9,128], index: 0, kind: input, shape index: {}]   ;;  %s3327_s1 = inlined_call_operand.vmem [shape: bf16[9,128,128], index: 1, kind: input, shape index: {}]   ;;  %s3328_s2 = inlined_call_operand.vmem [shape: f32[1,128], index: 2, kind: input, shape index: {}]   ;;  %s3329_s3 = inlined_call_operand.vmem [shape: f32[1,128], index: 3, kind: input, shape index: {}]   ;;  %s3330_s4 = inlined_call_operand.vmem [shape: bf16[16,64,128], index: 4, kind: output, shape index: {}]  }
   0x1 LB: > { %s2009_s16 = sadd.s32 4294967295, %s2781_s15   ;;  %p2013_p0 = scmp.ge.s32.totalorder %s2781_s15, 1  ;;  %s2781_s15 = sphi %s2808_s15, %s14_s15  }
   0x2   : > { %p162_p1 = scmp.lt.s32.totalorder %s2781_s15, 17 }
   0x4   : > { %p163_p2 = pnand %p2013_p0, %p162_p1 }
   0x6   : > { %166 = sbr.rel (%p163_p2) target bundleno = 383 (0x17f), region = 36 }
   0xb   : > { %v2679_v0 = vld [vmem:[%s3327_s1 + $0x78] sm:$0xff]   ;;  %p188_p3 = scmp.lt.s32.totalorder %s2009_s16, 15  ;;  %v2681_v2 = vld [vmem:[%s3327_s1 + $0x70] sm:$0xff]   ;;  %v2683_v4 = vld [vmem:[%s3327_s1 + $0x68] sm:$0xff]   ;;  %vm534_vm0 = vsmask.f32 3328 }
   0xc   : > { %v2680_v1 = vld [vmem:[%s3327_s1 + $0x38] sm:$0xff]   ;;  %2438 = vmatprep.subr.bf16.mxu0 %v2679_v0  ;;  %v2682_v3 = vld [vmem:[%s3327_s1 + $0x30] sm:$0xff]   ;;  %v2684_v5 = vld [vmem:[%s3327_s1 + $0x28] sm:$0xff]   ;;  %vm535_vm1 = vsmask.f32 7440 }
   0xd   : > { %2462 = vmatprep.subr.bf16.mxu1 %v2680_v1  ;;  %2439 = vmatpush3.bf16.msra.mxu0 %v2679_v0  ;;  %s3342_s16 = smov (!%p188_p3, %s2009_s16), 15  ;;  %v2685_v6 = vld [vmem:[%s3327_s1 + $0x60] sm:$0xff]   ;;  %v2687_v8 = vld [vmem:[%s3327_s1 + $0x58] sm:$0xff]   ;;  %v2689_v10 = vld [vmem:[%s3327_s1 + $0x50] sm:$0xff]  }
   0xe   : > { %2463 = vmatpush3.bf16.msra.mxu1 %v2680_v1  ;;  %2440 = vmatprep.subr.bf16.mxu0 %v2681_v2  ;;  %v2686_v7 = vld [vmem:[%s3327_s1 + $0x20] sm:$0xff]   ;;  %s2670_s7 = smul.u32 288, %s3342_s16  ;;  %v2688_v9 = vld [vmem:[%s3327_s1 + $0x18] sm:$0xff]   ;;  %v2690_v14 = vld [vmem:[%s3327_s1 + $0x10] sm:$0xff]   ;;  %s2298_s29 = sshll.u32 %s3342_s16, 5 }
   0xf   : > { %2464 = vmatprep.subr.bf16.mxu1 %v2682_v3  ;;  %v2691_v20 = vld [vmem:[%s3327_s1 + $0x48] sm:$0xff]   ;;  %v2693_v24 = vld [vmem:[%s3327_s1 + $0x40] sm:$0xff]   ;;  %v2700_v31 = vld [vmem:[%s3327_s1 + $0xb8] sm:$0xff]   ;;  %s197_s6 = scalar_lea.vmem %s3330_s4, %s2298_s29 }
  0x10   : > { %s2852_s14 = scalar_lea.vmem %s3326_s0, %s2670_s7  ;;  %v2692_v21 = vld [vmem:[%s3327_s1 + $0x8] sm:$0xff]   ;;  %v2694_v25 = vld [vmem:[%s3327_s1] sm:$0xff]   ;;  %v2701_v35 = vld [vmem:[%s3327_s1 + $0xf8] sm:$0xff]  }
  0x11   : > { %2441 = vmatpush3.bf16.msra.mxu0 %v2681_v2  ;;  %v2017_v11 = vld [vmem:[%s2852_s14 + $0x48] sm:$0xf]  ;;  %v2859_v12 = vld [vmem:[%s2852_s14 + $0x50] sm:$0xf]  ;;  %v2862_v13 = vld [vmem:[%s2852_s14 + $0x58] sm:$0xf] }
  0x12   : > { %2465 = vmatpush3.bf16.msra.mxu1 %v2682_v3  ;;  %2442 = vmatprep.subr.bf16.mxu0 %v2683_v4  ;;  %v2042_v15 = vcombine.low %v2017_v11, %v2859_v12  ;;  %v2246_v16 = vcombine.low %v2859_v12, %v2862_v13  ;;  %v199_v17 = vld [vmem:[%s2852_s14] sm:$0xf]  ;;  %v2872_v18 = vld [vmem:[%s2852_s14 + $0x8] sm:$0xf]  ;;  %v2882_v22 = vld [vmem:[%s2852_s14 + $0x10] sm:$0xf] }
  0x13   : > { %2466 = vmatprep.subr.bf16.mxu1 %v2684_v5  ;;  %v2054_v19 = vcombine.low %v199_v17, %v2872_v18  ;;  %v2218_v23 = vcombine.low %v2872_v18, %v2882_v22  ;;  %v538_v26 = vshrl.u32 %v199_v17, 16  ;;  %v541_v27 = vshll.u32 %v199_v17, 16  ;;  %v2894_v29 = vld [vmem:[%s2852_s14 + $0x60] sm:$0xf]  ;;  %v2897_v30 = vld [vmem:[%s2852_s14 + $0x18] sm:$0xf]  ;;  %vm2982_vm2 = vmor %vm534_vm0, %vm535_vm1 }
  0x14   : > { %2454 = vmatprep.mubr.bf16.mxu0 %v2042_v15  ;;  %v552_v28 = vshrl.u32 %v2872_v18, 16  ;;  %v555_v32 = vshll.u32 %v2872_v18, 16  ;;  %v566_v33 = vshrl.u32 %v2882_v22, 16  ;;  %v569_v34 = vshll.u32 %v2882_v22, 16  ;;  %v2913_v41 = vld [vmem:[%s2852_s14 + $0x68] sm:$0xf] }
  0x15   : > { %2443 = vmatpush3.bf16.msra.mxu0 %v2683_v4  ;;  %2478 = vmatprep.mubr.bf16.mxu1 %v2054_v19  ;;  %v580_v36 = vshrl.u32 %v2897_v30, 16  ;;  %v583_v37 = vshll.u32 %v2897_v30, 16  ;;  %v540_v38 = vrot.slane %v538_v26, 4  ;;  %v543_v39 = vrot.slane %v541_v27, 5  ;;  %v2918_v43 = vld [vmem:[%s2852_s14 + $0x70] sm:$0xf] }
  0x16   : > { %2467 = vmatpush3.bf16.msra.mxu1 %v2684_v5  ;;  %2444 = vmatprep.subr.bf16.mxu0 %v2685_v6  ;;  %v2043_v40 = vcombine.low %v2862_v13, %v2894_v29  ;;  %v2055_v42 = vcombine.low %v2882_v22, %v2897_v30  ;;  %v2247_v44 = vcombine.low %v2894_v29, %v2913_v41  ;;  %v2923_v45 = vld [vmem:[%s2852_s14 + $0x20] sm:$0xf]  ;;  %v2926_v46 = vld [vmem:[%s2852_s14 + $0x28] sm:$0xf]  ;;  %v554_v47 = vrot.slane %v552_v28, 4  ;;  %v2702_v51 = vld [vmem:[%s3327_s1 + $0xb0] sm:$0xff]  }
  0x17   : > { %2468 = vmatprep.subr.bf16.mxu1 %v2686_v7  ;;  %v557_v48 = vrot.slane %v555_v32, 5  ;;  %v568_v49 = vrot.slane %v566_v33, 4  ;;  %v571_v50 = vrot.slane %v569_v34, 5  ;;  %v2931_v52 = vrot.slane %v580_v36, 4  ;;  %v2703_v54 = vld [vmem:[%s3327_s1 + $0xf0] sm:$0xff]   ;;  %v2704_v58 = vld [vmem:[%s3327_s1 + $0xa8] sm:$0xff]  }
  0x18   : > { %v2933_v53 = vrot.slane %v583_v37, 5  ;;  %v2044_v55 = vcombine.low %v2913_v41, %v2918_v43  ;;  %v2941_v56 = vld [vmem:[%s2852_s14 + $0x78] sm:$0xf]  ;;  %v2219_v57 = vcombine.low %v2897_v30, %v2923_v45  ;;  %v2056_v59 = vcombine.low %v2923_v45, %v2926_v46  ;;  %v2951_v60 = vld [vmem:[%s2852_s14 + $0x80] sm:$0xf]  ;;  %v2705_v3 = vld [vmem:[%s3327_s1 + $0xe8] sm:$0xff]  }
  0x19   : > { %2445 = vmatpush3.bf16.msra.mxu0 %v2685_v6  ;;  %v2954_v61 = vld [vmem:[%s2852_s14 + $0x30] sm:$0xf]  ;;  %v544_v62 = vor.u32 %v543_v39, %v540_v38  ;;  %v2957_v63 = vld [vmem:[%s2852_s14 + $0x38] sm:$0xf]  ;;  %v2248_v1 = vcombine.low %v2918_v43, %v2941_v56  ;;  %v558_v2 = vor.u32 %v557_v48, %v554_v47  ;;  %v594_v4 = vshrl.u32 %v2923_v45, 16  ;;  %v2757_v12 = vld [vmem:[%s3327_s1 + $0x188] sm:$0xff]  }
  0x1a   : > { %2469 = vmatpush3.bf16.msra.mxu1 %v2686_v7  ;;  %2446 = vmatprep.subr.bf16.mxu0 %v2687_v8  ;;  %v2220_v0 = vcombine.low %v2926_v46, %v2954_v61  ;;  %v597_v5 = vshll.u32 %v2923_v45, 16  ;;  %v2045_v6 = vcombine.low %v2941_v56, %v2951_v60  ;;  %v586_v11 = vor.u32 %v2933_v53, %v2931_v52  ;;  %v200_v15 = vld [vmem:[%s2852_s14 + $0x4] sm:$0x1]  ;;  %v202_v17 = vld [vmem:[%s2852_s14 + $0xc] sm:$0x1]  ;;  %v2708_v36 = vld [vmem:[%s3327_s1 + $0x98] sm:$0xff]  }
  0x1b   : > { %2470 = vmatprep.subr.bf16.mxu1 %v2688_v9  ;;  %v545_v7 = vrot.slane %v544_v62, 4  ;;  %v559_v19 = vrot.slane %v558_v2, 4  ;;  %v2988_v26 = vld [vmem:[%s2852_s14 + $0x98] sm:$0xf]  ;;  %v596_v27 = vrot.slane %v594_v4, 4  ;;  %v608_v37 = vshrl.u32 %v2926_v46, 16 }
  0x1c   : > { %v599_v28 = vrot.slane %v597_v5, 5  ;;  %v204_v34 = vld [vmem:[%s2852_s14 + $0x14] sm:$0x1]  ;;  %v206_v38 = vld [vmem:[%s2852_s14 + $0x1c] sm:$0x1]  ;;  %v611_v47 = vshll.u32 %v2926_v46, 16 }
  0x1d   : > { %2447 = vmatpush3.bf16.msra.mxu0 %v2687_v8  ;;  %v2706_v8 = vld [vmem:[%s3327_s1 + $0xa0] sm:$0xff]   ;;  %v575_v39 = vshll.u32 %v204_v34, 16  ;;  %v589_v52 = vshll.u32 %v206_v38, 16  ;;  %v639_v62 = vshll.u32 %v2957_v63, 16  ;;  %v2716_v2 = vld [vmem:[%s3327_s1 + $0xd0] sm:$0xff]   ;;  %v610_v4 = vrot.slane %v608_v37, 4 }
  0x1e   : > { %2471 = vmatpush3.bf16.msra.mxu1 %v2688_v9  ;;  %2448 = vmatprep.subr.bf16.mxu0 %v2689_v10  ;;  %v2057_v9 = vcombine.low %v2954_v61, %v2957_v63  ;;  %v600_v53 = vor.u32 %v599_v28, %v596_v27  ;;  %v3044_v38 = vld [vmem:[%s2852_s14 + $0x40] sm:$0xf]  ;;  %v2758_v13 = vld [vmem:[%s3327_s1 + $0x1c8] sm:$0xff]   ;;  %v2763_v22 = vld [vmem:[%s3327_s1 + $0x238] sm:$0xff]  }
  0x1f   : > { %2472 = vmatprep.subr.bf16.mxu1 %v2690_v14  ;;  %v2760_v18 = vld [vmem:[%s3327_s1 + $0x1c0] sm:$0xff]   ;;  %v2221_v30 = vcombine.low %v2957_v63, %v3044_v38  ;;  %v2771_v43 = vld [vmem:[%s3327_s1 + $0x218] sm:$0xff]   ;;  %v2773_v45 = vld [vmem:[%s3327_s1 + $0x208] sm:$0xff]  }
  0x20   : > { %v2770_v41 = vld [vmem:[%s3327_s1 + $0x220] sm:$0xff]  }
  0x21   : > { %2449 = vmatpush3.bf16.msra.mxu0 %v2689_v10  ;;  %v572_v10 = vor.u32 %v571_v50, %v568_v49  ;;  %v622_v50 = vshrl.u32 %v2954_v61, 16  ;;  %v2774_v46 = vld [vmem:[%s3327_s1 + $0x200] sm:$0xff]  }
  0x22   : > { %2473 = vmatpush3.bf16.msra.mxu1 %v2690_v14  ;;  %2450 = vmatprep.subr.bf16.mxu0 %v2691_v20  ;;  %v2707_v14 = vld [vmem:[%s3327_s1 + $0xe0] sm:$0xff]  }
  0x23   : > { %2474 = vmatprep.subr.bf16.mxu1 %v2692_v21  ;;  %v624_v27 = vrot.slane %v622_v50, 4  ;;  %v216_v50 = vld [vmem:[%s2852_s14 + $0x44] sm:$0x1] }
  0x25   : > { %2451 = vmatpush3.bf16.msra.mxu0 %v2691_v20  ;;  %v547_v20 = vshll.u32 %v200_v15, 16  ;;  %v208_v15 = vld [vmem:[%s2852_s14 + $0x24] sm:$0x1] }
  0x26   : > { %2475 = vmatpush3.bf16.msra.mxu1 %v2692_v21  ;;  %2452 = vmatprep.subr.bf16.mxu0 %v2693_v24  ;;  %v561_v21 = vshll.u32 %v202_v17, 16 }
  0x27   : > { %2476 = vmatprep.subr.bf16.mxu1 %v2694_v25 }
  0x28   : > { %v563_v32 = vrot.slane %v561_v21, 5  ;;  %v210_v21 = vld [vmem:[%s2852_s14 + $0x2c] sm:$0x1] }
  0x29   : > { %2453 = vmatpush3.bf16.msra.mxu0 %v2693_v24  ;;  %v617_v37 = vshll.u32 %v210_v21, 16  ;;  %v2723_v21 = vld [vmem:[%s3327_s1 + $0x138] sm:$0xff]   ;;  %v2752_v24 = vld [vmem:[%s3327_s1 + $0x1e0] sm:$0xff]  }
  0x2a   : > { %2477 = vmatpush3.bf16.msra.mxu1 %v2694_v25  ;;  %2486 = vmatprep.subr.bf16.mxu0 %v2700_v31  ;;  %v2094_v25 = vld [vmem:[%s2852_s14 + $0x90] sm:$0xf]  ;;  %v3005_v49 = vsel %vm2982_vm2, %v559_v19, %v563_v32  ;;  %v212_v32 = vld [vmem:[%s2852_s14 + $0x34] sm:$0x1] }
  0x2b   : > { %2510 = vmatprep.subr.bf16.mxu1 %v2701_v35  ;;  %v2126_v33 = vcombine.low %v2094_v25, %v2988_v26  ;;  %v1157_v5 = vshll.u32 %v2094_v25, 16 }
  0x2c   : > { %2455 = vmatmul.mubr.bf16.vlgmr.msra.gmra.mxu0 %v2043_v40  ;;  %v587_v40 = vrot.slane %v586_v11, 4  ;;  %v601_v11 = vrot.slane %v600_v53, 4 }
  0x2d   : > { %2479 = vmatmul.mubr.bf16.vlgmr.msra.gmra.mxu1 %v2055_v42  ;;  %2487 = vmatpush3.bf16.msra.mxu0 %v2700_v31  ;;  %v549_v31 = vrot.slane %v547_v20, 5  ;;  %v2709_v42 = vld [vmem:[%s3327_s1 + $0xd8] sm:$0xff]   ;;  %v1171_v20 = vshll.u32 %v2988_v26, 16  ;;  %v3036_v28 = vrot.slane %v1157_v5, 5 }
  0x2e   : > { %2511 = vmatpush3.bf16.msra.mxu1 %v2701_v35  ;;  %2488 = vmatprep.subr.bf16.mxu0 %v2702_v51  ;;  %v573_v35 = vrot.slane %v572_v10, 4  ;;  %v591_v10 = vrot.slane %v589_v52, 5 }
  0x2f   : > { %2512 = vmatprep.subr.bf16.mxu1 %v2703_v54  ;;  %2458 = vmatprep.mubr.bf16.mxu0 %v2044_v55  ;;  %v550_v48 = vsel %vm2982_vm2, %v545_v7, %v549_v31  ;;  %v636_v55 = vshrl.u32 %v2957_v63, 16  ;;  %v2717_v7 = vld [vmem:[%s3327_s1 + $0x88] sm:$0xff]  }
  0x30   : > { %2482 = vmatprep.mubr.bf16.mxu1 %v2056_v59  ;;  %v577_v59 = vrot.slane %v575_v39, 5  ;;  %v641_v39 = vrot.slane %v639_v62, 5  ;;  %v631_v62 = vshll.u32 %v212_v32, 16 }
  0x31   : > { %2489 = vmatpush3.bf16.msra.mxu0 %v2702_v51  ;;  %v2082_v51 = vcombine.low %v550_v48, %v3005_v49  ;;  %v3053_v48 = vsel %vm2982_vm2, %v587_v40, %v591_v10  ;;  %v3068_v10 = vrot.slane %v1171_v20, 5 }
  0x32   : > { %2513 = vmatpush3.bf16.msra.mxu1 %v2703_v54  ;;  %2490 = vmatprep.subr.bf16.mxu0 %v2704_v58  ;;  %v625_v54 = vshll.u32 %v2954_v61, 16 }
  0x33   : > { %2514 = vmatprep.subr.bf16.mxu1 %v2705_v3 }
  0x34   : > { %2459 = vmatmul.mubr.bf16.gmra.mxu0 %v2045_v6  ;;  %v613_v6 = vrot.slane %v611_v47, 5  ;;  %v627_v34 = vrot.slane %v625_v54, 5 }
  0x35   : > { %2491 = vmatpush3.bf16.msra.mxu0 %v2704_v58  ;;  %2483 = vmatmul.mubr.bf16.gmra.mxu1 %v2057_v9  ;;  %v2715_v58 = vld [vmem:[%s3327_s1 + $0x90] sm:$0xff]   ;;  %v3024_v9 = vsel %vm2982_vm2, %v573_v35, %v577_v59  ;;  %v2719_v35 = vld [vmem:[%s3327_s1 + $0x80] sm:$0xff]  }
  0x36   : > { %2515 = vmatpush3.bf16.msra.mxu1 %v2705_v3  ;;  %2492 = vmatprep.subr.bf16.mxu0 %v2706_v8  ;;  %v1154_v3 = vshrl.u32 %v2094_v25, 16  ;;  %v2274_v17 = vcombine.low %v3005_v49, %v3024_v9  ;;  %v603_v25 = vshll.u32 %v208_v15, 16  ;;  %v614_v31 = vor.u32 %v613_v6, %v610_v4  ;;  %v3066_v4 = vld [vmem:[%s2852_s14 + $0xa8] sm:$0xf] }
  0x37   : > { %2516 = vmatprep.subr.bf16.mxu1 %v2707_v14  ;;  %2526 = vmatprep.mubr.bf16.mxu1 %v2126_v33  ;;  %v214_v33 = vld [vmem:[%s2852_s14 + $0x3c] sm:$0x1]  ;;  %v628_v40 = vor.u32 %v627_v34, %v624_v27  ;;  %v619_v6 = vrot.slane %v617_v37, 5  ;;  %v1196_v15 = vshrl.u32 %v3066_v4, 16  ;;  %v1725_v27 = vshll.u32 %v216_v50, 16 }
  0x38   : > { %2502 = vmatprep.mubr.bf16.mxu0 %v2082_v51  ;;  %v3032_v19 = vrot.slane %v1154_v3, 4  ;;  %v1716_v51 = vshrl.u32 %v3044_v38, 16  ;;  %v645_v54 = vshll.u32 %v214_v33, 16  ;;  %v615_v5 = vrot.slane %v614_v31, 4 }
  0x39   : > { %2493 = vmatpush3.bf16.msra.mxu0 %v2706_v8  ;;  %v1168_v8 = vshrl.u32 %v2988_v26, 16  ;;  %v638_v26 = vrot.slane %v636_v55, 4  ;;  %v1719_v55 = vshll.u32 %v3044_v38, 16  ;;  %v1199_v32 = vshll.u32 %v3066_v4, 16 }
  0x3a   : > { %2517 = vmatpush3.bf16.msra.mxu1 %v2707_v14  ;;  %2494 = vmatprep.subr.bf16.mxu0 %v2708_v36  ;;  %v2718_v14 = vld [vmem:[%s3327_s1 + $0xc8] sm:$0xff]   ;;  %v1718_v3 = vrot.slane %v1716_v51, 4  ;;  %v629_v33 = vrot.slane %v628_v40, 4  ;;  %v633_v34 = vrot.slane %v631_v62, 5  ;;  %v2083_v37 = vcombine.low %v3024_v9, %v3053_v48 }
  0x3b   : > { %2518 = vmatprep.subr.bf16.mxu1 %v2709_v42  ;;  %v3049_v47 = vrot.slane %v1168_v8, 4  ;;  %v642_v53 = vor.u32 %v641_v39, %v638_v26  ;;  %v1721_v8 = vrot.slane %v1719_v55, 5  ;;  %v3087_v39 = vsel %vm2982_vm2, %v615_v5, %v619_v6 }
  0x3d   : > { %2495 = vmatpush3.bf16.msra.mxu0 %v2708_v36  ;;  %v605_v36 = vrot.slane %v603_v25, 5  ;;  %v2724_v25 = vld [vmem:[%s3327_s1 + $0x178] sm:$0xff]   ;;  %v643_v31 = vrot.slane %v642_v53, 4  ;;  %v1722_v20 = vor.u32 %v1721_v8, %v1718_v3  ;;  %v2102_v53 = vld [vmem:[%s2852_s14 + $0xb0] sm:$0xf]  ;;  %v2728_v8 = vld [vmem:[%s3327_s1 + $0x168] sm:$0xff]  }
  0x3e   : > { %2519 = vmatpush3.bf16.msra.mxu1 %v2709_v42  ;;  %2496 = vmatprep.subr.bf16.mxu0 %v2715_v58  ;;  %v2720_v42 = vld [vmem:[%s3327_s1 + $0xc0] sm:$0xff]  }
  0x3f   : > { %2520 = vmatprep.subr.bf16.mxu1 %v2716_v2  ;;  %v3059_v52 = vsel %vm2982_vm2, %v601_v11, %v605_v36  ;;  %v1727_v36 = vrot.slane %v1725_v27, 5  ;;  %v1723_v50 = vrot.slane %v1722_v20, 4  ;;  %v1210_v27 = vshrl.u32 %v2102_v53, 16 }
  0x40   : > { %v2275_v59 = vcombine.low %v3053_v48, %v3059_v52 }
  0x41   : > { %2497 = vmatpush3.bf16.msra.mxu0 %v2715_v58  ;;  %v2098_v58 = vld [vmem:[%s2852_s14 + $0xa0] sm:$0xf]  ;;  %v1728_v40 = vsel %vm2982_vm2, %v1723_v50, %v1727_v36  ;;  %v2097_v50 = vld [vmem:[%s2852_s14 + $0x9c] sm:$0x1] }
  0x42   : > { %2521 = vmatpush3.bf16.msra.mxu1 %v2716_v2  ;;  %2498 = vmatprep.subr.bf16.mxu0 %v2717_v7  ;;  %v1182_v2 = vshrl.u32 %v2098_v58, 16  ;;  %v1185_v11 = vshll.u32 %v2098_v58, 16  ;;  %v2127_v51 = vcombine.low %v2098_v58, %v3066_v4  ;;  %v2084_v58 = vcombine.low %v3059_v52, %v3087_v39 }
  0x43   : > { %2522 = vmatprep.subr.bf16.mxu1 %v2718_v14  ;;  %v3109_v4 = vrot.slane %v1196_v15, 4  ;;  %v3123_v15 = vld [vmem:[%s2852_s14 + $0xc8] sm:$0xf] }
  0x44   : > { %v3080_v26 = vrot.slane %v1182_v2, 4  ;;  %v3096_v62 = vrot.slane %v1185_v11, 5  ;;  %v2727_v2 = vld [vmem:[%s3327_s1 + $0x128] sm:$0xff]   ;;  %v3120_v11 = vld [vmem:[%s2852_s14 + $0xc0] sm:$0xf] }
  0x45   : > { %2499 = vmatpush3.bf16.msra.mxu0 %v2717_v7  ;;  %v647_v7 = vrot.slane %v645_v54, 5  ;;  %v2104_v54 = vld [vmem:[%s2852_s14 + $0xb8] sm:$0xf]  ;;  %v2129_v36 = vcombine.low %v3120_v11, %v3123_v15 }
  0x46   : > { %2523 = vmatpush3.bf16.msra.mxu1 %v2718_v14  ;;  %2500 = vmatprep.subr.bf16.mxu0 %v2719_v35  ;;  %v2725_v14 = vld [vmem:[%s3327_s1 + $0x130] sm:$0xff]   ;;  %v2128_v5 = vcombine.low %v2102_v53, %v2104_v54  ;;  %v1224_v20 = vshrl.u32 %v2104_v54, 16 }
  0x47   : > { %2524 = vmatprep.subr.bf16.mxu1 %v2720_v42  ;;  %v648_v55 = vsel %vm2982_vm2, %v643_v31, %v647_v7  ;;  %v1213_v31 = vshll.u32 %v2102_v53, 16 }
  0x48   : > { %v3107_v3 = vcombine.low %v648_v55, %v1728_v40  ;;  %v1226_v40 = vrot.slane %v1224_v20, 4 }
  0x49   : > { %2501 = vmatpush3.bf16.msra.mxu0 %v2719_v35  ;;  %v2726_v35 = vld [vmem:[%s3327_s1 + $0x170] sm:$0xff]  }
  0x4a   : > { %2525 = vmatpush3.bf16.msra.mxu1 %v2720_v42  ;;  %2534 = vmatprep.subr.bf16.mxu0 %v2723_v21  ;;  %v3105_v42 = vsel %vm2982_vm2, %v629_v33, %v633_v34  ;;  %v1174_v33 = vor.u32 %v3068_v10, %v3049_v47  ;;  %v1227_v34 = vshll.u32 %v2104_v54, 16  ;;  %v1212_v47 = vrot.slane %v1210_v27, 4  ;;  %v2734_v27 = vld [vmem:[%s3327_s1 + $0x158] sm:$0xff]  }
  0x4b   : > { %2558 = vmatprep.subr.bf16.mxu1 %v2724_v25  ;;  %v2276_v6 = vcombine.low %v3087_v39, %v3105_v42  ;;  %v2085_v7 = vcombine.low %v3105_v42, %v648_v55  ;;  %v1201_v55 = vrot.slane %v1199_v32, 5  ;;  %v1215_v54 = vrot.slane %v1213_v31, 5 }
  0x4c   : > { %2503 = vmatmul.mubr.bf16.vlgmr.msra.gmra.mxu0 %v2083_v37  ;;  %v2095_v37 = vld [vmem:[%s2852_s14 + $0x94] sm:$0x1]  ;;  %v1175_v10 = vrot.slane %v1174_v33, 4  ;;  %v1241_v32 = vshll.u32 %v3120_v11, 16 }
  0x4d   : > { %2527 = vmatmul.mubr.bf16.vlgmr.msra.gmra.mxu1 %v2127_v51  ;;  %2535 = vmatpush3.bf16.msra.mxu0 %v2723_v21  ;;  %v1160_v21 = vor.u32 %v3036_v28, %v3032_v19  ;;  %v2732_v19 = vld [vmem:[%s3327_s1 + $0x160] sm:$0xff]   ;;  %v1163_v53 = vshll.u32 %v2095_v37, 16 }
  0x4e   : > { %2559 = vmatpush3.bf16.msra.mxu1 %v2724_v25  ;;  %2536 = vmatprep.subr.bf16.mxu0 %v2725_v14  ;;  %v2731_v25 = vld [vmem:[%s3327_s1 + $0x120] sm:$0xff]  }
  0x4f   : > { %2560 = vmatprep.subr.bf16.mxu1 %v2726_v35  ;;  %2506 = vmatprep.mubr.bf16.mxu0 %v2084_v58  ;;  %v2741_v28 = vld [vmem:[%s2852_s14 + $0xd8] ss:$8 sps:$4 sm:$0xff]   ;;  %v1161_v51 = vrot.slane %v1160_v21, 4  ;;  %v1229_v58 = vrot.slane %v1227_v34, 5  ;;  %v1238_v21 = vshrl.u32 %v3120_v11, 16  ;;  %v1252_v11 = vshrl.u32 %v3123_v15, 16 }
  0x50   : > { %2530 = vmatprep.mubr.bf16.mxu1 %v2128_v5  ;;  %v1165_v5 = vrot.slane %v1163_v53, 5  ;;  %v2735_v34 = vld [vmem:[%s3327_s1 + $0x110] sm:$0xff]  }
  0x51   : > { %2537 = vmatpush3.bf16.msra.mxu0 %v2725_v14  ;;  %v1177_v14 = vshll.u32 %v2097_v50, 16  ;;  %v1240_v53 = vrot.slane %v1238_v21, 4 }
  0x52   : > { %2561 = vmatpush3.bf16.msra.mxu1 %v2726_v35  ;;  %2538 = vmatprep.subr.bf16.mxu0 %v2727_v2  ;;  %v2733_v35 = vld [vmem:[%s3327_s1 + $0x118] sm:$0xff]  }
  0x53   : > { %2562 = vmatprep.subr.bf16.mxu1 %v2728_v8  ;;  %v1179_v31 = vrot.slane %v1177_v14, 5  ;;  %v2103_v14 = vld [vmem:[%s2852_s14 + $0xb4] sm:$0x1] }
  0x54   : > { %2507 = vmatmul.mubr.bf16.gmra.mxu0 %v2085_v7  ;;  %v2099_v7 = vld [vmem:[%s2852_s14 + $0xa4] sm:$0x1] }
  0x55   : > { %2539 = vmatpush3.bf16.msra.mxu0 %v2727_v2  ;;  %2531 = vmatmul.mubr.bf16.gmra.mxu1 %v2129_v36  ;;  %v1166_v2 = vsel %vm2982_vm2, %v1161_v51, %v1165_v5  ;;  %v1180_v20 = vsel %vm2982_vm2, %v1175_v10, %v1179_v31  ;;  %v1255_v36 = vshll.u32 %v3123_v15, 16  ;;  %v1191_v37 = vshll.u32 %v2099_v7, 16  ;;  %v2737_v15 = vld [vmem:[%s3327_s1 + $0x108] sm:$0xff]   ;;  %v2105_v5 = vld [vmem:[%s2852_s14 + $0xbc] sm:$0x1] }
  0x56   : > { %2563 = vmatpush3.bf16.msra.mxu1 %v2728_v8  ;;  %2540 = vmatprep.subr.bf16.mxu0 %v2731_v25  ;;  %v2101_v8 = vld [vmem:[%s2852_s14 + $0xac] sm:$0x1]  ;;  %v2190_v33 = vcombine.low %v1166_v2, %v1180_v20  ;;  %v1216_v51 = vor.u32 %v1215_v54, %v1212_v47  ;;  %v1243_v10 = vrot.slane %v1241_v32, 5  ;;  %v1254_v31 = vrot.slane %v1252_v11, 4  ;;  %v2740_v32 = vld [vmem:[%s3327_s1 + $0x140] sm:$0xff]  }
  0x57   : > { %2564 = vmatprep.subr.bf16.mxu1 %v2732_v19  ;;  %2550 = vmatprep.mubr.bf16.mxu0 %v2741_v28  ;;  %v2736_v28 = vld [vmem:[%s3327_s1 + $0x150] sm:$0xff]   ;;  %v1205_v50 = vshll.u32 %v2101_v8, 16  ;;  %v1257_v2 = vrot.slane %v1255_v36, 5  ;;  %v1193_v47 = vrot.slane %v1191_v37, 5  ;;  %v1233_v7 = vshll.u32 %v2105_v5, 16 }
  0x58   : > { %2574 = vmatprep.mubr.bf16.mxu1 %v2190_v33  ;;  %v1217_v21 = vrot.slane %v1216_v51, 4  ;;  %v2107_v20 = vld [vmem:[%s2852_s14 + $0xc4] sm:$0x1]  ;;  %v1244_v33 = vor.u32 %v1243_v10, %v1240_v53  ;;  %v2742_v37 = vld [vmem:[%s2852_s14 + $0xe8] ss:$8 sps:$4 sm:$0xff]   ;;  %v2744_v51 = vld [vmem:[%s3327_s1 + $0x1f8] sm:$0xff]  }
  0x59   : > { %2541 = vmatpush3.bf16.msra.mxu0 %v2731_v25  ;;  %v1188_v25 = vor.u32 %v3096_v62, %v3080_v26  ;;  %v2738_v26 = vld [vmem:[%s3327_s1 + $0x148] sm:$0xff]   ;;  %v1258_v11 = vor.u32 %v1257_v2, %v1254_v31  ;;  %v2745_v10 = vld [vmem:[%s3327_s1 + $0x1b0] sm:$0xff]  }
  0x5a   : > { %2565 = vmatpush3.bf16.msra.mxu1 %v2732_v19  ;;  %2542 = vmatprep.subr.bf16.mxu0 %v2733_v35  ;;  %v1202_v19 = vor.u32 %v1201_v55, %v3109_v4  ;;  %v1230_v4 = vor.u32 %v1229_v58, %v1226_v40  ;;  %v2739_v55 = vld [vmem:[%s3327_s1 + $0x100] sm:$0xff]   ;;  %v2109_v40 = vld [vmem:[%s2852_s14 + $0xcc] sm:$0x1]  ;;  %v2743_v58 = vld [vmem:[%s3327_s1 + $0x1b8] sm:$0xff]   ;;  %v1245_v31 = vrot.slane %v1244_v33, 4 }
  0x5b   : > { %2566 = vmatprep.subr.bf16.mxu1 %v2734_v27  ;;  %v1189_v62 = vrot.slane %v1188_v25, 4  ;;  %v1235_v25 = vrot.slane %v1233_v7, 5  ;;  %v1259_v2 = vrot.slane %v1258_v11, 4  ;;  %v2751_v7 = vld [vmem:[%s3327_s1 + $0x1a0] sm:$0xff]   ;;  %v2767_v33 = vld [vmem:[%s3327_s1 + $0x228] sm:$0xff]  }
  0x5c   : > { %v1203_v54 = vrot.slane %v1202_v19, 4  ;;  %v1231_v8 = vrot.slane %v1230_v4, 4  ;;  %v1247_v19 = vshll.u32 %v2107_v20, 16  ;;  %v2747_v4 = vld [vmem:[%s2852_s14 + $0xf8] ss:$8 sps:$4 sm:$0xff]  }
  0x5d   : > { %2543 = vmatpush3.bf16.msra.mxu0 %v2733_v35  ;;  %v1207_v35 = vrot.slane %v1205_v50, 5  ;;  %v1261_v50 = vshll.u32 %v2109_v40, 16  ;;  %v2753_v20 = vld [vmem:[%s3327_s1 + $0x198] sm:$0xff]   ;;  %v2025_v11 = vld [vmem:[%s2852_s14 + $0x88] sm:$0xf] }
  0x5e   : > { %2567 = vmatpush3.bf16.msra.mxu1 %v2734_v27  ;;  %2544 = vmatprep.subr.bf16.mxu0 %v2735_v34  ;;  %v1219_v27 = vshll.u32 %v2103_v14, 16  ;;  %v1236_v5 = vsel %vm2982_vm2, %v1231_v8, %v1235_v25  ;;  %v2754_v40 = vld [vmem:[%s3327_s1 + $0x1d8] sm:$0xff]   ;;  %v2756_v8 = vld [vmem:[%s3327_s1 + $0x1d0] sm:$0xff]   ;;  %v2249_v29 = vcombine.low %v2951_v60, %v2025_v11 }
  0x5f   : > { %2568 = vmatprep.subr.bf16.mxu1 %v2736_v28  ;;  %v1208_v36 = vsel %vm2982_vm2, %v1203_v54, %v1207_v35 }
  0x61   : > { %2545 = vmatpush3.bf16.msra.mxu0 %v2735_v34  ;;  %v1194_v34 = vsel %vm2982_vm2, %v1189_v62, %v1193_v47  ;;  %v1263_v62 = vrot.slane %v1261_v50, 5  ;;  %v2749_v47 = vld [vmem:[%s3327_s1 + $0x1a8] sm:$0xff]  }
  0x62   : > { %2569 = vmatpush3.bf16.msra.mxu1 %v2736_v28  ;;  %2546 = vmatprep.subr.bf16.mxu0 %v2737_v15  ;;  %v1221_v28 = vrot.slane %v1219_v27, 5  ;;  %v2191_v53 = vcombine.low %v1194_v34, %v1208_v36 }
  0x63   : > { %2570 = vmatprep.subr.bf16.mxu1 %v2738_v26  ;;  %v1264_v35 = vsel %vm2982_vm2, %v1259_v2, %v1263_v62 }
  0x64   : > { %v1222_v14 = vsel %vm2982_vm2, %v1217_v21, %v1221_v28  ;;  %v2750_v21 = vld [vmem:[%s3327_s1 + $0x1e8] sm:$0xff]  }
  0x65   : > { %2547 = vmatpush3.bf16.msra.mxu0 %v2737_v15  ;;  %v2746_v15 = vld [vmem:[%s3327_s1 + $0x1f0] sm:$0xff]  }
  0x66   : > { %2571 = vmatpush3.bf16.msra.mxu1 %v2738_v26  ;;  %2548 = vmatprep.subr.bf16.mxu0 %v2739_v55  ;;  %v1249_v26 = vrot.slane %v1247_v19, 5 }
  0x67   : > { %2572 = vmatprep.subr.bf16.mxu1 %v2740_v32 }
  0x68   : > { %v1250_v54 = vsel %vm2982_vm2, %v1245_v31, %v1249_v26 }
  0x69   : > { %2549 = vmatpush3.bf16.msra.mxu0 %v2739_v55  ;;  %v2192_v55 = vcombine.low %v1222_v14, %v1236_v5  ;;  %v2193_v27 = vcombine.low %v1250_v54, %v1264_v35 }
  0x6a   : > { %2573 = vmatpush3.bf16.msra.mxu1 %v2740_v32  ;;  %2582 = vmatprep.subr.bf16.mxu0 %v2743_v58  ;;  %v2748_v32 = vld [vmem:[%s2852_s14 + $0x108] ss:$8 sps:$4 sm:$0xff]  }
  0x6b   : > { %2606 = vmatprep.subr.bf16.mxu1 %v2744_v51 }
  0x6c   : > { %2551 = vmatmul.mubr.bf16.vlgmr.msra.gmra.mxu0 %v2742_v37 }
  0x6d   : > { %2575 = vmatmul.mubr.bf16.vlgmr.msra.gmra.mxu1 %v2191_v53  ;;  %2583 = vmatpush3.bf16.msra.mxu0 %v2743_v58  ;;  %v2755_v58 = vld [vmem:[%s3327_s1 + $0x190] sm:$0xff]  }
  0x6e   : > { %2607 = vmatpush3.bf16.msra.mxu1 %v2744_v51  ;;  %2584 = vmatprep.subr.bf16.mxu0 %v2745_v10 }
  0x6f   : > { %2608 = vmatprep.subr.bf16.mxu1 %v2746_v15  ;;  %2554 = vmatprep.mubr.bf16.mxu0 %v2747_v4 }
  0x70   : > { %2578 = vmatprep.mubr.bf16.mxu1 %v2192_v55 }
  0x71   : > { %2585 = vmatpush3.bf16.msra.mxu0 %v2745_v10 }
  0x72   : > { %2609 = vmatpush3.bf16.msra.mxu1 %v2746_v15  ;;  %2586 = vmatprep.subr.bf16.mxu0 %v2749_v47 }
  0x73   : > { %2610 = vmatprep.subr.bf16.mxu1 %v2750_v21 }
  0x74   : > { %2555 = vmatmul.mubr.bf16.gmra.mxu0 %v2748_v32 }
  0x75   : > { %2587 = vmatpush3.bf16.msra.mxu0 %v2749_v47  ;;  %2579 = vmatmul.mubr.bf16.gmra.mxu1 %v2193_v27 }
  0x76   : > { %2611 = vmatpush3.bf16.msra.mxu1 %v2750_v21  ;;  %2588 = vmatprep.subr.bf16.mxu0 %v2751_v7 }
  0x77   : > { %2612 = vmatprep.subr.bf16.mxu1 %v2752_v24  ;;  %2598 = vmatprep.mubr.bf16.mxu0 %v2218_v23  ;;  %v2764_v23 = vld [vmem:[%s3327_s1 + $0x230] sm:$0xff]  }
  0x78   : > { %2622 = vmatprep.mubr.bf16.mxu1 %v2246_v16  ;;  %v2759_v16 = vld [vmem:[%s3327_s1 + $0x180] sm:$0xff]  }
  0x79   : > { %2589 = vmatpush3.bf16.msra.mxu0 %v2751_v7 }
  0x7a   : > { %2613 = vmatpush3.bf16.msra.mxu1 %v2752_v24  ;;  %2590 = vmatprep.subr.bf16.mxu0 %v2753_v20 }
  0x7b   : > { %2614 = vmatprep.subr.bf16.mxu1 %v2754_v40 }
  0x7d   : > { %2591 = vmatpush3.bf16.msra.mxu0 %v2753_v20 }
  0x7e   : > { %2615 = vmatpush3.bf16.msra.mxu1 %v2754_v40  ;;  %2592 = vmatprep.subr.bf16.mxu0 %v2755_v58 }
  0x7f   : > { %2616 = vmatprep.subr.bf16.mxu1 %v2756_v8 }
  0x81   : > { %2593 = vmatpush3.bf16.msra.mxu0 %v2755_v58 }
  0x82   : > { %2617 = vmatpush3.bf16.msra.mxu1 %v2756_v8  ;;  %2594 = vmatprep.subr.bf16.mxu0 %v2757_v12 }
  0x83   : > { %2618 = vmatprep.subr.bf16.mxu1 %v2758_v13 }
  0x85   : > { %2595 = vmatpush3.bf16.msra.mxu0 %v2757_v12 }
  0x86   : > { %2619 = vmatpush3.bf16.msra.mxu1 %v2758_v13  ;;  %2596 = vmatprep.subr.bf16.mxu0 %v2759_v16 }
  0x87   : > { %2620 = vmatprep.subr.bf16.mxu1 %v2760_v18 }
  0x89   : > { %2597 = vmatpush3.bf16.msra.mxu0 %v2759_v16 }
  0x8a   : > { %2621 = vmatpush3.bf16.msra.mxu1 %v2760_v18  ;;  %2630 = vmatprep.subr.bf16.mxu0 %v2763_v22 }
  0x8b   : > { %2654 = vmatprep.subr.bf16.mxu1 %v2763_v22 }
  0x8c   : > { %2599 = vmatmul.mubr.bf16.vlgmr.msra.gmra.mxu0 %v2219_v57 }
  0x8d   : > { %2623 = vmatmul.mubr.bf16.vlgmr.msra.gmra.mxu1 %v2247_v44  ;;  %2631 = vmatpush3.bf16.msra.mxu0 %v2763_v22  ;;  %v2772_v44 = vld [vmem:[%s3327_s1 + $0x210] sm:$0xff]  }
  0x8e   : > { %2662 = vmatpush3.bf16.msra.mxu1 %v2763_v22  ;;  %2632 = vmatprep.subr.bf16.mxu0 %v2764_v23 }
  0x8f   : > { %2655 = vmatprep.subr.bf16.mxu1 %v2764_v23  ;;  %2602 = vmatprep.mubr.bf16.mxu0 %v2220_v0 }
  0x90   : > { %2626 = vmatprep.mubr.bf16.mxu1 %v2248_v1 }
  0x91   : > { %2633 = vmatpush3.bf16.msra.mxu0 %v2764_v23 }
  0x92   : > { %2663 = vmatpush3.bf16.msra.mxu1 %v2764_v23  ;;  %2634 = vmatprep.subr.bf16.mxu0 %v2767_v33 }
  0x93   : > { %2656 = vmatprep.subr.bf16.mxu1 %v2767_v33 }
  0x94   : > { %2603 = vmatmul.mubr.bf16.gmra.mxu0 %v2221_v30 }
  0x95   : > { %2635 = vmatpush3.bf16.msra.mxu0 %v2767_v33  ;;  %2627 = vmatmul.mubr.bf16.gmra.mxu1 %v2249_v29 }
  0x96   : > { %2664 = vmatpush3.bf16.msra.mxu1 %v2767_v33  ;;  %2636 = vmatprep.subr.bf16.mxu0 %v2770_v41 }
  0x97   : > { %2657 = vmatprep.subr.bf16.mxu1 %v2770_v41  ;;  %2646 = vmatprep.mubr.bf16.mxu0 %v2274_v17 }
  0x98   : > { %2650 = vmatprep.mubr.bf16.mxu1 %v2276_v6 }
  0x99   : > { %2637 = vmatpush3.bf16.msra.mxu0 %v2770_v41 }
  0x9a   : > { %2665 = vmatpush3.bf16.msra.mxu1 %v2770_v41  ;;  %2638 = vmatprep.subr.bf16.mxu0 %v2771_v43 }
  0x9b   : > { %2658 = vmatprep.subr.bf16.mxu1 %v2771_v43 }
  0x9d   : > { %2639 = vmatpush3.bf16.msra.mxu0 %v2771_v43 }
  0x9e   : > { %2666 = vmatpush3.bf16.msra.mxu1 %v2771_v43  ;;  %2640 = vmatprep.subr.bf16.mxu0 %v2772_v44 }
  0x9f   : > { %2659 = vmatprep.subr.bf16.mxu1 %v2772_v44 }
  0xa1   : > { %2641 = vmatpush3.bf16.msra.mxu0 %v2772_v44 }
  0xa2   : > { %2667 = vmatpush3.bf16.msra.mxu1 %v2772_v44  ;;  %2642 = vmatprep.subr.bf16.mxu0 %v2773_v45 }
  0xa3   : > { %2660 = vmatprep.subr.bf16.mxu1 %v2773_v45 }
  0xa5   : > { %2643 = vmatpush3.bf16.msra.mxu0 %v2773_v45 }
  0xa6   : > { %2668 = vmatpush3.bf16.msra.mxu1 %v2773_v45  ;;  %2644 = vmatprep.subr.bf16.mxu0 %v2774_v46 }
  0xa7   : > { %2661 = vmatprep.subr.bf16.mxu1 %v2774_v46 }
  0xa9   : > { %2645 = vmatpush3.bf16.msra.mxu0 %v2774_v46 }
  0xaa   : > { %2669 = vmatpush3.bf16.msra.mxu1 %v2774_v46 }
  0xac   : > { %2647 = vmatmul.mubr.bf16.vlgmr.msra.gmra.mxu0 %v2275_v59 }
  0xad   : > { %2651 = vmatmul.mubr.bf16.vlgmr.msra.gmra.mxu1 %v3107_v3 }
  0xec   : > { %v2456_v56 = vpop.f32.mrf.mxu0 }
  0xed   : > { %v2480_v60 = vpop.f32.mrf.mxu1 }
  0xee   : > { %v366_v57 = vpop.f32.mrf.mxu0  ;;  %v512_v22 = vadd.f32 %v2480_v60, %v2456_v56 }
  0xef   : > { %v503_v63 = vpop.f32.mrf.mxu1 }
  0xf0   : > { %v2457_v61 = vpop.f32.mrf.mxu0  ;;  %v504_v30 = vadd.f32 %v503_v63, %v366_v57 }
  0xf1   : > { %v2481_v49 = vpop.f32.mrf.mxu1 }
  0xf2   : > { %v369_v0 = vpop.f32.mrf.mxu0  ;;  %v515_v44 = vadd.f32 %v2481_v49, %v2457_v61 }
  0xf3   : > { %v506_v17 = vpop.f32.mrf.mxu1 }
  0xf4   : > { %v2460_v1 = vpop.f32.mrf.mxu0  ;;  %v507_v60 = vadd.f32 %v506_v17, %v369_v0 }
  0xf5   : > { %v2484_v38 = vpop.f32.mrf.mxu1 }
  0xf6   : > { %v382_v9 = vpop.f32.mrf.mxu0  ;;  %v528_v33 = vadd.f32 %v2484_v38, %v2460_v1 }
  0xf7   : > { %v519_v42 = vpop.f32.mrf.mxu1 }
  0xf8   : > { %v2461_v39 = vpop.f32.mrf.mxu0  ;;  %v520_v41 = vadd.f32 %v519_v42, %v382_v9 }
  0xf9   : > { %v2485_v36 = vpop.f32.mrf.mxu1 }
  0xfa   : > { %v385_v6 = vpop.f32.mrf.mxu0 }
  0xfb   : > { %v522_v52 = vpop.f32.mrf.mxu1 }
  0xfc   : > { %v523_v57 = vadd.f32 %v522_v52, %v385_v6 }
 0x10c   : > { %v2504_v34 = vpop.f32.mrf.mxu0 }
 0x10d   : > { %v2528_v59 = vpop.f32.mrf.mxu1  ;;  %v797_v29 = vadd.f32 %v2504_v34, %v512_v22 }
 0x10e   : > { %v764_v48 = vpop.f32.mrf.mxu0 }
 0x10f   : > { %v943_v28 = vpop.f32.mrf.mxu1  ;;  %v795_v45 = vadd.f32 %v764_v48, %v504_v30 }
 0x110   : > { %v2505_v3 = vpop.f32.mrf.mxu0 }
 0x111   : > { %v2529_v37 = vpop.f32.mrf.mxu1  ;;  %v798_v1 = vadd.f32 %v2505_v3, %v515_v44  ;;  %v974_v34 = vadd.f32 %v943_v28, %v795_v45 }
 0x112   : > { %v767_v25 = vpop.f32.mrf.mxu0 }
 0x113   : > { %v946_v50 = vpop.f32.mrf.mxu1  ;;  %v796_v9 = vadd.f32 %v767_v25, %v507_v60  ;;  %v977_v48 = vadd.f32 %v2529_v37, %v798_v1 }
 0x114   : > { %v2508_v19 = vpop.f32.mrf.mxu0 }
 0x115   : > { %v2532_v53 = vpop.f32.mrf.mxu1  ;;  %v801_v43 = vadd.f32 %v2508_v19, %v528_v33 }
 0x116   : > { %v780_v51 = vpop.f32.mrf.mxu0 }
 0x117   : > { %v959_v15 = vpop.f32.mrf.mxu1  ;;  %v980_v63 = vadd.f32 %v2532_v53, %v801_v43 }
 0x118   : > { %v2509_v10 = vpop.f32.mrf.mxu0 }
 0x119   : > { %v2533_v5 = vpop.f32.mrf.mxu1 }
 0x11a   : > { %v783_v14 = vpop.f32.mrf.mxu0 }
 0x11b   : > { %v962_v2 = vpop.f32.mrf.mxu1  ;;  %v800_v33 = vadd.f32 %v783_v14, %v523_v57 }
 0x12c   : > { %v2552_v31 = vpop.f32.mrf.mxu0 }
 0x12d   : > { %v2576_v62 = vpop.f32.mrf.mxu1 }
 0x12e   : > { %v1114_v26 = vpop.f32.mrf.mxu0 }
 0x12f   : > { %v1380_v55 = vpop.f32.mrf.mxu1  ;;  %v1145_v30 = vadd.f32 %v1114_v26, %v974_v34 }
 0x130   : > { %v2553_v4 = vpop.f32.mrf.mxu0 }
 0x131   : > { %v2577_v54 = vpop.f32.mrf.mxu1  ;;  %v1148_v17 = vadd.f32 %v2553_v4, %v977_v48  ;;  %v1411_v53 = vadd.f32 %v1380_v55, %v1145_v30 }
 0x132   : > { %v1117_v47 = vpop.f32.mrf.mxu0 }
 0x133   : > { %v3301_v21 = vpop.f32.mrf.mxu1 }
 0x134   : > { %v2556_v35 = vpop.f32.mrf.mxu0  ;;  %3333 = vst [vmem:[#allocation2_spill] sm:$0xff] %v3301_v21  ;;  %v531_v21 = vadd.f32 %v2485_v36, %v2461_v39 }
 0x135   : > { %v2580_v32 = vpop.f32.mrf.mxu1  ;;  %v1151_v49 = vadd.f32 %v2556_v35, %v980_v63  ;;  %v1414_v35 = vadd.f32 %v2577_v54, %v1148_v17 }
 0x136   : > { %v1130_v27 = vpop.f32.mrf.mxu0  ;;  %v802_v22 = vadd.f32 %v2509_v10, %v531_v21 }
 0x137   : > { %v1396_v7 = vpop.f32.mrf.mxu1  ;;  %v1417_v3 = vadd.f32 %v2580_v32, %v1151_v49 }
 0x138   : > { %v2557_v24 = vpop.f32.mrf.mxu0  ;;  %v981_v39 = vadd.f32 %v2533_v5, %v802_v22 }
 0x139   : > { %v2581_v20 = vpop.f32.mrf.mxu1 }
 0x13a   : > { %v1133_v40 = vpop.f32.mrf.mxu0  ;;  %v1152_v6 = vadd.f32 %v2557_v24, %v981_v39 }
 0x13b   : > { %v1399_v8 = vpop.f32.mrf.mxu1 }
 0x13c   : > { %v1418_v26 = vadd.f32 %v2581_v20, %v1152_v6 }
 0x14c   : > { %v2600_v58 = vpop.f32.mrf.mxu0 }
 0x14d   : > { %v2624_v12 = vpop.f32.mrf.mxu1 }
 0x14e   : > { %v1528_v13 = vpop.f32.mrf.mxu0 }
 0x14f   : > { %v3303_v16 = vpop.f32.mrf.mxu1  ;;  %v1559_v37 = vadd.f32 %v1528_v13, %v1411_v53 }
 0x150   : > { %3334 = vst [vmem:[#allocation3_spill] sm:$0xff] %v3303_v16  ;;  %v2601_v18 = vpop.f32.mrf.mxu0  ;;  %v799_v16 = vadd.f32 %v780_v51, %v520_v41  ;;  %v975_v51 = vadd.f32 %v946_v50, %v796_v9 }
 0x151   : > { %v3305_v23 = vpop.f32.mrf.mxu1  ;;  %v1562_v4 = vadd.f32 %v2601_v18, %v1414_v35 }
 0x152   : > { %3335 = vst [vmem:[#allocation4_spill] sm:$0xff] %v3305_v23  ;;  %v1531_v11 = vpop.f32.mrf.mxu0  ;;  %v976_v23 = vadd.f32 %v2528_v59, %v797_v29  ;;  %v978_v19 = vadd.f32 %v959_v15, %v799_v16  ;;  %v979_v59 = vadd.f32 %v962_v2, %v800_v33  ;;  %v1146_v28 = vadd.f32 %v1117_v47, %v975_v51  ;;  %v2286_v47 = vld [vmem:[%s3328_s2] ss:$0 sm:$0xff] }
 0x153   : > { %v3307_v46 = vpop.f32.mrf.mxu1 }
 0x154   : > { %3336 = vst [vmem:[#allocation5_spill] sm:$0xff] %v3307_v46  ;;  %v2604_v56 = vpop.f32.mrf.mxu0  ;;  %v1147_v42 = vadd.f32 %v2552_v31, %v976_v23  ;;  %v1149_v36 = vadd.f32 %v1130_v27, %v978_v19  ;;  %v1150_v14 = vadd.f32 %v1133_v40, %v979_v59  ;;  %v3337_v27 = vld [vmem:[#allocation2_spill] sm:$0xff] }
 0x155   : > { %v2628_v38 = vpop.f32.mrf.mxu1  ;;  %v1565_v31 = vadd.f32 %v2604_v56, %v1417_v3  ;;  %v1412_v50 = vadd.f32 %v3337_v27, %v1146_v28  ;;  %v2287_v56 = vld [vmem:[%s3329_s3] ss:$0 sm:$0xff] }
 0x156   : > { %v1544_v61 = vpop.f32.mrf.mxu0  ;;  %v1413_v0 = vadd.f32 %v2576_v62, %v1147_v42  ;;  %v1415_v15 = vadd.f32 %v1396_v7, %v1149_v36  ;;  %v1416_v32 = vadd.f32 %v1399_v8, %v1150_v14 }
 0x157   : > { %v1692_v46 = vpop.f32.mrf.mxu1  ;;  %v1713_v24 = vadd.f32 %v2628_v38, %v1565_v31  ;;  %v3338_v7 = vld [vmem:[#allocation3_spill] sm:$0xff]  ;;  %v1560_v54 = vadd.f32 %v1531_v11, %v1412_v50 }
 0x158   : > { %v2605_v52 = vpop.f32.mrf.mxu0  ;;  %v1561_v25 = vadd.f32 %v2600_v58, %v1413_v0  ;;  %v1563_v21 = vadd.f32 %v1544_v61, %v1415_v15  ;;  %v1707_v40 = vadd.f32 %v3338_v7, %v1559_v37 }
 0x159   : > { %v2629_v10 = vpop.f32.mrf.mxu1  ;;  %v1566_v16 = vadd.f32 %v2605_v52, %v1418_v26 }
 0x15a   : > { %v1547_v5 = vpop.f32.mrf.mxu0  ;;  %v1709_v62 = vadd.f32 %v2624_v12, %v1561_v25  ;;  %v1711_v13 = vadd.f32 %v1692_v46, %v1563_v21  ;;  %v3339_v12 = vld [vmem:[#allocation4_spill] sm:$0xff] }
 0x15b   : > { %v1695_v2 = vpop.f32.mrf.mxu1  ;;  %v1564_v23 = vadd.f32 %v1547_v5, %v1416_v32  ;;  %v1710_v18 = vadd.f32 %v3339_v12, %v1562_v4  ;;  %v1714_v45 = vadd.f32 %v2629_v10, %v1566_v16  ;;  %v3340_v11 = vld [vmem:[#allocation5_spill] sm:$0xff] }
 0x15c   : > { %v1708_v57 = vadd.f32 %v3340_v11, %v1560_v54 }
 0x15d   : > { %v1712_v34 = vadd.f32 %v1695_v2, %v1564_v23 }
 0x16c   : > { %v2648_v55 = vpop.f32.mrf.mxu0 }
 0x16d   : > { %v1870_v58 = vadd.f32 %v2648_v55, %v1709_v62  ;;  %v2652_v20 = vpop.f32.mrf.mxu1 }
 0x16e   : > { %v1874_v29 = vadd.f32 %v2652_v20, %v1713_v24  ;;  %v1837_v41 = vpop.f32.mrf.mxu0 }
 0x16f   : > { %v1885_v43 = vmul.f32 %v2286_v47, %v1870_v58  ;;  %v1868_v8 = vadd.f32 %v1837_v41, %v1707_v40  ;;  %v1853_v44 = vpop.f32.mrf.mxu1 }
 0x170   : > { %v1889_v60 = vmul.f32 %v2286_v47, %v1874_v29  ;;  %v1872_v1 = vadd.f32 %v1853_v44, %v1711_v13  ;;  %v2649_v38 = vpop.f32.mrf.mxu0 }
 0x171   : > { %v1883_v46 = vmul.f32 %v2286_v47, %v1868_v8  ;;  %v1871_v63 = vadd.f32 %v2649_v38, %v1710_v18  ;;  %v2653_v22 = vpop.f32.mrf.mxu1  ;;  %v1900_v33 = vadd.f32 %v2287_v56, %v1885_v43 }
 0x172   : > { %v1887_v9 = vmul.f32 %v2286_v47, %v1872_v1  ;;  %v1875_v42 = vadd.f32 %v2653_v22, %v1714_v45  ;;  %v1840_v19 = vpop.f32.mrf.mxu0  ;;  %v1904_v30 = vadd.f32 %v2287_v56, %v1889_v60 }
 0x173   : > { %v1886_v49 = vmul.f32 %v2286_v47, %v1871_v63  ;;  %v1869_v61 = vadd.f32 %v1840_v19, %v1708_v57  ;;  %v1856_v48 = vpop.f32.mrf.mxu1  ;;  %v1898_v51 = vadd.f32 %v2287_v56, %v1883_v46  ;;  %v1908_v52 = vmax.f32 %v1900_v33, 0.0 }
 0x174   : > { %v1890_v39 = vmul.f32 %v2286_v47, %v1875_v42  ;;  %v1873_v36 = vadd.f32 %v1856_v48, %v1712_v34  ;;  %v1902_v59 = vadd.f32 %v2287_v56, %v1887_v9  ;;  %v1912_v25 = vmax.f32 %v1904_v30, 0.0 }
 0x175   : > { %v1901_v0 = vadd.f32 %v2287_v56, %v1886_v49  ;;  %v1884_v17 = vmul.f32 %v2286_v47, %v1869_v61  ;;  %v1906_v14 = vmax.f32 %v1898_v51, 0.0 }
 0x176   : > { %v1905_v3 = vadd.f32 %v2287_v56, %v1890_v39  ;;  %v1888_v6 = vmul.f32 %v2286_v47, %v1873_v36  ;;  %v1910_v37 = vmax.f32 %v1902_v59, 0.0 }
 0x177   : > { %v1909_v53 = vmax.f32 %v1901_v0, 0.0  ;;  %v1899_v28 = vadd.f32 %v2287_v56, %v1884_v17 }
 0x178   : > { %v1913_v10 = vmax.f32 %v1905_v3, 0.0  ;;  %v1903_v15 = vadd.f32 %v2287_v56, %v1888_v6 }
 0x179   : > { %v2315_v31 = vpack.c.bf16 %v1909_v53, %v1908_v52  ;;  %v1907_v35 = vmax.f32 %v1899_v28, 0.0 }
 0x17a   : > { %v2325_v26 = vpack.c.bf16 %v1913_v10, %v1912_v25  ;;  %v1911_v21 = vmax.f32 %v1903_v15, 0.0 }
 0x17b   : > { %2327 = vst [vmem:[%s197_s6 + $0x8] sm:$0xff] %v2315_v31   ;;  %v2310_v5 = vpack.c.bf16 %v1907_v35, %v1906_v14 }
 0x17c   : > { %2329 = vst [vmem:[%s197_s6 + $0x18] sm:$0xff] %v2325_v26   ;;  %v2320_v27 = vpack.c.bf16 %v1911_v21, %v1910_v37 }
 0x17d   : > { %2311 = vst [vmem:[%s197_s6] sm:$0xff] %v2310_v5  }
 0x17e   : > { %2328 = vst [vmem:[%s197_s6 + $0x10] sm:$0xff] %v2320_v27  }
 0x17f PF: > { %s14_s15 = sadd.s32 1, %s2781_s15  }
 0x180   : > { %p11_p4 = scmp.ge.s32.totalorder %s14_s15, 18  }
 0x182   :  { %13 = sbr.rel (!%p11_p4) target bundleno = 1 (0x1), region = 77 }

// kernel: bottleneck_transform.5
= control target key start
LH: loop header
LB: loop body
LE: loop exit
PB: predicated region body
PF: predicated region fallthrough
CT: control target
= control target key end

     0   :  { %13 = vsyncpa [#allocation3], 0  ;;  %s2399_s0 = inlined_call_operand.vmem [shape: bf16[1024,128], index: 0, kind: input, shape index: {}]   ;;  %s2400_s1 = inlined_call_operand.vmem [shape: bf16[128,128], index: 1, kind: input, shape index: {}]   ;;  %s2401_s2 = inlined_call_operand.vmem [shape: f32[1,128], index: 2, kind: input, shape index: {}]   ;;  %s2402_s3 = inlined_call_operand.vmem [shape: f32[1,128], index: 3, kind: input, shape index: {}]   ;;  %s2403_s4 = inlined_call_operand.vmem [shape: bf16[1024,4], index: 4, kind: input, shape index: {}]   ;;  %s2404_s5 = inlined_call_operand.vmem [shape: bf16[4,128], index: 5, kind: input, shape index: {}]   ;;  %s2405_s6 = inlined_call_operand.vmem [shape: f32[1,128], index: 6, kind: input, shape index: {}]   ;;  %s2406_s7 = inlined_call_operand.vmem [shape: f32[1,128], index: 7, kind: input, shape index: {}]   ;;  %s2407_s8 = inlined_call_operand.hbm [shape: f32[1024,128], index: 8, kind: output, shape index: {}]  }
   0x1   :  { %15 = vsyncpa [#allocation3 + $0x1], 0  ;;  %s1972_s27 = smov 0   ;;  %s1974_s28 = smov 0  }
   0x2   :  { %s1976_s29 = smov 0   ;;  %s1978_s30 = smov 0  }
   0x3   :  { %s1980_s9 = smov 0   ;;  %s1982_s10 = smov 0  }
   0x4 LB: > { %s1543_s11 = sadd.s32 4294967295, %s1922_s10   ;;  %s1544_s12 = sadd.s32 4294967294, %s1922_s10   ;;  %s1922_s10 = sphi %s1982_s10, %s21_s10   ;;  %s1918_s9 = sphi %s1980_s9, %s2414_s9   ;;  %s1914_s30 = sphi %s1978_s30, %s2413_s30   ;;  %s1910_s29 = sphi %s1976_s29, %s2412_s29   ;;  %s1906_s28 = sphi %s1974_s28, %s2411_s28   ;;  %s1902_s27 = sphi %s1972_s27, %s2410_s27  }
   0x5   : > { %s33_s13 = sadd.s32 1, %s1918_s9  ;;  %s250_s14 = sadd.s32 1, %s1910_s29 }
   0x6   : > { %p35_p0 = scmp.ge.s32.totalorder %s33_s13, 4  ;;  %p260_p1 = scmp.ne.s32.totalorder %s1910_s29, %s1906_s28 }
   0x7   : > { %p261_p2 = scmp.eq.s32.totalorder %s1543_s11, 3  ;;  %p266_p3 = scmp.ne.s32.totalorder %s1906_s28, %s1902_s27 }
   0x8   : > { %s2416_s13 = smov (%p35_p0, %s33_s13), 0  ;;  %p267_p5 = scmp.eq.s32.totalorder %s1544_s12, 3 }
   0x9   : > { %p2012_p4 = por %p261_p2, %p260_p1  ;;  %s245_s16 = ssub.s32 %s1918_s9, %s2416_s13 }
   0xa   : > { %p1553_p6 = scmp.ge.s32.totalorder %s1922_s10, 1  ;;  %p248_p7 = scmp.eq.s32.totalorder %s245_s16, 0 }
   0xb   : > { %p2019_p8 = por %p267_p5, %p266_p3  ;;  %p341_p9 = scmp.lt.s32.totalorder %s1922_s10, 5 }
   0xc   : > { %s2025_s18 = scalar_select %p248_p7, %s1910_s29, %s250_s14  }
   0xd   : > { %p342_p10 = pnand %p1553_p6, %p341_p9 }
   0xe   : > { %s1555_s23 = sshll.u32 (!%p342_p10), %s1914_s30, 5  ;;  %s397_s11 = sand.u32 (!%p342_p10), 1, %s1906_s28  }
   0xf   : > { %345 = sbr.rel (%p342_p10) target bundleno = 330 (0x14a), region = 52  ;;  %p401_p11 = scmp.lt.s32.totalorder (!%p342_p10), %s1555_s23, 127 }
  0x10   : > { %s1554_s16 = sshll.u32 (!%p342_p10), %s397_s11, 8  ;;  %s1624_s20 = sshll.u32 (!%p342_p10), %s1914_s30, 12 }
  0x11   : > { %s2168_s19 = scalar_lea.vmem (!%p342_p10), [#allocation2], %s1554_s16  ;;  %s2354_s25 = scalar_lea.sflag (!%p342_p10), [#allocation3], %s397_s11 }
  0x12   : > { %s1924_s26 = smov (!%p342_p10), [#allocation2]  }
  0x14   : > { %v1806_v0 = vld [vmem:[%s2400_s1 + $0x38] sm:$0xff]   ;;  %v1807_v1 = vld [vmem:[%s2400_s1 + $0x30] sm:$0xff]   ;;  %vm949_vm0 = vcmask 1041408   ;;  %v1808_v2 = vld [vmem:[%s2400_s1 + $0x28] sm:$0xff]   ;;  %s2418_s23 = smov (!%p401_p11, %s1555_s23), 127  ;;  %vm900_vm1 = vcmask 31744  }
  0x15   : > { %1666 = vmatprep.subr.bf16.mxu0 %v1806_v0  ;;  %v819_v3 = vld [vmem:[%s2404_s5] sm:$0x3]  ;;  %s1556_s12 = sshll.u32 %s2418_s23, 2  ;;  %v1810_v9 = vld [vmem:[%s2400_s1 + $0x18] sm:$0xff]   ;;  %v1811_v11 = vld [vmem:[%s2400_s1 + $0x10] sm:$0xff]  }
  0x16   : > { %1667 = vmatpush3.bf16.msra.mxu0 %v1806_v0  ;;  %1748 = vmatprep.subr.msk.bf16.mxu1 %vm949_vm0, %v819_v3  ;;  %v951_v4 = vsel %vm949_vm0, %v819_v3, 0  ;;  %v1809_v5 = vld [vmem:[%s2400_s1 + $0x20] sm:$0xff]   ;;  %s2046_s21 = scalar_lea.vmem %s2403_s4, %s1556_s12  ;;  %s2051_s23 = scalar_lea.vmem %s2399_s0, %s1556_s12  ;;  %v1812_v14 = vld [vmem:[%s2400_s1 + $0x8] sm:$0xff]  }
  0x17   : > { %1668 = vmatprep.subr.bf16.mxu0 %v1807_v1  ;;  %1715 = vmatpush3.bf16.msra.mxu1 %v951_v4  ;;  %v1813_v6 = vld [vmem:[%s2046_s21] sm:$0xff]   ;;  %v1814_v7 = vld [vmem:[%s2046_s21 + $0x8] sm:$0xff]   ;;  %v1818_v10 = vld [vmem:[%s2046_s21 + $0x10] sm:$0xff]   ;;  %s1850_s12 = sshll.u32 %s1924_s26, 4  ;;  %s1851_s12 = int_to_ptr.vmem [resolvable:$false] %s1850_s12 }
  0x18   : > { %1716 = vmatprep.mubr.msk.bf16.mxu1 %vm900_vm1, %v1813_v6  ;;  %v1816_v8 = vld [vmem:[%s2051_s23] sm:$0xff]   ;;  %v1819_v12 = vld [vmem:[%s2046_s21 + $0x18] sm:$0xff]   ;;  %v1823_v16 = vld [vmem:[%s2046_s21 + $0x28] sm:$0xff]   ;;  %s1852_s14 = scalar_lea.vmem %s1851_s12, 8192 }
  0x19   : > { %1682 = vmatprep.mubr.bf16.mxu0 %v1816_v8  ;;  %v1822_v13 = vld [vmem:[%s2046_s21 + $0x20] sm:$0xff]   ;;  %v1826_v17 = vld [vmem:[%s2046_s21 + $0x30] sm:$0xff]   ;;  %v1817_v18 = vld [vmem:[%s2051_s23 + $0x8] sm:$0xff]  }
  0x1a   : > { %1669 = vmatpush3.bf16.msra.mxu0 %v1807_v1  ;;  %1717 = vmatmul.mubr.msk.bf16.vlgmr.msra.gmra.mxu1 %vm900_vm1, %v1814_v7  ;;  %v1815_v15 = vld [vmem:[%s2400_s1] sm:$0xff]   ;;  %v1820_v19 = vld [vmem:[%s2051_s23 + $0x10] sm:$0xff]   ;;  %v1827_v20 = vld [vmem:[%s2046_s21 + $0x38] sm:$0xff]  }
  0x1b   : > { %1670 = vmatprep.subr.bf16.mxu0 %v1808_v2  ;;  %1720 = vmatprep.mubr.msk.bf16.mxu1 %vm900_vm1, %v1818_v10  ;;  %v1830_v21 = vld [vmem:[%s2046_s21 + $0x40] sm:$0xff]   ;;  %v1821_v22 = vld [vmem:[%s2051_s23 + $0x18] sm:$0xff]   ;;  %v1831_v24 = vld [vmem:[%s2046_s21 + $0x48] sm:$0xff]  }
  0x1c   : > { %v1824_v23 = vld [vmem:[%s2051_s23 + $0x20] sm:$0xff]   ;;  %v1834_v25 = vld [vmem:[%s2046_s21 + $0x50] sm:$0xff]   ;;  %v1825_v26 = vld [vmem:[%s2051_s23 + $0x28] sm:$0xff]  }
  0x1d   : > { %v1828_v27 = vld [vmem:[%s2051_s23 + $0x30] sm:$0xff]   ;;  %v1835_v28 = vld [vmem:[%s2046_s21 + $0x58] sm:$0xff]   ;;  %v1838_v29 = vld [vmem:[%s2046_s21 + $0x60] sm:$0xff]  }
  0x1e   : > { %1671 = vmatpush3.bf16.msra.mxu0 %v1808_v2  ;;  %v1829_v30 = vld [vmem:[%s2051_s23 + $0x38] sm:$0xff]   ;;  %v1832_v31 = vld [vmem:[%s2051_s23 + $0x40] sm:$0xff]   ;;  %v1839_v32 = vld [vmem:[%s2046_s21 + $0x68] sm:$0xff]  }
  0x1f   : > { %1672 = vmatprep.subr.bf16.mxu0 %v1809_v5  ;;  %v1842_v33 = vld [vmem:[%s2046_s21 + $0x70] sm:$0xff]   ;;  %v1833_v34 = vld [vmem:[%s2051_s23 + $0x48] sm:$0xff]   ;;  %v1843_v36 = vld [vmem:[%s2046_s21 + $0x78] sm:$0xff]   ;;  %s1381_s21 = sshll.u32 %s2168_s19, 4  ;;  %s2348_s21 = int_to_ptr.vmem [resolvable:$true] %s1381_s21 }
  0x20   : > { %v1836_v35 = vld [vmem:[%s2051_s23 + $0x50] sm:$0xff]   ;;  %v1837_v37 = vld [vmem:[%s2051_s23 + $0x58] sm:$0xff]   ;;  %v1840_v38 = vld [vmem:[%s2051_s23 + $0x60] sm:$0xff]   ;;  %s1846_s30 = scalar_lea.vmem %s2348_s21, 4096  ;;  %p1853_p1 = scmp.lt.s32.totalorder %s2348_s21, %s1851_s12 }
  0x21   : > { %v1841_v39 = vld [vmem:[%s2051_s23 + $0x68] sm:$0xff]   ;;  %v1844_v40 = vld [vmem:[%s2051_s23 + $0x70] sm:$0xff]   ;;  %v1845_v41 = vld [vmem:[%s2051_s23 + $0x78] sm:$0xff]   ;;  %s2346_s23 = scalar_lea.hbm %s2407_s8, %s1624_s20  ;;  %p1847_p12 = scmp.ne.s32.totalorder %s2348_s21, %s1846_s30 }
  0x22   : > { %1673 = vmatpush3.bf16.msra.mxu0 %v1809_v5  ;;  %1721 = vmatmul.mubr.msk.bf16.gmra.mxu1 %vm900_vm1, %v1819_v12  ;;  %v2116_v50 = vld [vmem:[%s2405_s6] ss:$0 sm:$0xff]  ;;  %p1854_p2 = scmp.lt.s32.totalorder %s1852_s14, %s1846_s30 }
  0x23   : > { %1674 = vmatprep.subr.bf16.mxu0 %v1810_v9  ;;  %1724 = vmatprep.mubr.msk.bf16.mxu1 %vm900_vm1, %v1822_v13  ;;  %v2124_v54 = vld [vmem:[%s2406_s7] ss:$0 sm:$0xff]  ;;  %p1848_p13 = pnand %p1847_p12, %p2012_p4 }
  0x24   : > { %v2129_v55 = vld [vmem:[%s2401_s2] ss:$0 sm:$0xff]  ;;  %p1855_p3 = por %p1854_p2, %p1853_p1 }
  0x25   : > { %v2137_v58 = vld [vmem:[%s2402_s3] ss:$0 sm:$0xff]  ;;  %p1849_p0 = pneg %p1848_p13 }
  0x26   : > { %1675 = vmatpush3.bf16.msra.mxu0 %v1810_v9 }
  0x27   : > { %1676 = vmatprep.subr.bf16.mxu0 %v1811_v11  ;;  %p1856_p5 = pnand %p1855_p3, %p1849_p0 }
  0x2a   : > { %1677 = vmatpush3.bf16.msra.mxu0 %v1811_v11  ;;  %1725 = vmatmul.mubr.msk.bf16.gmra.mxu1 %vm900_vm1, %v1823_v16 }
  0x2b   : > { %1678 = vmatprep.subr.bf16.mxu0 %v1812_v14  ;;  %1728 = vmatprep.mubr.msk.bf16.mxu1 %vm900_vm1, %v1826_v17 }
  0x2e   : > { %1679 = vmatpush3.bf16.msra.mxu0 %v1812_v14 }
  0x2f   : > { %1680 = vmatprep.subr.bf16.mxu0 %v1815_v15 }
  0x32   : > { %1681 = vmatpush3.bf16.msra.mxu0 %v1815_v15  ;;  %1729 = vmatmul.mubr.msk.bf16.gmra.mxu1 %vm900_vm1, %v1827_v20 }
  0x33   : > { %1732 = vmatprep.mubr.msk.bf16.mxu1 %vm900_vm1, %v1830_v21 }
  0x35   : > { %1683 = vmatmul.mubr.bf16.vlgmr.msra.gmra.mxu0 %v1817_v18 }
  0x36   : > { %1686 = vmatprep.mubr.bf16.mxu0 %v1820_v19 }
  0x3a   : > { %1733 = vmatmul.mubr.msk.bf16.gmra.mxu1 %vm900_vm1, %v1831_v24 }
  0x3b   : > { %1736 = vmatprep.mubr.msk.bf16.mxu1 %vm900_vm1, %v1834_v25 }
  0x3d   : > { %1687 = vmatmul.mubr.bf16.gmra.mxu0 %v1821_v22 }
  0x3e   : > { %1690 = vmatprep.mubr.bf16.mxu0 %v1824_v23 }
  0x42   : > { %1737 = vmatmul.mubr.msk.bf16.gmra.mxu1 %vm900_vm1, %v1835_v28 }
  0x43   : > { %1740 = vmatprep.mubr.msk.bf16.mxu1 %vm900_vm1, %v1838_v29 }
  0x45   : > { %1691 = vmatmul.mubr.bf16.gmra.mxu0 %v1825_v26 }
  0x46   : > { %1694 = vmatprep.mubr.bf16.mxu0 %v1828_v27 }
  0x4a   : > { %1741 = vmatmul.mubr.msk.bf16.gmra.mxu1 %vm900_vm1, %v1839_v32 }
  0x4b   : > { %1744 = vmatprep.mubr.msk.bf16.mxu1 %vm900_vm1, %v1842_v33 }
  0x4d   : > { %1695 = vmatmul.mubr.bf16.gmra.mxu0 %v1829_v30 }
  0x4e   : > { %1698 = vmatprep.mubr.bf16.mxu0 %v1832_v31 }
  0x52   : > { %1745 = vmatmul.mubr.msk.bf16.gmra.mxu1 %vm900_vm1, %v1843_v36 }
  0x55   : > { %1699 = vmatmul.mubr.bf16.gmra.mxu0 %v1833_v34 }
  0x56   : > { %1702 = vmatprep.mubr.bf16.mxu0 %v1836_v35 }
  0x5d   : > { %1703 = vmatmul.mubr.bf16.gmra.mxu0 %v1837_v37 }
  0x5e   : > { %1706 = vmatprep.mubr.bf16.mxu0 %v1840_v38 }
  0x65   : > { %1707 = vmatmul.mubr.bf16.gmra.mxu0 %v1841_v39 }
  0x66   : > { %1710 = vmatprep.mubr.bf16.mxu0 %v1844_v40 }
  0x6d   : > { %1711 = vmatmul.mubr.bf16.gmra.mxu0 %v1845_v41 }
  0xda   : > { %v1718_v42 = vpop.f32.mrf.mxu1 }
  0xdb   : > { %v1201_v53 = vmul.f32 %v1718_v42, %v2116_v50 }
  0xdc   : > { %v987_v43 = vpop.f32.mrf.mxu1 }
  0xdd   : > { %v1240_v60 = vadd.f32 %v2124_v54, %v1201_v53  ;;  %v1199_v61 = vmul.f32 %v2116_v50, %v987_v43 }
  0xde   : > { %v1719_v44 = vpop.f32.mrf.mxu1 }
  0xdf   : > { %v1202_v63 = vmul.f32 %v1719_v44, %v2116_v50  ;;  %v1238_v8 = vadd.f32 %v2124_v54, %v1199_v61 }
  0xe0   : > { %v990_v45 = vpop.f32.mrf.mxu1 }
  0xe1   : > { %v1200_v4 = vmul.f32 %v2116_v50, %v990_v45  ;;  %v1241_v12 = vadd.f32 %v2124_v54, %v1202_v63 }
  0xe2   : > { %v1722_v46 = vpop.f32.mrf.mxu1 }
  0xe3   : > { %v1205_v5 = vmul.f32 %v1722_v46, %v2116_v50  ;;  %v1239_v19 = vadd.f32 %v2124_v54, %v1200_v4 }
  0xe4   : > { %v1003_v47 = vpop.f32.mrf.mxu1 }
  0xe5   : > { %v1244_v20 = vadd.f32 %v2124_v54, %v1205_v5  ;;  %v1203_v21 = vmul.f32 %v2116_v50, %v1003_v47 }
  0xe6   : > { %v1723_v48 = vpop.f32.mrf.mxu1 }
  0xe7   : > { %v1206_v28 = vmul.f32 %v1723_v48, %v2116_v50  ;;  %v1242_v35 = vadd.f32 %v2124_v54, %v1203_v21 }
  0xe8   : > { %v1006_v49 = vpop.f32.mrf.mxu1 }
  0xe9   : > { %v1204_v36 = vmul.f32 %v2116_v50, %v1006_v49  ;;  %v1245_v44 = vadd.f32 %v2124_v54, %v1206_v28 }
  0xea   : > { %v1726_v51 = vpop.f32.mrf.mxu1 }
  0xeb   : > { %v1209_v37 = vmul.f32 %v1726_v51, %v2116_v50  ;;  %v1243_v53 = vadd.f32 %v2124_v54, %v1204_v36 }
  0xec   : > { %v2118_v52 = vpop.f32.mrf.mxu1 }
  0xee   : > { %v2131_v56 = vpop.f32.mrf.mxu1 }
  0xef   : > { %v1210_v4 = vmul.f32 %v2131_v56, %v2116_v50 }
  0xf0   : > { %v2139_v59 = vpop.f32.mrf.mxu1 }
  0xf2   : > { %v2145_v1 = vpop.f32.mrf.mxu1 }
  0xf4   : > { %v2153_v7 = vpop.f32.mrf.mxu1 }
  0xf5   : > { %v1684_v57 = vpop.f32.mrf.mxu0  ;;  %v1211_v28 = vmul.f32 %v2116_v50, %v2153_v7 }
  0xf6   : > { %v1123_v62 = vmul.f32 %v1684_v57, %v2129_v55  ;;  %v2159_v14 = vpop.f32.mrf.mxu1  ;;  %v1248_v57 = vadd.f32 %v2124_v54, %v1209_v37 }
  0xf7   : > { %v660_v0 = vpop.f32.mrf.mxu0  ;;  %v1214_v36 = vmul.f32 %v2159_v14, %v2116_v50 }
  0xf8   : > { %v1162_v2 = vadd.f32 %v2137_v58, %v1123_v62  ;;  %v1121_v3 = vmul.f32 %v2129_v55, %v660_v0  ;;  %v2166_v23 = vpop.f32.mrf.mxu1 }
  0xf9   : > { %v1685_v6 = vpop.f32.mrf.mxu0 }
  0xfa   : > { %v1272_v9 = vadd.f32 %v1240_v60, %v1162_v2  ;;  %v1160_v10 = vadd.f32 %v2137_v58, %v1121_v3  ;;  %v1124_v11 = vmul.f32 %v1685_v6, %v2129_v55  ;;  %v2174_v30 = vpop.f32.mrf.mxu1  ;;  %v1207_v60 = vmul.f32 %v2116_v50, %v2118_v52 }
  0xfb   : > { %v663_v13 = vpop.f32.mrf.mxu0 }
  0xfc   : > { %v1304_v15 = vmax.f32 %v1272_v9, 0.0  ;;  %v1270_v16 = vadd.f32 %v1238_v8, %v1160_v10  ;;  %v1163_v17 = vadd.f32 %v2137_v58, %v1124_v11  ;;  %v1122_v18 = vmul.f32 %v2129_v55, %v663_v13  ;;  %v2182_v39 = vpop.f32.mrf.mxu1 }
  0xfd   : > { %v1688_v22 = vpop.f32.mrf.mxu0  ;;  %v1246_v11 = vadd.f32 %v2124_v54, %v1207_v60  ;;  %v1213_v13 = vmul.f32 %v2145_v1, %v2116_v50 }
  0xfe   : > { %1336 = vst [vmem:[%s2168_s19 + $0x10] sm:$0xff] %v1304_v15  ;;  %v1302_v24 = vmax.f32 %v1270_v16, 0.0  ;;  %v1273_v25 = vadd.f32 %v1241_v12, %v1163_v17  ;;  %v1161_v26 = vadd.f32 %v2137_v58, %v1122_v18  ;;  %v1127_v27 = vmul.f32 %v1688_v22, %v2129_v55  ;;  %v2188_v46 = vpop.f32.mrf.mxu1 }
  0xff   : > { %v676_v29 = vpop.f32.mrf.mxu0  ;;  %v1208_v12 = vmul.f32 %v2116_v50, %v2139_v59 }
 0x100   : > { %1334 = vst [vmem:[%s2168_s19] sm:$0xff] %v1302_v24  ;;  %v1305_v31 = vmax.f32 %v1273_v25, 0.0  ;;  %v1271_v32 = vadd.f32 %v1239_v19, %v1161_v26  ;;  %v1166_v33 = vadd.f32 %v2137_v58, %v1127_v27  ;;  %v1125_v34 = vmul.f32 %v2129_v55, %v676_v29  ;;  %v2197_v62 = vpop.f32.mrf.mxu1 }
 0x101   : > { %v1689_v38 = vpop.f32.mrf.mxu0  ;;  %v1247_v26 = vadd.f32 %v2124_v54, %v1208_v12  ;;  %v1252_v27 = vadd.f32 %v2124_v54, %v1213_v13 }
 0x102   : > { %1337 = vst [vmem:[%s2168_s19 + $0x18] sm:$0xff] %v1305_v31  ;;  %v1303_v40 = vmax.f32 %v1271_v32, 0.0  ;;  %v1276_v41 = vadd.f32 %v1244_v20, %v1166_v33  ;;  %v1164_v42 = vadd.f32 %v2137_v58, %v1125_v34  ;;  %v1128_v43 = vmul.f32 %v1689_v38, %v2129_v55  ;;  %v2204_v6 = vpop.f32.mrf.mxu1 }
 0x103   : > { %v679_v45 = vpop.f32.mrf.mxu0  ;;  %v1249_v20 = vadd.f32 %v2124_v54, %v1210_v4 }
 0x104   : > { %1335 = vst [vmem:[%s2168_s19 + $0x8] sm:$0xff] %v1303_v40  ;;  %v1308_v47 = vmax.f32 %v1276_v41, 0.0  ;;  %v1274_v48 = vadd.f32 %v1242_v35, %v1164_v42  ;;  %v1167_v49 = vadd.f32 %v2137_v58, %v1128_v43  ;;  %v1126_v51 = vmul.f32 %v2129_v55, %v679_v45  ;;  %v2214_v15 = vpop.f32.mrf.mxu1 }
 0x105   : > { %v1692_v61 = vpop.f32.mrf.mxu0  ;;  %v1250_v42 = vadd.f32 %v2124_v54, %v1211_v28  ;;  %v1212_v43 = vmul.f32 %v2116_v50, %v2166_v23 }
 0x106   : > { %1340 = vst [vmem:[%s2168_s19 + $0x30] sm:$0xff] %v1308_v47  ;;  %v1306_v63 = vmax.f32 %v1274_v48, 0.0  ;;  %v1277_v0 = vadd.f32 %v1245_v44, %v1167_v49  ;;  %v1165_v2 = vadd.f32 %v2137_v58, %v1126_v51  ;;  %v1131_v3 = vmul.f32 %v1692_v61, %v2129_v55  ;;  %v2220_v22 = vpop.f32.mrf.mxu1 }
 0x107   : > { %v692_v5 = vpop.f32.mrf.mxu0  ;;  %v1217_v44 = vmul.f32 %v2174_v30, %v2116_v50 }
 0x108   : > { %1338 = vst [vmem:[%s2168_s19 + $0x20] sm:$0xff] %v1306_v63  ;;  %v1309_v8 = vmax.f32 %v1277_v0, 0.0  ;;  %v1275_v52 = vadd.f32 %v1243_v53, %v1165_v2  ;;  %v1170_v9 = vadd.f32 %v2137_v58, %v1131_v3  ;;  %v1129_v10 = vmul.f32 %v2129_v55, %v692_v5  ;;  %v2232_v35 = vpop.f32.mrf.mxu1 }
 0x109   : > { %v1693_v56 = vpop.f32.mrf.mxu0  ;;  %v1253_v53 = vadd.f32 %v2124_v54, %v1214_v36  ;;  %v1251_v63 = vadd.f32 %v2124_v54, %v1212_v43  ;;  %v1256_v0 = vadd.f32 %v2124_v54, %v1217_v44  ;;  %v1215_v2 = vmul.f32 %v2116_v50, %v2182_v39 }
 0x10a   : > { %1341 = vst [vmem:[%s2168_s19 + $0x38] sm:$0xff] %v1309_v8  ;;  %v1307_v16 = vmax.f32 %v1275_v52, 0.0  ;;  %v1280_v17 = vadd.f32 %v1248_v57, %v1170_v9  ;;  %v1168_v18 = vadd.f32 %v2137_v58, %v1129_v10  ;;  %v1132_v19 = vmul.f32 %v1693_v56, %v2129_v55  ;;  %v1742_v51 = vpop.f32.mrf.mxu1 }
 0x10b   : > { %v695_v21 = vpop.f32.mrf.mxu0  ;;  %v1218_v10 = vmul.f32 %v2188_v46, %v2116_v50 }
 0x10c   : > { %1339 = vst [vmem:[%s2168_s19 + $0x28] sm:$0xff] %v1307_v16  ;;  %v1312_v59 = vmax.f32 %v1280_v17, 0.0  ;;  %v1278_v1 = vadd.f32 %v1246_v11, %v1168_v18  ;;  %v1171_v24 = vadd.f32 %v2137_v58, %v1132_v19  ;;  %v1130_v25 = vmul.f32 %v2129_v55, %v695_v21  ;;  %v1083_v9 = vpop.f32.mrf.mxu1 }
 0x10d   : > { %v1696_v29 = vpop.f32.mrf.mxu0  ;;  %v1254_v16 = vadd.f32 %v2124_v54, %v1215_v2  ;;  %v1216_v17 = vmul.f32 %v2116_v50, %v2197_v62  ;;  %v1221_v18 = vmul.f32 %v2204_v6, %v2116_v50  ;;  %v1223_v2 = vmul.f32 %v2116_v50, %v1083_v9 }
 0x10e   : > { %1344 = vst [vmem:[%s2168_s19 + $0x50] sm:$0xff] %v1312_v59  ;;  %v1310_v31 = vmax.f32 %v1278_v1, 0.0  ;;  %v1281_v32 = vadd.f32 %v1249_v20, %v1171_v24  ;;  %v1169_v33 = vadd.f32 %v2137_v58, %v1130_v25  ;;  %v1135_v34 = vmul.f32 %v1696_v29, %v2129_v55  ;;  %v1743_v1 = vpop.f32.mrf.mxu1 }
 0x10f   : > { %v708_v37 = vpop.f32.mrf.mxu0  ;;  %v1257_v24 = vadd.f32 %v2124_v54, %v1218_v10  ;;  %v1255_v28 = vadd.f32 %v2124_v54, %v1216_v17  ;;  %v1260_v29 = vadd.f32 %v2124_v54, %v1221_v18 }
 0x110   : > { %1342 = vst [vmem:[%s2168_s19 + $0x40] sm:$0xff] %v1310_v31  ;;  %v1313_v38 = vmax.f32 %v1281_v32, 0.0  ;;  %v1279_v40 = vadd.f32 %v1247_v26, %v1169_v33  ;;  %v1174_v7 = vadd.f32 %v2137_v58, %v1135_v34  ;;  %v1133_v41 = vmul.f32 %v2129_v55, %v708_v37 }
 0x111   : > { %v1697_v45 = vpop.f32.mrf.mxu0  ;;  %v1219_v31 = vmul.f32 %v2116_v50, %v2214_v15 }
 0x112   : > { %1345 = vst [vmem:[%s2168_s19 + $0x58] sm:$0xff] %v1313_v38  ;;  %v1311_v14 = vmax.f32 %v1279_v40, 0.0  ;;  %v1284_v47 = vadd.f32 %v1252_v27, %v1174_v7  ;;  %v1172_v48 = vadd.f32 %v2137_v58, %v1133_v41  ;;  %v1136_v49 = vmul.f32 %v1697_v45, %v2129_v55  ;;  %v1086_v38 = vpop.f32.mrf.mxu1 }
 0x113   : > { %v711_v57 = vpop.f32.mrf.mxu0  ;;  %v1222_v40 = vmul.f32 %v2220_v22, %v2116_v50  ;;  %v1258_v44 = vadd.f32 %v2124_v54, %v1219_v31  ;;  %v1220_v45 = vmul.f32 %v2116_v50, %v2232_v35  ;;  %v1224_v17 = vmul.f32 %v2116_v50, %v1086_v38 }
 0x114   : > { %1343 = vst [vmem:[%s2168_s19 + $0x48] sm:$0xff] %v1311_v14  ;;  %v1316_v60 = vmax.f32 %v1284_v47, 0.0  ;;  %v1282_v23 = vadd.f32 %v1250_v42, %v1172_v48  ;;  %v1175_v61 = vadd.f32 %v2137_v58, %v1136_v49  ;;  %v1134_v30 = vmul.f32 %v2129_v55, %v711_v57  ;;  %v1746_v57 = vpop.f32.mrf.mxu1 }
 0x115   : > { %v1700_v3 = vpop.f32.mrf.mxu0  ;;  %v1225_v14 = vmul.f32 %v1742_v51, %v2116_v50  ;;  %v1229_v18 = vmul.f32 %v1746_v57, %v2116_v50 }
 0x116   : > { %1348 = vst [vmem:[%s2168_s19 + $0x70] sm:$0xff] %v1316_v60  ;;  %v1314_v4 = vmax.f32 %v1282_v23, 0.0  ;;  %v1285_v5 = vadd.f32 %v1253_v53, %v1175_v61  ;;  %v1173_v8 = vadd.f32 %v2137_v58, %v1134_v30  ;;  %v1139_v52 = vmul.f32 %v1700_v3, %v2129_v55  ;;  %v1099_v10 = vpop.f32.mrf.mxu1 }
 0x117   : > { %v724_v11 = vpop.f32.mrf.mxu0  ;;  %v1261_v60 = vadd.f32 %v2124_v54, %v1222_v40  ;;  %v1227_v31 = vmul.f32 %v2116_v50, %v1099_v10 }
 0x118   : > { %1346 = vst [vmem:[%s2168_s19 + $0x60] sm:$0xff] %v1314_v4  ;;  %v1317_v12 = vmax.f32 %v1285_v5, 0.0  ;;  %v1283_v13 = vadd.f32 %v1251_v63, %v1173_v8  ;;  %v1178_v39 = vadd.f32 %v2137_v58, %v1139_v52  ;;  %v1137_v56 = vmul.f32 %v2129_v55, %v724_v11 }
 0x119   : > { %v1701_v19 = vpop.f32.mrf.mxu0  ;;  %v1259_v63 = vadd.f32 %v2124_v54, %v1220_v45  ;;  %v1226_v11 = vmul.f32 %v1743_v1, %v2116_v50  ;;  %v1747_v1 = vpop.f32.mrf.mxu1 }
 0x11a   : > { %1349 = vst [vmem:[%s2168_s19 + $0x78] sm:$0xff] %v1317_v12  ;;  %v1315_v46 = vmax.f32 %v1283_v13, 0.0  ;;  %v1288_v20 = vadd.f32 %v1256_v0, %v1178_v39  ;;  %v1176_v21 = vadd.f32 %v2137_v58, %v1137_v56  ;;  %v1140_v59 = vmul.f32 %v1701_v19, %v2129_v55 }
 0x11b   : > { %v727_v25 = vpop.f32.mrf.mxu0  ;;  %v1264_v0 = vadd.f32 %v2124_v54, %v1225_v14  ;;  %v1102_v38 = vpop.f32.mrf.mxu1  ;;  %v1230_v40 = vmul.f32 %v1747_v1, %v2116_v50 }
 0x11c   : > { %1347 = vst [vmem:[%s2168_s19 + $0x68] sm:$0xff] %v1315_v46  ;;  %v1320_v26 = vmax.f32 %v1288_v20, 0.0  ;;  %v1286_v62 = vadd.f32 %v1254_v16, %v1176_v21  ;;  %v1179_v27 = vadd.f32 %v2137_v58, %v1140_v59  ;;  %v1138_v6 = vmul.f32 %v2129_v55, %v727_v25 }
 0x11d   : > { %v1704_v32 = vpop.f32.mrf.mxu0  ;;  %v1262_v16 = vadd.f32 %v2124_v54, %v1223_v2  ;;  %v1228_v45 = vmul.f32 %v2116_v50, %v1102_v38 }
 0x11e   : > { %1352 = vst [vmem:[%s2168_s19 + $0x90] sm:$0xff] %v1320_v26  ;;  %v1318_v33 = vmax.f32 %v1286_v62, 0.0  ;;  %v1289_v34 = vadd.f32 %v1257_v24, %v1179_v27  ;;  %v1177_v36 = vadd.f32 %v2137_v58, %v1138_v6  ;;  %v1143_v37 = vmul.f32 %v1704_v32, %v2129_v55 }
 0x11f   : > { %v740_v7 = vpop.f32.mrf.mxu0  ;;  %v1265_v24 = vadd.f32 %v2124_v54, %v1226_v11 }
 0x120   : > { %1350 = vst [vmem:[%s2168_s19 + $0x80] sm:$0xff] %v1318_v33  ;;  %v1321_v41 = vmax.f32 %v1289_v34, 0.0  ;;  %v1287_v42 = vadd.f32 %v1255_v28, %v1177_v36  ;;  %v1182_v15 = vadd.f32 %v2137_v58, %v1143_v37  ;;  %v1141_v43 = vmul.f32 %v2129_v55, %v740_v7 }
 0x121   : > { %v1705_v47 = vpop.f32.mrf.mxu0  ;;  %v1263_v28 = vadd.f32 %v2124_v54, %v1224_v17 }
 0x122   : > { %1353 = vst [vmem:[%s2168_s19 + $0x98] sm:$0xff] %v1321_v41  ;;  %v1319_v48 = vmax.f32 %v1287_v42, 0.0  ;;  %v1292_v22 = vadd.f32 %v1260_v29, %v1182_v15  ;;  %v1180_v49 = vadd.f32 %v2137_v58, %v1141_v43  ;;  %v1144_v53 = vmul.f32 %v1705_v47, %v2129_v55 }
 0x123   : > { %v743_v23 = vpop.f32.mrf.mxu0  ;;  %v1268_v29 = vadd.f32 %v2124_v54, %v1229_v18 }
 0x124   : > { %1351 = vst [vmem:[%s2168_s19 + $0x88] sm:$0xff] %v1319_v48  ;;  %v1324_v61 = vmax.f32 %v1292_v22, 0.0  ;;  %v1290_v30 = vadd.f32 %v1258_v44, %v1180_v49  ;;  %v1183_v35 = vadd.f32 %v2137_v58, %v1144_v53  ;;  %v1142_v51 = vmul.f32 %v2129_v55, %v743_v23 }
 0x125   : > { %v1708_v3 = vpop.f32.mrf.mxu0  ;;  %v1266_v44 = vadd.f32 %v2124_v54, %v1227_v31  ;;  %v1269_v53 = vadd.f32 %v2124_v54, %v1230_v40 }
 0x126   : > { %1356 = vst [vmem:[%s2168_s19 + $0xb0] sm:$0xff] %v1324_v61  ;;  %v1322_v4 = vmax.f32 %v1290_v30, 0.0  ;;  %v1293_v5 = vadd.f32 %v1261_v60, %v1183_v35  ;;  %v1181_v8 = vadd.f32 %v2137_v58, %v1142_v51  ;;  %v1147_v52 = vmul.f32 %v1708_v3, %v2129_v55 }
 0x127   : > { %v756_v12 = vpop.f32.mrf.mxu0  ;;  %v1267_v30 = vadd.f32 %v2124_v54, %v1228_v45 }
 0x128   : > { %1354 = vst [vmem:[%s2168_s19 + $0xa0] sm:$0xff] %v1322_v4  ;;  %v1325_v13 = vmax.f32 %v1293_v5, 0.0  ;;  %v1291_v39 = vadd.f32 %v1259_v63, %v1181_v8  ;;  %v1186_v56 = vadd.f32 %v2137_v58, %v1147_v52  ;;  %v1145_v9 = vmul.f32 %v2129_v55, %v756_v12 }
 0x129   : > { %v1709_v19 = vpop.f32.mrf.mxu0 }
 0x12a   : > { %1357 = vst [vmem:[%s2168_s19 + $0xb8] sm:$0xff] %v1325_v13  ;;  %v1323_v46 = vmax.f32 %v1291_v39, 0.0  ;;  %v1296_v20 = vadd.f32 %v1264_v0, %v1186_v56  ;;  %v1184_v21 = vadd.f32 %v2137_v58, %v1145_v9  ;;  %v1148_v59 = vmul.f32 %v1709_v19, %v2129_v55 }
 0x12b   : > { %v759_v25 = vpop.f32.mrf.mxu0 }
 0x12c   : > { %1355 = vst [vmem:[%s2168_s19 + $0xa8] sm:$0xff] %v1323_v46  ;;  %v1328_v26 = vmax.f32 %v1296_v20, 0.0  ;;  %v1294_v62 = vadd.f32 %v1262_v16, %v1184_v21  ;;  %v1187_v27 = vadd.f32 %v2137_v58, %v1148_v59  ;;  %v1146_v6 = vmul.f32 %v2129_v55, %v759_v25 }
 0x12d   : > { %v1712_v32 = vpop.f32.mrf.mxu0 }
 0x12e   : > { %1360 = vst [vmem:[%s2168_s19 + $0xd0] sm:$0xff] %v1328_v26  ;;  %v1326_v33 = vmax.f32 %v1294_v62, 0.0  ;;  %v1297_v34 = vadd.f32 %v1265_v24, %v1187_v27  ;;  %v1185_v36 = vadd.f32 %v2137_v58, %v1146_v6  ;;  %v1151_v37 = vmul.f32 %v1712_v32, %v2129_v55 }
 0x12f   : > { %v772_v7 = vpop.f32.mrf.mxu0 }
 0x130   : > { %1358 = vst [vmem:[%s2168_s19 + $0xc0] sm:$0xff] %v1326_v33  ;;  %v1329_v41 = vmax.f32 %v1297_v34, 0.0  ;;  %v1295_v42 = vadd.f32 %v1263_v28, %v1185_v36  ;;  %v1190_v15 = vadd.f32 %v2137_v58, %v1151_v37  ;;  %v1149_v43 = vmul.f32 %v2129_v55, %v772_v7 }
 0x131   : > { %v1713_v14 = vpop.f32.mrf.mxu0 }
 0x132   : > { %1361 = vst [vmem:[%s2168_s19 + $0xd8] sm:$0xff] %v1329_v41  ;;  %v1327_v47 = vmax.f32 %v1295_v42, 0.0  ;;  %v1300_v48 = vadd.f32 %v1268_v29, %v1190_v15  ;;  %v1188_v22 = vadd.f32 %v2137_v58, %v1149_v43  ;;  %v1152_v49 = vmul.f32 %v1713_v14, %v2129_v55 }
 0x133   : > { %v775_v57 = vpop.f32.mrf.mxu0 }
 0x134   : > { %1359 = vst [vmem:[%s2168_s19 + $0xc8] sm:$0xff] %v1327_v47  ;;  %v1332_v60 = vmax.f32 %v1300_v48, 0.0  ;;  %v1298_v23 = vadd.f32 %v1266_v44, %v1188_v22  ;;  %v1191_v50 = vadd.f32 %v2137_v58, %v1152_v49  ;;  %v1150_v61 = vmul.f32 %v2129_v55, %v775_v57 }
 0x136   : > { %1364 = vst [vmem:[%s2168_s19 + $0xf0] sm:$0xff] %v1332_v60  ;;  %v1330_v35 = vmax.f32 %v1298_v23, 0.0  ;;  %v1301_v51 = vadd.f32 %v1269_v53, %v1191_v50  ;;  %v1189_v63 = vadd.f32 %v2137_v58, %v1150_v61 }
 0x138   : > { %1362 = vst [vmem:[%s2168_s19 + $0xe0] sm:$0xff] %v1330_v35  ;;  %v1333_v0 = vmax.f32 %v1301_v51, 0.0  ;;  %v1299_v2 = vadd.f32 %v1267_v30, %v1189_v63 }
 0x13a   : > { %1365 = vst [vmem:[%s2168_s19 + $0xf8] sm:$0xff] %v1333_v0  ;;  %v1331_v54 = vmax.f32 %v1299_v2, 0.0 }
 0x13c   : > { %1363 = vst [vmem:[%s2168_s19 + $0xe8] sm:$0xff] %v1331_v54 }
 0x13d   : > { %1859 = shalt.err (!%p1856_p5)
}
 0x13e   : > { %s1860_s11 = scalar_lea.hbm %s2346_s23, 4096  ;;  %s1864_s20 = scalar_lea.hbm %s2407_s8, 16384 }
 0x13f   : > { %p1861_p6 = scmp.ne.s32.totalorder %s2346_s23, %s1860_s11  ;;  %p1865_p10 = scmp.lt.s32.totalorder %s2346_s23, %s2407_s8 }
 0x140   : > { %p1866_p11 = scmp.lt.s32.totalorder %s1864_s20, %s1860_s11 }
 0x141   : > { %p1862_p7 = pnand %p1861_p6, %p2012_p4 }
 0x142   : > { %p1867_p12 = por %p1866_p11, %p1865_p10 }
 0x143   : > { %p1863_p9 = pneg %p1862_p7 }
 0x145   : > { %p1868_p13 = pnand %p1867_p12, %p1863_p9 }
 0x147   : > { %1871 = shalt.err (!%p1868_p13)
}
 0x148   : > { %s1925_s30 = smov 128   ;;  %s1926_s26 = smov 8  }
 0x149   : > { %1749 = dma.vmem_to_hbm [thread:$0]  (%p2012_p4), %s2348_s21, 4096, %s2346_s23, %s2354_s25, %s1925_s30, %s1925_s30, %s1926_s26  }
 0x14a PF: > { %p1755_p0 = scmp.ge.s32.totalorder %s1922_s10, 2  ;;  %s1396_s12 = sand.u32 1, %s1902_s27  }
 0x14b   : > { %s1397_s14 = scalar_lea.sflag [#allocation3], %s1396_s12 }
 0x14c   : > { %p1752_p1 = pnand %p1755_p0, %p2019_p8 }
 0x14e   : > { %p1753_p2 = pneg %p1752_p1 }
 0x150   : > { %1897 = dma.done.wait (%p1753_p2), %s1397_s14, 4096  }
 0x151   : > { %1899 = vsyncadd (%p1753_p2), %s1397_s14, 4294963200  ;;  %s21_s10 = sadd.s32 1, %s1922_s10   ;;  %s2410_s27 = smov %s1906_s28 }
 0x152   : > { %p18_p3 = scmp.ge.s32.totalorder %s21_s10, 6   ;;  %s2411_s28 = smov %s1910_s29 }
 0x153   : > { %s2412_s29 = smov %s2025_s18  ;;  %s2413_s30 = smov %s1918_s9 }
 0x154   : > { %s2414_s9 = smov %s2416_s13  ;;  %20 = sbr.rel (!%p18_p3) target bundleno = 4 (0x4), region = 108 }
 0x159   :  { %1402 = vsyncpa [#allocation3], 1 }
 0x15a   :  { %1404 = vsyncpa [#allocation3 + $0x1], 1 }

</bundles_post_ra>
